<compile_context>
chip_gen: v7x
topology: tpu7x:2x2x1
jax: 0.10.0
libtpu: 0.0.40
codegen_flags: <defaults>
</compile_context>

<pallas_src>
import functools

import numpy as np
import jax
import jax.numpy as jnp
from jax.experimental import pallas as pl
from jax.experimental.pallas import tpu as pltpu


# ----------------------------------------------------------------------------
# Host/trace-side constant builders (weights enter only via one einsum).
# ----------------------------------------------------------------------------
def _row_select(h_in, h_out):
    """T[kh, ho, hi] = 1 iff hi == 2*ho + kh - 1   (4x4 / stride 2 / pad 1)."""
    t = np.zeros((4, h_out, h_in), np.float32)
    for kh in range(4):
        for ho in range(h_out):
            hi = 2 * ho + kh - 1
            if 0 <= hi < h_in:
                t[kh, ho, hi] = 1.0
    return t


def _col_weight(w, w_in):
    """M[kh, wi*Ci+ci, wo*Co+co] = w[co, ci, kh, wi-2*wo+1] (0 if tap OOB).

    Folds the kw taps, the width-direction patch extraction and the conv weight
    into one dense matrix per kh, acting on the width-folded layout X[h, w*C+c].
    """
    c_out, c_in = w.shape[0], w.shape[1]
    w_out = w_in // 2
    p = np.zeros((4, w_in, w_out), np.float32)
    for kw in range(4):
        for wo in range(w_out):
            wi = 2 * wo + kw - 1
            if 0 <= wi < w_in:
                p[kw, wi, wo] = 1.0
    m = jnp.einsum("kiw,ochk->hicwo", jnp.asarray(p), w.astype(jnp.float32))
    return m.reshape(4, w_in * c_in, w_out * c_out)


def _replicate(w_out, c):
    """R[wo*C + co, co'] = 1 iff co == co'  (per-channel reduce over folded lanes)."""
    return np.tile(np.eye(c, dtype=np.float32), (w_out, 1))


# ----------------------------------------------------------------------------
# The single fused kernel: conv1+lrelu, conv2+BN+lrelu, conv3+BN+lrelu,
# conv4(4x4 valid)+sigmoid.  Everything stays in VMEM/vregs.
# ----------------------------------------------------------------------------
def _netd32_kernel(x_ref, t1_ref, m1_ref, t2_ref, m2_ref, t3_ref, m3_ref,
                   r2_ref, u2_ref, g2_ref, b2_ref,
                   r3_ref, u3_ref, g3_ref, b3_ref,
                   v4_ref, o_ref, *, n_batch, eps):
    f32 = jnp.float32
    bf16 = jnp.bfloat16

    def leaky(v):
        return jnp.where(v >= 0.0, v, 0.2 * v)

    def conv(x_n, t_ref, m_ref):
        """4x4/s2/p1 conv on width-folded activations: sum_kh (T_kh @ X) @ M_kh."""
        acc = None
        for kh in range(4):
            rows = jnp.dot(t_ref[kh], x_n, preferred_element_type=f32)  # row shift (exact)
            term = jnp.dot(rows.astype(bf16), m_ref[kh],
                           preferred_element_type=f32)
            acc = term if acc is None else acc + term
        return acc                                                       # f32 (Ho, Wo*Co)

    def batch_norm_lrelu(ys, r_ref, u_ref, g_ref, b_ref):
        """Training-mode BN (batch stats, two-pass) + LeakyReLU on folded lanes."""
        n_ch = g_ref.shape[1]
        cnt = float(len(ys) * ys[0].shape[0] * (ys[0].shape[1] // n_ch))
        s = ys[0].sum(axis=0, keepdims=True)
        for y in ys[1:]:
            s = s + y.sum(axis=0, keepdims=True)
        mean_c = jnp.dot(s, r_ref[...]) / cnt                  # (1, C)
        mean_f = jnp.dot(mean_c, u_ref[...])                   # (1, Wo*C)
        q = ((ys[0] - mean_f) ** 2).sum(axis=0, keepdims=True)
        for y in ys[1:]:
            q = q + ((y - mean_f) ** 2).sum(axis=0, keepdims=True)
        var_c = jnp.dot(q, r_ref[...]) / cnt
        scale_c = g_ref[...] * jax.lax.rsqrt(var_c + eps)
        scale_f = jnp.dot(scale_c, u_ref[...])
        bias_f = jnp.dot(b_ref[...], u_ref[...])
        return [leaky((y - mean_f) * scale_f + bias_f) for y in ys]

    # TODO(synk): for large batches, split N over a 'parallel' grid axis
    # (megacore) and accumulate BN statistics across grid steps (Welford)
    # instead of this fully unrolled per-sample loop.

    # Layer 1 (conv + LeakyReLU) and layer 2 pre-activation, per sample.
    y2 = []
    for n in range(n_batch):
        h1 = leaky(conv(x_ref[n], t1_ref, m1_ref)).astype(bf16)     # (16, 128)
        y2.append(conv(h1, t2_ref, m2_ref))                         # (8, 128) f32

    # BN2 + LReLU, then layer 3 pre-activation.
    h2 = batch_norm_lrelu(y2, r2_ref, u2_ref, g2_ref, b2_ref)
    y3 = [conv(h.astype(bf16), t3_ref, m3_ref) for h in h2]         # (4, 128) f32

    # BN3 + LReLU, then the final 4x4 "valid" conv (a plain dot) + sigmoid.
    h3 = batch_norm_lrelu(y3, r3_ref, u3_ref, g3_ref, b3_ref)
    v4 = v4_ref[...]
    for n in range(n_batch):
        s = jnp.sum(h3[n] * v4, axis=0, keepdims=True)              # (1, 128)
        logit = jnp.sum(s, axis=1, keepdims=True)                   # (1, 1)
        o_ref[:, n:n + 1] = 1.0 / (1.0 + jnp.exp(-logit))


# ----------------------------------------------------------------------------
# Wrapper: one pallas_call for the whole forward pass.
# ----------------------------------------------------------------------------
def netd32_forward(x, params):
    w1, w2, g2, b2, w3, g3, b3, w4 = params
    eps = 1e-5
    n, nc, hh, ww = x.shape
    ndf = w1.shape[0]
    bf16, f32 = jnp.bfloat16, jnp.float32

    # Width-folded channels-last layout: act[n, h, w*C + c].  The lane dim is
    # 128 for every hidden layer (16*ndf, 8*2ndf, 4*4ndf) when ndf = 8.
    xf = x.transpose(0, 2, 3, 1).reshape(n, hh, ww * nc).astype(bf16)

    t1 = jnp.asarray(_row_select(hh, hh // 2), bf16)
    t2 = jnp.asarray(_row_select(hh // 2, hh // 4), bf16)
    t3 = jnp.asarray(_row_select(hh // 4, hh // 8), bf16)
    m1 = _col_weight(w1, ww).astype(bf16)           # (4,  nc*32, ndf*16)
    m2 = _col_weight(w2, ww // 2).astype(bf16)      # (4, 128, 128)
    m3 = _col_weight(w3, ww // 4).astype(bf16)      # (4, 128, 128)
    r2 = jnp.asarray(_replicate(ww // 4, 2 * ndf), f32)     # (128, 2ndf)
    r3 = jnp.asarray(_replicate(ww // 8, 4 * ndf), f32)     # (128, 4ndf)
    u2, u3 = r2.T, r3.T
    v4 = w4[0].transpose(1, 2, 0).reshape(hh // 8, (ww // 8) * 4 * ndf).astype(f32)
    g2r, b2r = g2.reshape(1, -1).astype(f32), b2.reshape(1, -1).astype(f32)
    g3r, b3r = g3.reshape(1, -1).astype(f32), b3.reshape(1, -1).astype(f32)

    args = (xf, t1, m1, t2, m2, t3, m3, r2, u2, g2r, b2r, r3, u3, g3r, b3r, v4)

    def full(a):
        return pl.BlockSpec(a.shape, lambda i, z=(0,) * a.ndim: z)

    out = pl.pallas_call(
        functools.partial(_netd32_kernel, n_batch=n, eps=eps),
        out_shape=jax.ShapeDtypeStruct((1, n), f32),
        grid=(1,),
        in_specs=[full(a) for a in args],
        out_specs=pl.BlockSpec((1, n), lambda i: (0, 0)),
        compiler_params=pltpu.CompilerParams(dimension_semantics=("arbitrary",)),
    )(*args)
    return out.reshape(-1)                          # .view(-1, 1).squeeze(1)


# ----------------------------------------------------------------------------
# Pure-JAX reference (lax.conv, f32, HIGHEST precision) for validation
# ----------------------------------------------------------------------------
def ref_forward(x, params):
    w1, w2, g2, b2, w3, g3, b3, w4 = params
    dn = ("NCHW", "OIHW", "NCHW")

    def conv(h, w, s, p):
        return jax.lax.conv_general_dilated(
            h, w, (s, s), ((p, p), (p, p)), dimension_numbers=dn,
            precision=jax.lax.Precision.HIGHEST)

    def bn(h, g, b):
        m = jnp.mean(h, axis=(0, 2, 3), keepdims=True)
        v = jnp.mean((h - m) ** 2, axis=(0, 2, 3), keepdims=True)
        return (h - m) * jax.lax.rsqrt(v + 1e-5) * g[None, :, None, None] \
            + b[None, :, None, None]

    lrelu = lambda h: jnp.where(h >= 0, h, 0.2 * h)
    h = lrelu(conv(x, w1, 2, 1))
    h = lrelu(bn(conv(h, w2, 2, 1), g2, b2))
    h = lrelu(bn(conv(h, w3, 2, 1), g3, b3))
    h = jax.nn.sigmoid(conv(h, w4, 1, 0))
    return h.reshape(-1)


# ----------------------------------------------------------------------------
# Main
# ----------------------------------------------------------------------------
if __name__ == "__main__":
    key = jax.random.PRNGKey(0)
    nz, ndf, nc = 100, 8, 3   # nz unused by the discriminator
    N = 2

    ks = jax.random.split(key, 9)
    x = jax.random.normal(ks[0], (N, nc, 32, 32), jnp.float32)
    w1 = 0.1 * jax.random.normal(ks[1], (ndf, nc, 4, 4), jnp.float32)
    w2 = 0.1 * jax.random.normal(ks[2], (ndf * 2, ndf, 4, 4), jnp.float32)
    g2 = 1.0 + 0.1 * jax.random.normal(ks[3], (ndf * 2,), jnp.float32)
    b2 = 0.1 * jax.random.normal(ks[4], (ndf * 2,), jnp.float32)
    w3 = 0.1 * jax.random.normal(ks[5], (ndf * 4, ndf * 2, 4, 4), jnp.float32)
    g3 = 1.0 + 0.1 * jax.random.normal(ks[6], (ndf * 4,), jnp.float32)
    b3 = 0.1 * jax.random.normal(ks[7], (ndf * 4,), jnp.float32)
    w4 = 0.1 * jax.random.normal(ks[8], (1, ndf * 4, 4, 4), jnp.float32)
    params = (w1, w2, g2, b2, w3, g3, b3, w4)

    fwd = jax.jit(netd32_forward)
    out = jax.block_until_ready(fwd(x, params))
    assert out.shape == (N,), out.shape

    ref = jax.block_until_ready(ref_forward(x, params))
    # bf16 MXU operands / bf16 inter-layer activations vs. f32 HIGHEST reference.
    assert jnp.allclose(out, ref, atol=2e-2, rtol=5e-2), (out, ref)

    print("KERNEL_OK")
</pallas_src>

<mosaic_0001>
module attributes {stable_mosaic.version = 11 : i64} {
  func.func @_netd32_kernel(%arg0: i32, %arg1: memref<2x32x96xbf16, #tpu.memory_space<vmem>>, %arg2: memref<4x16x32xbf16, #tpu.memory_space<vmem>>, %arg3: memref<4x96x128xbf16, #tpu.memory_space<vmem>>, %arg4: memref<4x8x16xbf16, #tpu.memory_space<vmem>>, %arg5: memref<4x128x128xbf16, #tpu.memory_space<vmem>>, %arg6: memref<4x4x8xbf16, #tpu.memory_space<vmem>>, %arg7: memref<4x128x128xbf16, #tpu.memory_space<vmem>>, %arg8: memref<128x16xf32, #tpu.memory_space<vmem>>, %arg9: memref<16x128xf32, #tpu.memory_space<vmem>>, %arg10: memref<1x16xf32, #tpu.memory_space<vmem>>, %arg11: memref<1x16xf32, #tpu.memory_space<vmem>>, %arg12: memref<128x32xf32, #tpu.memory_space<vmem>>, %arg13: memref<32x128xf32, #tpu.memory_space<vmem>>, %arg14: memref<1x32xf32, #tpu.memory_space<vmem>>, %arg15: memref<1x32xf32, #tpu.memory_space<vmem>>, %arg16: memref<4x128xf32, #tpu.memory_space<vmem>>, %arg17: memref<1x2xf32, #tpu.memory_space<vmem>>) attributes {dimension_semantics = [#tpu.dimension_semantics<arbitrary>], iteration_bounds = array<i64: 1>, scalar_prefetch = 0 : i64, scratch_operands = 0 : i64, tpu.core_type = #tpu.core_type<tc>, window_params = [{pipeline_mode = #tpu.pipeline_mode<synchronous>, transform_indices = @transform_0, window_bounds = array<i64: 2, 32, 96>}, {pipeline_mode = #tpu.pipeline_mode<synchronous>, transform_indices = @transform_1, window_bounds = array<i64: 4, 16, 32>}, {pipeline_mode = #tpu.pipeline_mode<synchronous>, transform_indices = @transform_2, window_bounds = array<i64: 4, 96, 128>}, {pipeline_mode = #tpu.pipeline_mode<synchronous>, transform_indices = @transform_3, window_bounds = array<i64: 4, 8, 16>}, {pipeline_mode = #tpu.pipeline_mode<synchronous>, transform_indices = @transform_4, window_bounds = array<i64: 4, 128, 128>}, {pipeline_mode = #tpu.pipeline_mode<synchronous>, transform_indices = @transform_5, window_bounds = array<i64: 4, 4, 8>}, {pipeline_mode = #tpu.pipeline_mode<synchronous>, transform_indices = @transform_6, window_bounds = array<i64: 4, 128, 128>}, {pipeline_mode = #tpu.pipeline_mode<synchronous>, transform_indices = @transform_7, window_bounds = array<i64: 128, 16>}, {pipeline_mode = #tpu.pipeline_mode<synchronous>, transform_indices = @transform_8, window_bounds = array<i64: 16, 128>}, {pipeline_mode = #tpu.pipeline_mode<synchronous>, transform_indices = @transform_9, window_bounds = array<i64: 1, 16>}, {pipeline_mode = #tpu.pipeline_mode<synchronous>, transform_indices = @transform_10, window_bounds = array<i64: 1, 16>}, {pipeline_mode = #tpu.pipeline_mode<synchronous>, transform_indices = @transform_11, window_bounds = array<i64: 128, 32>}, {pipeline_mode = #tpu.pipeline_mode<synchronous>, transform_indices = @transform_12, window_bounds = array<i64: 32, 128>}, {pipeline_mode = #tpu.pipeline_mode<synchronous>, transform_indices = @transform_13, window_bounds = array<i64: 1, 32>}, {pipeline_mode = #tpu.pipeline_mode<synchronous>, transform_indices = @transform_14, window_bounds = array<i64: 1, 32>}, {pipeline_mode = #tpu.pipeline_mode<synchronous>, transform_indices = @transform_15, window_bounds = array<i64: 4, 128>}, {pipeline_mode = #tpu.pipeline_mode<synchronous>, transform_indices = @transform_16, window_bounds = array<i64: 1, 2>}]} {
    %c0 = arith.constant 0 : index
    %c0_0 = arith.constant 0 : index
    %c0_1 = arith.constant 0 : index
    %0 = vector.load %arg1[%c0, %c0_0, %c0_1] : memref<2x32x96xbf16, #tpu.memory_space<vmem>>, vector<1x32x96xbf16>
    %1 = vector.shape_cast %0 : vector<1x32x96xbf16> to vector<32x96xbf16>
    %c0_2 = arith.constant 0 : index
    %c0_3 = arith.constant 0 : index
    %c0_4 = arith.constant 0 : index
    %2 = vector.load %arg2[%c0_2, %c0_3, %c0_4] : memref<4x16x32xbf16, #tpu.memory_space<vmem>>, vector<1x16x32xbf16>
    %3 = vector.shape_cast %2 : vector<1x16x32xbf16> to vector<16x32xbf16>
    %cst = arith.constant dense<0.000000e+00> : vector<16x96xf32>
    %4 = tpu.matmul %3, %1, %cst {dimension_numbers = #tpu.dot_dimension_numbers<[1], [0], [0], [1], [0, 0, 1, 1], [], []>} : vector<16x32xbf16>, vector<32x96xbf16>, vector<16x96xf32> -> vector<16x96xf32>
    %5 = arith.truncf %4 : vector<16x96xf32> to vector<16x96xbf16>
    %c0_5 = arith.constant 0 : index
    %c0_6 = arith.constant 0 : index
    %c0_7 = arith.constant 0 : index
    %6 = vector.load %arg3[%c0_5, %c0_6, %c0_7] : memref<4x96x128xbf16, #tpu.memory_space<vmem>>, vector<1x96x128xbf16>
    %7 = vector.shape_cast %6 : vector<1x96x128xbf16> to vector<96x128xbf16>
    %cst_8 = arith.constant dense<0.000000e+00> : vector<16x128xf32>
    %8 = tpu.matmul %5, %7, %cst_8 {dimension_numbers = #tpu.dot_dimension_numbers<[1], [0], [0], [1], [0, 0, 1, 1], [], []>} : vector<16x96xbf16>, vector<96x128xbf16>, vector<16x128xf32> -> vector<16x128xf32>
    %c1 = arith.constant 1 : index
    %c0_9 = arith.constant 0 : index
    %c0_10 = arith.constant 0 : index
    %9 = vector.load %arg2[%c1, %c0_9, %c0_10] : memref<4x16x32xbf16, #tpu.memory_space<vmem>>, vector<1x16x32xbf16>
    %10 = vector.shape_cast %9 : vector<1x16x32xbf16> to vector<16x32xbf16>
    %cst_11 = arith.constant dense<0.000000e+00> : vector<16x96xf32>
    %11 = tpu.matmul %10, %1, %cst_11 {dimension_numbers = #tpu.dot_dimension_numbers<[1], [0], [0], [1], [0, 0, 1, 1], [], []>} : vector<16x32xbf16>, vector<32x96xbf16>, vector<16x96xf32> -> vector<16x96xf32>
    %12 = arith.truncf %11 : vector<16x96xf32> to vector<16x96xbf16>
    %c1_12 = arith.constant 1 : index
    %c0_13 = arith.constant 0 : index
    %c0_14 = arith.constant 0 : index
    %13 = vector.load %arg3[%c1_12, %c0_13, %c0_14] : memref<4x96x128xbf16, #tpu.memory_space<vmem>>, vector<1x96x128xbf16>
    %14 = vector.shape_cast %13 : vector<1x96x128xbf16> to vector<96x128xbf16>
    %cst_15 = arith.constant dense<0.000000e+00> : vector<16x128xf32>
    %15 = tpu.matmul %12, %14, %cst_15 {dimension_numbers = #tpu.dot_dimension_numbers<[1], [0], [0], [1], [0, 0, 1, 1], [], []>} : vector<16x96xbf16>, vector<96x128xbf16>, vector<16x128xf32> -> vector<16x128xf32>
    %16 = arith.addf %8, %15 : vector<16x128xf32>
    %c2 = arith.constant 2 : index
    %c0_16 = arith.constant 0 : index
    %c0_17 = arith.constant 0 : index
    %17 = vector.load %arg2[%c2, %c0_16, %c0_17] : memref<4x16x32xbf16, #tpu.memory_space<vmem>>, vector<1x16x32xbf16>
    %18 = vector.shape_cast %17 : vector<1x16x32xbf16> to vector<16x32xbf16>
    %cst_18 = arith.constant dense<0.000000e+00> : vector<16x96xf32>
    %19 = tpu.matmul %18, %1, %cst_18 {dimension_numbers = #tpu.dot_dimension_numbers<[1], [0], [0], [1], [0, 0, 1, 1], [], []>} : vector<16x32xbf16>, vector<32x96xbf16>, vector<16x96xf32> -> vector<16x96xf32>
    %20 = arith.truncf %19 : vector<16x96xf32> to vector<16x96xbf16>
    %c2_19 = arith.constant 2 : index
    %c0_20 = arith.constant 0 : index
    %c0_21 = arith.constant 0 : index
    %21 = vector.load %arg3[%c2_19, %c0_20, %c0_21] : memref<4x96x128xbf16, #tpu.memory_space<vmem>>, vector<1x96x128xbf16>
    %22 = vector.shape_cast %21 : vector<1x96x128xbf16> to vector<96x128xbf16>
    %cst_22 = arith.constant dense<0.000000e+00> : vector<16x128xf32>
    %23 = tpu.matmul %20, %22, %cst_22 {dimension_numbers = #tpu.dot_dimension_numbers<[1], [0], [0], [1], [0, 0, 1, 1], [], []>} : vector<16x96xbf16>, vector<96x128xbf16>, vector<16x128xf32> -> vector<16x128xf32>
    %24 = arith.addf %16, %23 : vector<16x128xf32>
    %c3 = arith.constant 3 : index
    %c0_23 = arith.constant 0 : index
    %c0_24 = arith.constant 0 : index
    %25 = vector.load %arg2[%c3, %c0_23, %c0_24] : memref<4x16x32xbf16, #tpu.memory_space<vmem>>, vector<1x16x32xbf16>
    %26 = vector.shape_cast %25 : vector<1x16x32xbf16> to vector<16x32xbf16>
    %cst_25 = arith.constant dense<0.000000e+00> : vector<16x96xf32>
    %27 = tpu.matmul %26, %1, %cst_25 {dimension_numbers = #tpu.dot_dimension_numbers<[1], [0], [0], [1], [0, 0, 1, 1], [], []>} : vector<16x32xbf16>, vector<32x96xbf16>, vector<16x96xf32> -> vector<16x96xf32>
    %28 = arith.truncf %27 : vector<16x96xf32> to vector<16x96xbf16>
    %c3_26 = arith.constant 3 : index
    %c0_27 = arith.constant 0 : index
    %c0_28 = arith.constant 0 : index
    %29 = vector.load %arg3[%c3_26, %c0_27, %c0_28] : memref<4x96x128xbf16, #tpu.memory_space<vmem>>, vector<1x96x128xbf16>
    %30 = vector.shape_cast %29 : vector<1x96x128xbf16> to vector<96x128xbf16>
    %cst_29 = arith.constant dense<0.000000e+00> : vector<16x128xf32>
    %31 = tpu.matmul %28, %30, %cst_29 {dimension_numbers = #tpu.dot_dimension_numbers<[1], [0], [0], [1], [0, 0, 1, 1], [], []>} : vector<16x96xbf16>, vector<96x128xbf16>, vector<16x128xf32> -> vector<16x128xf32>
    %32 = arith.addf %24, %31 : vector<16x128xf32>
    %cst_30 = arith.constant 0.000000e+00 : f32
    %33 = vector.broadcast %cst_30 : f32 to vector<16x128xf32>
    %34 = arith.cmpf oge, %32, %33 : vector<16x128xf32>
    %cst_31 = arith.constant 2.000000e-01 : f32
    %35 = vector.broadcast %cst_31 : f32 to vector<16x128xf32>
    %36 = arith.mulf %35, %32 : vector<16x128xf32>
    %37 = arith.select %34, %32, %36 : vector<16x128xi1>, vector<16x128xf32>
    %38 = arith.truncf %37 : vector<16x128xf32> to vector<16x128xbf16>
    %c0_32 = arith.constant 0 : index
    %c0_33 = arith.constant 0 : index
    %c0_34 = arith.constant 0 : index
    %39 = vector.load %arg4[%c0_32, %c0_33, %c0_34] : memref<4x8x16xbf16, #tpu.memory_space<vmem>>, vector<1x8x16xbf16>
    %40 = vector.shape_cast %39 : vector<1x8x16xbf16> to vector<8x16xbf16>
    %cst_35 = arith.constant dense<0.000000e+00> : vector<8x128xf32>
    %41 = tpu.matmul %40, %38, %cst_35 {dimension_numbers = #tpu.dot_dimension_numbers<[1], [0], [0], [1], [0, 0, 1, 1], [], []>} : vector<8x16xbf16>, vector<16x128xbf16>, vector<8x128xf32> -> vector<8x128xf32>
    %42 = arith.truncf %41 : vector<8x128xf32> to vector<8x128xbf16>
    %c0_36 = arith.constant 0 : index
    %c0_37 = arith.constant 0 : index
    %c0_38 = arith.constant 0 : index
    %43 = vector.load %arg5[%c0_36, %c0_37, %c0_38] : memref<4x128x128xbf16, #tpu.memory_space<vmem>>, vector<1x128x128xbf16>
    %44 = vector.shape_cast %43 : vector<1x128x128xbf16> to vector<128x128xbf16>
    %cst_39 = arith.constant dense<0.000000e+00> : vector<8x128xf32>
    %45 = tpu.matmul %42, %44, %cst_39 {dimension_numbers = #tpu.dot_dimension_numbers<[1], [0], [0], [1], [0, 0, 1, 1], [], []>} : vector<8x128xbf16>, vector<128x128xbf16>, vector<8x128xf32> -> vector<8x128xf32>
    %c1_40 = arith.constant 1 : index
    %c0_41 = arith.constant 0 : index
    %c0_42 = arith.constant 0 : index
    %46 = vector.load %arg4[%c1_40, %c0_41, %c0_42] : memref<4x8x16xbf16, #tpu.memory_space<vmem>>, vector<1x8x16xbf16>
    %47 = vector.shape_cast %46 : vector<1x8x16xbf16> to vector<8x16xbf16>
    %cst_43 = arith.constant dense<0.000000e+00> : vector<8x128xf32>
    %48 = tpu.matmul %47, %38, %cst_43 {dimension_numbers = #tpu.dot_dimension_numbers<[1], [0], [0], [1], [0, 0, 1, 1], [], []>} : vector<8x16xbf16>, vector<16x128xbf16>, vector<8x128xf32> -> vector<8x128xf32>
    %49 = arith.truncf %48 : vector<8x128xf32> to vector<8x128xbf16>
    %c1_44 = arith.constant 1 : index
    %c0_45 = arith.constant 0 : index
    %c0_46 = arith.constant 0 : index
    %50 = vector.load %arg5[%c1_44, %c0_45, %c0_46] : memref<4x128x128xbf16, #tpu.memory_space<vmem>>, vector<1x128x128xbf16>
    %51 = vector.shape_cast %50 : vector<1x128x128xbf16> to vector<128x128xbf16>
    %cst_47 = arith.constant dense<0.000000e+00> : vector<8x128xf32>
    %52 = tpu.matmul %49, %51, %cst_47 {dimension_numbers = #tpu.dot_dimension_numbers<[1], [0], [0], [1], [0, 0, 1, 1], [], []>} : vector<8x128xbf16>, vector<128x128xbf16>, vector<8x128xf32> -> vector<8x128xf32>
    %53 = arith.addf %45, %52 : vector<8x128xf32>
    %c2_48 = arith.constant 2 : index
    %c0_49 = arith.constant 0 : index
    %c0_50 = arith.constant 0 : index
    %54 = vector.load %arg4[%c2_48, %c0_49, %c0_50] : memref<4x8x16xbf16, #tpu.memory_space<vmem>>, vector<1x8x16xbf16>
    %55 = vector.shape_cast %54 : vector<1x8x16xbf16> to vector<8x16xbf16>
    %cst_51 = arith.constant dense<0.000000e+00> : vector<8x128xf32>
    %56 = tpu.matmul %55, %38, %cst_51 {dimension_numbers = #tpu.dot_dimension_numbers<[1], [0], [0], [1], [0, 0, 1, 1], [], []>} : vector<8x16xbf16>, vector<16x128xbf16>, vector<8x128xf32> -> vector<8x128xf32>
    %57 = arith.truncf %56 : vector<8x128xf32> to vector<8x128xbf16>
    %c2_52 = arith.constant 2 : index
    %c0_53 = arith.constant 0 : index
    %c0_54 = arith.constant 0 : index
    %58 = vector.load %arg5[%c2_52, %c0_53, %c0_54] : memref<4x128x128xbf16, #tpu.memory_space<vmem>>, vector<1x128x128xbf16>
    %59 = vector.shape_cast %58 : vector<1x128x128xbf16> to vector<128x128xbf16>
    %cst_55 = arith.constant dense<0.000000e+00> : vector<8x128xf32>
    %60 = tpu.matmul %57, %59, %cst_55 {dimension_numbers = #tpu.dot_dimension_numbers<[1], [0], [0], [1], [0, 0, 1, 1], [], []>} : vector<8x128xbf16>, vector<128x128xbf16>, vector<8x128xf32> -> vector<8x128xf32>
    %61 = arith.addf %53, %60 : vector<8x128xf32>
    %c3_56 = arith.constant 3 : index
    %c0_57 = arith.constant 0 : index
    %c0_58 = arith.constant 0 : index
    %62 = vector.load %arg4[%c3_56, %c0_57, %c0_58] : memref<4x8x16xbf16, #tpu.memory_space<vmem>>, vector<1x8x16xbf16>
    %63 = vector.shape_cast %62 : vector<1x8x16xbf16> to vector<8x16xbf16>
    %cst_59 = arith.constant dense<0.000000e+00> : vector<8x128xf32>
    %64 = tpu.matmul %63, %38, %cst_59 {dimension_numbers = #tpu.dot_dimension_numbers<[1], [0], [0], [1], [0, 0, 1, 1], [], []>} : vector<8x16xbf16>, vector<16x128xbf16>, vector<8x128xf32> -> vector<8x128xf32>
    %65 = arith.truncf %64 : vector<8x128xf32> to vector<8x128xbf16>
    %c3_60 = arith.constant 3 : index
    %c0_61 = arith.constant 0 : index
    %c0_62 = arith.constant 0 : index
    %66 = vector.load %arg5[%c3_60, %c0_61, %c0_62] : memref<4x128x128xbf16, #tpu.memory_space<vmem>>, vector<1x128x128xbf16>
    %67 = vector.shape_cast %66 : vector<1x128x128xbf16> to vector<128x128xbf16>
    %cst_63 = arith.constant dense<0.000000e+00> : vector<8x128xf32>
    %68 = tpu.matmul %65, %67, %cst_63 {dimension_numbers = #tpu.dot_dimension_numbers<[1], [0], [0], [1], [0, 0, 1, 1], [], []>} : vector<8x128xbf16>, vector<128x128xbf16>, vector<8x128xf32> -> vector<8x128xf32>
    %69 = arith.addf %61, %68 : vector<8x128xf32>
    %c1_64 = arith.constant 1 : index
    %c0_65 = arith.constant 0 : index
    %c0_66 = arith.constant 0 : index
    %70 = vector.load %arg1[%c1_64, %c0_65, %c0_66] : memref<2x32x96xbf16, #tpu.memory_space<vmem>>, vector<1x32x96xbf16>
    %71 = vector.shape_cast %70 : vector<1x32x96xbf16> to vector<32x96xbf16>
    %c0_67 = arith.constant 0 : index
    %c0_68 = arith.constant 0 : index
    %c0_69 = arith.constant 0 : index
    %72 = vector.load %arg2[%c0_67, %c0_68, %c0_69] : memref<4x16x32xbf16, #tpu.memory_space<vmem>>, vector<1x16x32xbf16>
    %73 = vector.shape_cast %72 : vector<1x16x32xbf16> to vector<16x32xbf16>
    %cst_70 = arith.constant dense<0.000000e+00> : vector<16x96xf32>
    %74 = tpu.matmul %73, %71, %cst_70 {dimension_numbers = #tpu.dot_dimension_numbers<[1], [0], [0], [1], [0, 0, 1, 1], [], []>} : vector<16x32xbf16>, vector<32x96xbf16>, vector<16x96xf32> -> vector<16x96xf32>
    %75 = arith.truncf %74 : vector<16x96xf32> to vector<16x96xbf16>
    %c0_71 = arith.constant 0 : index
    %c0_72 = arith.constant 0 : index
    %c0_73 = arith.constant 0 : index
    %76 = vector.load %arg3[%c0_71, %c0_72, %c0_73] : memref<4x96x128xbf16, #tpu.memory_space<vmem>>, vector<1x96x128xbf16>
    %77 = vector.shape_cast %76 : vector<1x96x128xbf16> to vector<96x128xbf16>
    %cst_74 = arith.constant dense<0.000000e+00> : vector<16x128xf32>
    %78 = tpu.matmul %75, %77, %cst_74 {dimension_numbers = #tpu.dot_dimension_numbers<[1], [0], [0], [1], [0, 0, 1, 1], [], []>} : vector<16x96xbf16>, vector<96x128xbf16>, vector<16x128xf32> -> vector<16x128xf32>
    %c1_75 = arith.constant 1 : index
    %c0_76 = arith.constant 0 : index
    %c0_77 = arith.constant 0 : index
    %79 = vector.load %arg2[%c1_75, %c0_76, %c0_77] : memref<4x16x32xbf16, #tpu.memory_space<vmem>>, vector<1x16x32xbf16>
    %80 = vector.shape_cast %79 : vector<1x16x32xbf16> to vector<16x32xbf16>
    %cst_78 = arith.constant dense<0.000000e+00> : vector<16x96xf32>
    %81 = tpu.matmul %80, %71, %cst_78 {dimension_numbers = #tpu.dot_dimension_numbers<[1], [0], [0], [1], [0, 0, 1, 1], [], []>} : vector<16x32xbf16>, vector<32x96xbf16>, vector<16x96xf32> -> vector<16x96xf32>
    %82 = arith.truncf %81 : vector<16x96xf32> to vector<16x96xbf16>
    %c1_79 = arith.constant 1 : index
    %c0_80 = arith.constant 0 : index
    %c0_81 = arith.constant 0 : index
    %83 = vector.load %arg3[%c1_79, %c0_80, %c0_81] : memref<4x96x128xbf16, #tpu.memory_space<vmem>>, vector<1x96x128xbf16>
    %84 = vector.shape_cast %83 : vector<1x96x128xbf16> to vector<96x128xbf16>
    %cst_82 = arith.constant dense<0.000000e+00> : vector<16x128xf32>
    %85 = tpu.matmul %82, %84, %cst_82 {dimension_numbers = #tpu.dot_dimension_numbers<[1], [0], [0], [1], [0, 0, 1, 1], [], []>} : vector<16x96xbf16>, vector<96x128xbf16>, vector<16x128xf32> -> vector<16x128xf32>
    %86 = arith.addf %78, %85 : vector<16x128xf32>
    %c2_83 = arith.constant 2 : index
    %c0_84 = arith.constant 0 : index
    %c0_85 = arith.constant 0 : index
    %87 = vector.load %arg2[%c2_83, %c0_84, %c0_85] : memref<4x16x32xbf16, #tpu.memory_space<vmem>>, vector<1x16x32xbf16>
    %88 = vector.shape_cast %87 : vector<1x16x32xbf16> to vector<16x32xbf16>
    %cst_86 = arith.constant dense<0.000000e+00> : vector<16x96xf32>
    %89 = tpu.matmul %88, %71, %cst_86 {dimension_numbers = #tpu.dot_dimension_numbers<[1], [0], [0], [1], [0, 0, 1, 1], [], []>} : vector<16x32xbf16>, vector<32x96xbf16>, vector<16x96xf32> -> vector<16x96xf32>
    %90 = arith.truncf %89 : vector<16x96xf32> to vector<16x96xbf16>
    %c2_87 = arith.constant 2 : index
    %c0_88 = arith.constant 0 : index
    %c0_89 = arith.constant 0 : index
    %91 = vector.load %arg3[%c2_87, %c0_88, %c0_89] : memref<4x96x128xbf16, #tpu.memory_space<vmem>>, vector<1x96x128xbf16>
    %92 = vector.shape_cast %91 : vector<1x96x128xbf16> to vector<96x128xbf16>
    %cst_90 = arith.constant dense<0.000000e+00> : vector<16x128xf32>
    %93 = tpu.matmul %90, %92, %cst_90 {dimension_numbers = #tpu.dot_dimension_numbers<[1], [0], [0], [1], [0, 0, 1, 1], [], []>} : vector<16x96xbf16>, vector<96x128xbf16>, vector<16x128xf32> -> vector<16x128xf32>
    %94 = arith.addf %86, %93 : vector<16x128xf32>
    %c3_91 = arith.constant 3 : index
    %c0_92 = arith.constant 0 : index
    %c0_93 = arith.constant 0 : index
    %95 = vector.load %arg2[%c3_91, %c0_92, %c0_93] : memref<4x16x32xbf16, #tpu.memory_space<vmem>>, vector<1x16x32xbf16>
    %96 = vector.shape_cast %95 : vector<1x16x32xbf16> to vector<16x32xbf16>
    %cst_94 = arith.constant dense<0.000000e+00> : vector<16x96xf32>
    %97 = tpu.matmul %96, %71, %cst_94 {dimension_numbers = #tpu.dot_dimension_numbers<[1], [0], [0], [1], [0, 0, 1, 1], [], []>} : vector<16x32xbf16>, vector<32x96xbf16>, vector<16x96xf32> -> vector<16x96xf32>
    %98 = arith.truncf %97 : vector<16x96xf32> to vector<16x96xbf16>
    %c3_95 = arith.constant 3 : index
    %c0_96 = arith.constant 0 : index
    %c0_97 = arith.constant 0 : index
    %99 = vector.load %arg3[%c3_95, %c0_96, %c0_97] : memref<4x96x128xbf16, #tpu.memory_space<vmem>>, vector<1x96x128xbf16>
    %100 = vector.shape_cast %99 : vector<1x96x128xbf16> to vector<96x128xbf16>
    %cst_98 = arith.constant dense<0.000000e+00> : vector<16x128xf32>
    %101 = tpu.matmul %98, %100, %cst_98 {dimension_numbers = #tpu.dot_dimension_numbers<[1], [0], [0], [1], [0, 0, 1, 1], [], []>} : vector<16x96xbf16>, vector<96x128xbf16>, vector<16x128xf32> -> vector<16x128xf32>
    %102 = arith.addf %94, %101 : vector<16x128xf32>
    %cst_99 = arith.constant 0.000000e+00 : f32
    %103 = vector.broadcast %cst_99 : f32 to vector<16x128xf32>
    %104 = arith.cmpf oge, %102, %103 : vector<16x128xf32>
    %cst_100 = arith.constant 2.000000e-01 : f32
    %105 = vector.broadcast %cst_100 : f32 to vector<16x128xf32>
    %106 = arith.mulf %105, %102 : vector<16x128xf32>
    %107 = arith.select %104, %102, %106 : vector<16x128xi1>, vector<16x128xf32>
    %108 = arith.truncf %107 : vector<16x128xf32> to vector<16x128xbf16>
    %c0_101 = arith.constant 0 : index
    %c0_102 = arith.constant 0 : index
    %c0_103 = arith.constant 0 : index
    %109 = vector.load %arg4[%c0_101, %c0_102, %c0_103] : memref<4x8x16xbf16, #tpu.memory_space<vmem>>, vector<1x8x16xbf16>
    %110 = vector.shape_cast %109 : vector<1x8x16xbf16> to vector<8x16xbf16>
    %cst_104 = arith.constant dense<0.000000e+00> : vector<8x128xf32>
    %111 = tpu.matmul %110, %108, %cst_104 {dimension_numbers = #tpu.dot_dimension_numbers<[1], [0], [0], [1], [0, 0, 1, 1], [], []>} : vector<8x16xbf16>, vector<16x128xbf16>, vector<8x128xf32> -> vector<8x128xf32>
    %112 = arith.truncf %111 : vector<8x128xf32> to vector<8x128xbf16>
    %c0_105 = arith.constant 0 : index
    %c0_106 = arith.constant 0 : index
    %c0_107 = arith.constant 0 : index
    %113 = vector.load %arg5[%c0_105, %c0_106, %c0_107] : memref<4x128x128xbf16, #tpu.memory_space<vmem>>, vector<1x128x128xbf16>
    %114 = vector.shape_cast %113 : vector<1x128x128xbf16> to vector<128x128xbf16>
    %cst_108 = arith.constant dense<0.000000e+00> : vector<8x128xf32>
    %115 = tpu.matmul %112, %114, %cst_108 {dimension_numbers = #tpu.dot_dimension_numbers<[1], [0], [0], [1], [0, 0, 1, 1], [], []>} : vector<8x128xbf16>, vector<128x128xbf16>, vector<8x128xf32> -> vector<8x128xf32>
    %c1_109 = arith.constant 1 : index
    %c0_110 = arith.constant 0 : index
    %c0_111 = arith.constant 0 : index
    %116 = vector.load %arg4[%c1_109, %c0_110, %c0_111] : memref<4x8x16xbf16, #tpu.memory_space<vmem>>, vector<1x8x16xbf16>
    %117 = vector.shape_cast %116 : vector<1x8x16xbf16> to vector<8x16xbf16>
    %cst_112 = arith.constant dense<0.000000e+00> : vector<8x128xf32>
    %118 = tpu.matmul %117, %108, %cst_112 {dimension_numbers = #tpu.dot_dimension_numbers<[1], [0], [0], [1], [0, 0, 1, 1], [], []>} : vector<8x16xbf16>, vector<16x128xbf16>, vector<8x128xf32> -> vector<8x128xf32>
    %119 = arith.truncf %118 : vector<8x128xf32> to vector<8x128xbf16>
    %c1_113 = arith.constant 1 : index
    %c0_114 = arith.constant 0 : index
    %c0_115 = arith.constant 0 : index
    %120 = vector.load %arg5[%c1_113, %c0_114, %c0_115] : memref<4x128x128xbf16, #tpu.memory_space<vmem>>, vector<1x128x128xbf16>
    %121 = vector.shape_cast %120 : vector<1x128x128xbf16> to vector<128x128xbf16>
    %cst_116 = arith.constant dense<0.000000e+00> : vector<8x128xf32>
    %122 = tpu.matmul %119, %121, %cst_116 {dimension_numbers = #tpu.dot_dimension_numbers<[1], [0], [0], [1], [0, 0, 1, 1], [], []>} : vector<8x128xbf16>, vector<128x128xbf16>, vector<8x128xf32> -> vector<8x128xf32>
    %123 = arith.addf %115, %122 : vector<8x128xf32>
    %c2_117 = arith.constant 2 : index
    %c0_118 = arith.constant 0 : index
    %c0_119 = arith.constant 0 : index
    %124 = vector.load %arg4[%c2_117, %c0_118, %c0_119] : memref<4x8x16xbf16, #tpu.memory_space<vmem>>, vector<1x8x16xbf16>
    %125 = vector.shape_cast %124 : vector<1x8x16xbf16> to vector<8x16xbf16>
    %cst_120 = arith.constant dense<0.000000e+00> : vector<8x128xf32>
    %126 = tpu.matmul %125, %108, %cst_120 {dimension_numbers = #tpu.dot_dimension_numbers<[1], [0], [0], [1], [0, 0, 1, 1], [], []>} : vector<8x16xbf16>, vector<16x128xbf16>, vector<8x128xf32> -> vector<8x128xf32>
    %127 = arith.truncf %126 : vector<8x128xf32> to vector<8x128xbf16>
    %c2_121 = arith.constant 2 : index
    %c0_122 = arith.constant 0 : index
    %c0_123 = arith.constant 0 : index
    %128 = vector.load %arg5[%c2_121, %c0_122, %c0_123] : memref<4x128x128xbf16, #tpu.memory_space<vmem>>, vector<1x128x128xbf16>
    %129 = vector.shape_cast %128 : vector<1x128x128xbf16> to vector<128x128xbf16>
    %cst_124 = arith.constant dense<0.000000e+00> : vector<8x128xf32>
    %130 = tpu.matmul %127, %129, %cst_124 {dimension_numbers = #tpu.dot_dimension_numbers<[1], [0], [0], [1], [0, 0, 1, 1], [], []>} : vector<8x128xbf16>, vector<128x128xbf16>, vector<8x128xf32> -> vector<8x128xf32>
    %131 = arith.addf %123, %130 : vector<8x128xf32>
    %c3_125 = arith.constant 3 : index
    %c0_126 = arith.constant 0 : index
    %c0_127 = arith.constant 0 : index
    %132 = vector.load %arg4[%c3_125, %c0_126, %c0_127] : memref<4x8x16xbf16, #tpu.memory_space<vmem>>, vector<1x8x16xbf16>
    %133 = vector.shape_cast %132 : vector<1x8x16xbf16> to vector<8x16xbf16>
    %cst_128 = arith.constant dense<0.000000e+00> : vector<8x128xf32>
    %134 = tpu.matmul %133, %108, %cst_128 {dimension_numbers = #tpu.dot_dimension_numbers<[1], [0], [0], [1], [0, 0, 1, 1], [], []>} : vector<8x16xbf16>, vector<16x128xbf16>, vector<8x128xf32> -> vector<8x128xf32>
    %135 = arith.truncf %134 : vector<8x128xf32> to vector<8x128xbf16>
    %c3_129 = arith.constant 3 : index
    %c0_130 = arith.constant 0 : index
    %c0_131 = arith.constant 0 : index
    %136 = vector.load %arg5[%c3_129, %c0_130, %c0_131] : memref<4x128x128xbf16, #tpu.memory_space<vmem>>, vector<1x128x128xbf16>
    %137 = vector.shape_cast %136 : vector<1x128x128xbf16> to vector<128x128xbf16>
    %cst_132 = arith.constant dense<0.000000e+00> : vector<8x128xf32>
    %138 = tpu.matmul %135, %137, %cst_132 {dimension_numbers = #tpu.dot_dimension_numbers<[1], [0], [0], [1], [0, 0, 1, 1], [], []>} : vector<8x128xbf16>, vector<128x128xbf16>, vector<8x128xf32> -> vector<8x128xf32>
    %139 = arith.addf %131, %138 : vector<8x128xf32>
    %cst_133 = arith.constant dense<0.000000e+00> : vector<128xf32>
    %140 = vector.multi_reduction <add>, %69, %cst_133 [0] : vector<8x128xf32> to vector<128xf32>
    %141 = vector.shape_cast %140 : vector<128xf32> to vector<1x128xf32>
    %cst_134 = arith.constant dense<0.000000e+00> : vector<128xf32>
    %142 = vector.multi_reduction <add>, %139, %cst_134 [0] : vector<8x128xf32> to vector<128xf32>
    %143 = vector.shape_cast %142 : vector<128xf32> to vector<1x128xf32>
    %144 = arith.addf %141, %143 : vector<1x128xf32>
    %c0_135 = arith.constant 0 : index
    %c0_136 = arith.constant 0 : index
    %145 = vector.load %arg8[%c0_135, %c0_136] : memref<128x16xf32, #tpu.memory_space<vmem>>, vector<128x16xf32>
    %cst_137 = arith.constant dense<0.000000e+00> : vector<1x16xf32>
    %146 = tpu.matmul %144, %145, %cst_137 {dimension_numbers = #tpu.dot_dimension_numbers<[1], [0], [0], [1], [0, 0, 1, 1], [], []>} : vector<1x128xf32>, vector<128x16xf32>, vector<1x16xf32> -> vector<1x16xf32>
    %cst_138 = arith.constant 1.280000e+02 : f32
    %147 = vector.broadcast %cst_138 : f32 to vector<1x16xf32>
    %148 = arith.divf %146, %147 : vector<1x16xf32>
    %c0_139 = arith.constant 0 : index
    %c0_140 = arith.constant 0 : index
    %149 = vector.load %arg9[%c0_139, %c0_140] : memref<16x128xf32, #tpu.memory_space<vmem>>, vector<16x128xf32>
    %cst_141 = arith.constant dense<0.000000e+00> : vector<1x128xf32>
    %150 = tpu.matmul %148, %149, %cst_141 {dimension_numbers = #tpu.dot_dimension_numbers<[1], [0], [0], [1], [0, 0, 1, 1], [], []>} : vector<1x16xf32>, vector<16x128xf32>, vector<1x128xf32> -> vector<1x128xf32>
    %151 = vector.broadcast %150 : vector<1x128xf32> to vector<8x128xf32>
    %152 = arith.subf %69, %151 : vector<8x128xf32>
    %153 = arith.mulf %152, %152 : vector<8x128xf32>
    %cst_142 = arith.constant dense<0.000000e+00> : vector<128xf32>
    %154 = vector.multi_reduction <add>, %153, %cst_142 [0] : vector<8x128xf32> to vector<128xf32>
    %155 = vector.shape_cast %154 : vector<128xf32> to vector<1x128xf32>
    %156 = vector.broadcast %150 : vector<1x128xf32> to vector<8x128xf32>
    %157 = arith.subf %139, %156 : vector<8x128xf32>
    %158 = arith.mulf %157, %157 : vector<8x128xf32>
    %cst_143 = arith.constant dense<0.000000e+00> : vector<128xf32>
    %159 = vector.multi_reduction <add>, %158, %cst_143 [0] : vector<8x128xf32> to vector<128xf32>
    %160 = vector.shape_cast %159 : vector<128xf32> to vector<1x128xf32>
    %161 = arith.addf %155, %160 : vector<1x128xf32>
    %c0_144 = arith.constant 0 : index
    %c0_145 = arith.constant 0 : index
    %162 = vector.load %arg8[%c0_144, %c0_145] : memref<128x16xf32, #tpu.memory_space<vmem>>, vector<128x16xf32>
    %cst_146 = arith.constant dense<0.000000e+00> : vector<1x16xf32>
    %163 = tpu.matmul %161, %162, %cst_146 {dimension_numbers = #tpu.dot_dimension_numbers<[1], [0], [0], [1], [0, 0, 1, 1], [], []>} : vector<1x128xf32>, vector<128x16xf32>, vector<1x16xf32> -> vector<1x16xf32>
    %cst_147 = arith.constant 1.280000e+02 : f32
    %164 = vector.broadcast %cst_147 : f32 to vector<1x16xf32>
    %165 = arith.divf %163, %164 : vector<1x16xf32>
    %c0_148 = arith.constant 0 : index
    %c0_149 = arith.constant 0 : index
    %166 = vector.load %arg10[%c0_148, %c0_149] : memref<1x16xf32, #tpu.memory_space<vmem>>, vector<1x16xf32>
    %cst_150 = arith.constant 9.99999974E-6 : f32
    %167 = vector.broadcast %cst_150 : f32 to vector<1x16xf32>
    %168 = arith.addf %165, %167 : vector<1x16xf32>
    %169 = math.rsqrt %168 : vector<1x16xf32>
    %170 = arith.mulf %166, %169 : vector<1x16xf32>
    %c0_151 = arith.constant 0 : index
    %c0_152 = arith.constant 0 : index
    %171 = vector.load %arg9[%c0_151, %c0_152] : memref<16x128xf32, #tpu.memory_space<vmem>>, vector<16x128xf32>
    %cst_153 = arith.constant dense<0.000000e+00> : vector<1x128xf32>
    %172 = tpu.matmul %170, %171, %cst_153 {dimension_numbers = #tpu.dot_dimension_numbers<[1], [0], [0], [1], [0, 0, 1, 1], [], []>} : vector<1x16xf32>, vector<16x128xf32>, vector<1x128xf32> -> vector<1x128xf32>
    %c0_154 = arith.constant 0 : index
    %c0_155 = arith.constant 0 : index
    %173 = vector.load %arg11[%c0_154, %c0_155] : memref<1x16xf32, #tpu.memory_space<vmem>>, vector<1x16xf32>
    %c0_156 = arith.constant 0 : index
    %c0_157 = arith.constant 0 : index
    %174 = vector.load %arg9[%c0_156, %c0_157] : memref<16x128xf32, #tpu.memory_space<vmem>>, vector<16x128xf32>
    %cst_158 = arith.constant dense<0.000000e+00> : vector<1x128xf32>
    %175 = tpu.matmul %173, %174, %cst_158 {dimension_numbers = #tpu.dot_dimension_numbers<[1], [0], [0], [1], [0, 0, 1, 1], [], []>} : vector<1x16xf32>, vector<16x128xf32>, vector<1x128xf32> -> vector<1x128xf32>
    %176 = vector.broadcast %150 : vector<1x128xf32> to vector<8x128xf32>
    %177 = arith.subf %69, %176 : vector<8x128xf32>
    %178 = vector.broadcast %172 : vector<1x128xf32> to vector<8x128xf32>
    %179 = arith.mulf %177, %178 : vector<8x128xf32>
    %180 = vector.broadcast %175 : vector<1x128xf32> to vector<8x128xf32>
    %181 = arith.addf %179, %180 : vector<8x128xf32>
    %cst_159 = arith.constant 0.000000e+00 : f32
    %182 = vector.broadcast %cst_159 : f32 to vector<8x128xf32>
    %183 = arith.cmpf oge, %181, %182 : vector<8x128xf32>
    %cst_160 = arith.constant 2.000000e-01 : f32
    %184 = vector.broadcast %cst_160 : f32 to vector<8x128xf32>
    %185 = arith.mulf %184, %181 : vector<8x128xf32>
    %186 = arith.select %183, %181, %185 : vector<8x128xi1>, vector<8x128xf32>
    %187 = vector.broadcast %150 : vector<1x128xf32> to vector<8x128xf32>
    %188 = arith.subf %139, %187 : vector<8x128xf32>
    %189 = vector.broadcast %172 : vector<1x128xf32> to vector<8x128xf32>
    %190 = arith.mulf %188, %189 : vector<8x128xf32>
    %191 = vector.broadcast %175 : vector<1x128xf32> to vector<8x128xf32>
    %192 = arith.addf %190, %191 : vector<8x128xf32>
    %cst_161 = arith.constant 0.000000e+00 : f32
    %193 = vector.broadcast %cst_161 : f32 to vector<8x128xf32>
    %194 = arith.cmpf oge, %192, %193 : vector<8x128xf32>
    %cst_162 = arith.constant 2.000000e-01 : f32
    %195 = vector.broadcast %cst_162 : f32 to vector<8x128xf32>
    %196 = arith.mulf %195, %192 : vector<8x128xf32>
    %197 = arith.select %194, %192, %196 : vector<8x128xi1>, vector<8x128xf32>
    %198 = arith.truncf %186 : vector<8x128xf32> to vector<8x128xbf16>
    %c0_163 = arith.constant 0 : index
    %c0_164 = arith.constant 0 : index
    %c0_165 = arith.constant 0 : index
    %199 = vector.load %arg6[%c0_163, %c0_164, %c0_165] : memref<4x4x8xbf16, #tpu.memory_space<vmem>>, vector<1x4x8xbf16>
    %200 = vector.shape_cast %199 : vector<1x4x8xbf16> to vector<4x8xbf16>
    %cst_166 = arith.constant dense<0.000000e+00> : vector<4x128xf32>
    %201 = tpu.matmul %200, %198, %cst_166 {dimension_numbers = #tpu.dot_dimension_numbers<[1], [0], [0], [1], [0, 0, 1, 1], [], []>} : vector<4x8xbf16>, vector<8x128xbf16>, vector<4x128xf32> -> vector<4x128xf32>
    %202 = arith.truncf %201 : vector<4x128xf32> to vector<4x128xbf16>
    %c0_167 = arith.constant 0 : index
    %c0_168 = arith.constant 0 : index
    %c0_169 = arith.constant 0 : index
    %203 = vector.load %arg7[%c0_167, %c0_168, %c0_169] : memref<4x128x128xbf16, #tpu.memory_space<vmem>>, vector<1x128x128xbf16>
    %204 = vector.shape_cast %203 : vector<1x128x128xbf16> to vector<128x128xbf16>
    %cst_170 = arith.constant dense<0.000000e+00> : vector<4x128xf32>
    %205 = tpu.matmul %202, %204, %cst_170 {dimension_numbers = #tpu.dot_dimension_numbers<[1], [0], [0], [1], [0, 0, 1, 1], [], []>} : vector<4x128xbf16>, vector<128x128xbf16>, vector<4x128xf32> -> vector<4x128xf32>
    %c1_171 = arith.constant 1 : index
    %c0_172 = arith.constant 0 : index
    %c0_173 = arith.constant 0 : index
    %206 = vector.load %arg6[%c1_171, %c0_172, %c0_173] : memref<4x4x8xbf16, #tpu.memory_space<vmem>>, vector<1x4x8xbf16>
    %207 = vector.shape_cast %206 : vector<1x4x8xbf16> to vector<4x8xbf16>
    %cst_174 = arith.constant dense<0.000000e+00> : vector<4x128xf32>
    %208 = tpu.matmul %207, %198, %cst_174 {dimension_numbers = #tpu.dot_dimension_numbers<[1], [0], [0], [1], [0, 0, 1, 1], [], []>} : vector<4x8xbf16>, vector<8x128xbf16>, vector<4x128xf32> -> vector<4x128xf32>
    %209 = arith.truncf %208 : vector<4x128xf32> to vector<4x128xbf16>
    %c1_175 = arith.constant 1 : index
    %c0_176 = arith.constant 0 : index
    %c0_177 = arith.constant 0 : index
    %210 = vector.load %arg7[%c1_175, %c0_176, %c0_177] : memref<4x128x128xbf16, #tpu.memory_space<vmem>>, vector<1x128x128xbf16>
    %211 = vector.shape_cast %210 : vector<1x128x128xbf16> to vector<128x128xbf16>
    %cst_178 = arith.constant dense<0.000000e+00> : vector<4x128xf32>
    %212 = tpu.matmul %209, %211, %cst_178 {dimension_numbers = #tpu.dot_dimension_numbers<[1], [0], [0], [1], [0, 0, 1, 1], [], []>} : vector<4x128xbf16>, vector<128x128xbf16>, vector<4x128xf32> -> vector<4x128xf32>
    %213 = arith.addf %205, %212 : vector<4x128xf32>
    %c2_179 = arith.constant 2 : index
    %c0_180 = arith.constant 0 : index
    %c0_181 = arith.constant 0 : index
    %214 = vector.load %arg6[%c2_179, %c0_180, %c0_181] : memref<4x4x8xbf16, #tpu.memory_space<vmem>>, vector<1x4x8xbf16>
    %215 = vector.shape_cast %214 : vector<1x4x8xbf16> to vector<4x8xbf16>
    %cst_182 = arith.constant dense<0.000000e+00> : vector<4x128xf32>
    %216 = tpu.matmul %215, %198, %cst_182 {dimension_numbers = #tpu.dot_dimension_numbers<[1], [0], [0], [1], [0, 0, 1, 1], [], []>} : vector<4x8xbf16>, vector<8x128xbf16>, vector<4x128xf32> -> vector<4x128xf32>
    %217 = arith.truncf %216 : vector<4x128xf32> to vector<4x128xbf16>
    %c2_183 = arith.constant 2 : index
    %c0_184 = arith.constant 0 : index
    %c0_185 = arith.constant 0 : index
    %218 = vector.load %arg7[%c2_183, %c0_184, %c0_185] : memref<4x128x128xbf16, #tpu.memory_space<vmem>>, vector<1x128x128xbf16>
    %219 = vector.shape_cast %218 : vector<1x128x128xbf16> to vector<128x128xbf16>
    %cst_186 = arith.constant dense<0.000000e+00> : vector<4x128xf32>
    %220 = tpu.matmul %217, %219, %cst_186 {dimension_numbers = #tpu.dot_dimension_numbers<[1], [0], [0], [1], [0, 0, 1, 1], [], []>} : vector<4x128xbf16>, vector<128x128xbf16>, vector<4x128xf32> -> vector<4x128xf32>
    %221 = arith.addf %213, %220 : vector<4x128xf32>
    %c3_187 = arith.constant 3 : index
    %c0_188 = arith.constant 0 : index
    %c0_189 = arith.constant 0 : index
    %222 = vector.load %arg6[%c3_187, %c0_188, %c0_189] : memref<4x4x8xbf16, #tpu.memory_space<vmem>>, vector<1x4x8xbf16>
    %223 = vector.shape_cast %222 : vector<1x4x8xbf16> to vector<4x8xbf16>
    %cst_190 = arith.constant dense<0.000000e+00> : vector<4x128xf32>
    %224 = tpu.matmul %223, %198, %cst_190 {dimension_numbers = #tpu.dot_dimension_numbers<[1], [0], [0], [1], [0, 0, 1, 1], [], []>} : vector<4x8xbf16>, vector<8x128xbf16>, vector<4x128xf32> -> vector<4x128xf32>
    %225 = arith.truncf %224 : vector<4x128xf32> to vector<4x128xbf16>
    %c3_191 = arith.constant 3 : index
    %c0_192 = arith.constant 0 : index
    %c0_193 = arith.constant 0 : index
    %226 = vector.load %arg7[%c3_191, %c0_192, %c0_193] : memref<4x128x128xbf16, #tpu.memory_space<vmem>>, vector<1x128x128xbf16>
    %227 = vector.shape_cast %226 : vector<1x128x128xbf16> to vector<128x128xbf16>
    %cst_194 = arith.constant dense<0.000000e+00> : vector<4x128xf32>
    %228 = tpu.matmul %225, %227, %cst_194 {dimension_numbers = #tpu.dot_dimension_numbers<[1], [0], [0], [1], [0, 0, 1, 1], [], []>} : vector<4x128xbf16>, vector<128x128xbf16>, vector<4x128xf32> -> vector<4x128xf32>
    %229 = arith.addf %221, %228 : vector<4x128xf32>
    %230 = arith.truncf %197 : vector<8x128xf32> to vector<8x128xbf16>
    %c0_195 = arith.constant 0 : index
    %c0_196 = arith.constant 0 : index
    %c0_197 = arith.constant 0 : index
    %231 = vector.load %arg6[%c0_195, %c0_196, %c0_197] : memref<4x4x8xbf16, #tpu.memory_space<vmem>>, vector<1x4x8xbf16>
    %232 = vector.shape_cast %231 : vector<1x4x8xbf16> to vector<4x8xbf16>
    %cst_198 = arith.constant dense<0.000000e+00> : vector<4x128xf32>
    %233 = tpu.matmul %232, %230, %cst_198 {dimension_numbers = #tpu.dot_dimension_numbers<[1], [0], [0], [1], [0, 0, 1, 1], [], []>} : vector<4x8xbf16>, vector<8x128xbf16>, vector<4x128xf32> -> vector<4x128xf32>
    %234 = arith.truncf %233 : vector<4x128xf32> to vector<4x128xbf16>
    %c0_199 = arith.constant 0 : index
    %c0_200 = arith.constant 0 : index
    %c0_201 = arith.constant 0 : index
    %235 = vector.load %arg7[%c0_199, %c0_200, %c0_201] : memref<4x128x128xbf16, #tpu.memory_space<vmem>>, vector<1x128x128xbf16>
    %236 = vector.shape_cast %235 : vector<1x128x128xbf16> to vector<128x128xbf16>
    %cst_202 = arith.constant dense<0.000000e+00> : vector<4x128xf32>
    %237 = tpu.matmul %234, %236, %cst_202 {dimension_numbers = #tpu.dot_dimension_numbers<[1], [0], [0], [1], [0, 0, 1, 1], [], []>} : vector<4x128xbf16>, vector<128x128xbf16>, vector<4x128xf32> -> vector<4x128xf32>
    %c1_203 = arith.constant 1 : index
    %c0_204 = arith.constant 0 : index
    %c0_205 = arith.constant 0 : index
    %238 = vector.load %arg6[%c1_203, %c0_204, %c0_205] : memref<4x4x8xbf16, #tpu.memory_space<vmem>>, vector<1x4x8xbf16>
    %239 = vector.shape_cast %238 : vector<1x4x8xbf16> to vector<4x8xbf16>
    %cst_206 = arith.constant dense<0.000000e+00> : vector<4x128xf32>
    %240 = tpu.matmul %239, %230, %cst_206 {dimension_numbers = #tpu.dot_dimension_numbers<[1], [0], [0], [1], [0, 0, 1, 1], [], []>} : vector<4x8xbf16>, vector<8x128xbf16>, vector<4x128xf32> -> vector<4x128xf32>
    %241 = arith.truncf %240 : vector<4x128xf32> to vector<4x128xbf16>
    %c1_207 = arith.constant 1 : index
    %c0_208 = arith.constant 0 : index
    %c0_209 = arith.constant 0 : index
    %242 = vector.load %arg7[%c1_207, %c0_208, %c0_209] : memref<4x128x128xbf16, #tpu.memory_space<vmem>>, vector<1x128x128xbf16>
    %243 = vector.shape_cast %242 : vector<1x128x128xbf16> to vector<128x128xbf16>
    %cst_210 = arith.constant dense<0.000000e+00> : vector<4x128xf32>
    %244 = tpu.matmul %241, %243, %cst_210 {dimension_numbers = #tpu.dot_dimension_numbers<[1], [0], [0], [1], [0, 0, 1, 1], [], []>} : vector<4x128xbf16>, vector<128x128xbf16>, vector<4x128xf32> -> vector<4x128xf32>
    %245 = arith.addf %237, %244 : vector<4x128xf32>
    %c2_211 = arith.constant 2 : index
    %c0_212 = arith.constant 0 : index
    %c0_213 = arith.constant 0 : index
    %246 = vector.load %arg6[%c2_211, %c0_212, %c0_213] : memref<4x4x8xbf16, #tpu.memory_space<vmem>>, vector<1x4x8xbf16>
    %247 = vector.shape_cast %246 : vector<1x4x8xbf16> to vector<4x8xbf16>
    %cst_214 = arith.constant dense<0.000000e+00> : vector<4x128xf32>
    %248 = tpu.matmul %247, %230, %cst_214 {dimension_numbers = #tpu.dot_dimension_numbers<[1], [0], [0], [1], [0, 0, 1, 1], [], []>} : vector<4x8xbf16>, vector<8x128xbf16>, vector<4x128xf32> -> vector<4x128xf32>
    %249 = arith.truncf %248 : vector<4x128xf32> to vector<4x128xbf16>
    %c2_215 = arith.constant 2 : index
    %c0_216 = arith.constant 0 : index
    %c0_217 = arith.constant 0 : index
    %250 = vector.load %arg7[%c2_215, %c0_216, %c0_217] : memref<4x128x128xbf16, #tpu.memory_space<vmem>>, vector<1x128x128xbf16>
    %251 = vector.shape_cast %250 : vector<1x128x128xbf16> to vector<128x128xbf16>
    %cst_218 = arith.constant dense<0.000000e+00> : vector<4x128xf32>
    %252 = tpu.matmul %249, %251, %cst_218 {dimension_numbers = #tpu.dot_dimension_numbers<[1], [0], [0], [1], [0, 0, 1, 1], [], []>} : vector<4x128xbf16>, vector<128x128xbf16>, vector<4x128xf32> -> vector<4x128xf32>
    %253 = arith.addf %245, %252 : vector<4x128xf32>
    %c3_219 = arith.constant 3 : index
    %c0_220 = arith.constant 0 : index
    %c0_221 = arith.constant 0 : index
    %254 = vector.load %arg6[%c3_219, %c0_220, %c0_221] : memref<4x4x8xbf16, #tpu.memory_space<vmem>>, vector<1x4x8xbf16>
    %255 = vector.shape_cast %254 : vector<1x4x8xbf16> to vector<4x8xbf16>
    %cst_222 = arith.constant dense<0.000000e+00> : vector<4x128xf32>
    %256 = tpu.matmul %255, %230, %cst_222 {dimension_numbers = #tpu.dot_dimension_numbers<[1], [0], [0], [1], [0, 0, 1, 1], [], []>} : vector<4x8xbf16>, vector<8x128xbf16>, vector<4x128xf32> -> vector<4x128xf32>
    %257 = arith.truncf %256 : vector<4x128xf32> to vector<4x128xbf16>
    %c3_223 = arith.constant 3 : index
    %c0_224 = arith.constant 0 : index
    %c0_225 = arith.constant 0 : index
    %258 = vector.load %arg7[%c3_223, %c0_224, %c0_225] : memref<4x128x128xbf16, #tpu.memory_space<vmem>>, vector<1x128x128xbf16>
    %259 = vector.shape_cast %258 : vector<1x128x128xbf16> to vector<128x128xbf16>
    %cst_226 = arith.constant dense<0.000000e+00> : vector<4x128xf32>
    %260 = tpu.matmul %257, %259, %cst_226 {dimension_numbers = #tpu.dot_dimension_numbers<[1], [0], [0], [1], [0, 0, 1, 1], [], []>} : vector<4x128xbf16>, vector<128x128xbf16>, vector<4x128xf32> -> vector<4x128xf32>
    %261 = arith.addf %253, %260 : vector<4x128xf32>
    %cst_227 = arith.constant dense<0.000000e+00> : vector<128xf32>
    %262 = vector.multi_reduction <add>, %229, %cst_227 [0] : vector<4x128xf32> to vector<128xf32>
    %263 = vector.shape_cast %262 : vector<128xf32> to vector<1x128xf32>
    %cst_228 = arith.constant dense<0.000000e+00> : vector<128xf32>
    %264 = vector.multi_reduction <add>, %261, %cst_228 [0] : vector<4x128xf32> to vector<128xf32>
    %265 = vector.shape_cast %264 : vector<128xf32> to vector<1x128xf32>
    %266 = arith.addf %263, %265 : vector<1x128xf32>
    %c0_229 = arith.constant 0 : index
    %c0_230 = arith.constant 0 : index
    %267 = vector.load %arg12[%c0_229, %c0_230] : memref<128x32xf32, #tpu.memory_space<vmem>>, vector<128x32xf32>
    %cst_231 = arith.constant dense<0.000000e+00> : vector<1x32xf32>
    %268 = tpu.matmul %266, %267, %cst_231 {dimension_numbers = #tpu.dot_dimension_numbers<[1], [0], [0], [1], [0, 0, 1, 1], [], []>} : vector<1x128xf32>, vector<128x32xf32>, vector<1x32xf32> -> vector<1x32xf32>
    %cst_232 = arith.constant 3.200000e+01 : f32
    %269 = vector.broadcast %cst_232 : f32 to vector<1x32xf32>
    %270 = arith.divf %268, %269 : vector<1x32xf32>
    %c0_233 = arith.constant 0 : index
    %c0_234 = arith.constant 0 : index
    %271 = vector.load %arg13[%c0_233, %c0_234] : memref<32x128xf32, #tpu.memory_space<vmem>>, vector<32x128xf32>
    %cst_235 = arith.constant dense<0.000000e+00> : vector<1x128xf32>
    %272 = tpu.matmul %270, %271, %cst_235 {dimension_numbers = #tpu.dot_dimension_numbers<[1], [0], [0], [1], [0, 0, 1, 1], [], []>} : vector<1x32xf32>, vector<32x128xf32>, vector<1x128xf32> -> vector<1x128xf32>
    %273 = vector.broadcast %272 : vector<1x128xf32> to vector<4x128xf32>
    %274 = arith.subf %229, %273 : vector<4x128xf32>
    %275 = arith.mulf %274, %274 : vector<4x128xf32>
    %cst_236 = arith.constant dense<0.000000e+00> : vector<128xf32>
    %276 = vector.multi_reduction <add>, %275, %cst_236 [0] : vector<4x128xf32> to vector<128xf32>
    %277 = vector.shape_cast %276 : vector<128xf32> to vector<1x128xf32>
    %278 = vector.broadcast %272 : vector<1x128xf32> to vector<4x128xf32>
    %279 = arith.subf %261, %278 : vector<4x128xf32>
    %280 = arith.mulf %279, %279 : vector<4x128xf32>
    %cst_237 = arith.constant dense<0.000000e+00> : vector<128xf32>
    %281 = vector.multi_reduction <add>, %280, %cst_237 [0] : vector<4x128xf32> to vector<128xf32>
    %282 = vector.shape_cast %281 : vector<128xf32> to vector<1x128xf32>
    %283 = arith.addf %277, %282 : vector<1x128xf32>
    %c0_238 = arith.constant 0 : index
    %c0_239 = arith.constant 0 : index
    %284 = vector.load %arg12[%c0_238, %c0_239] : memref<128x32xf32, #tpu.memory_space<vmem>>, vector<128x32xf32>
    %cst_240 = arith.constant dense<0.000000e+00> : vector<1x32xf32>
    %285 = tpu.matmul %283, %284, %cst_240 {dimension_numbers = #tpu.dot_dimension_numbers<[1], [0], [0], [1], [0, 0, 1, 1], [], []>} : vector<1x128xf32>, vector<128x32xf32>, vector<1x32xf32> -> vector<1x32xf32>
    %cst_241 = arith.constant 3.200000e+01 : f32
    %286 = vector.broadcast %cst_241 : f32 to vector<1x32xf32>
    %287 = arith.divf %285, %286 : vector<1x32xf32>
    %c0_242 = arith.constant 0 : index
    %c0_243 = arith.constant 0 : index
    %288 = vector.load %arg14[%c0_242, %c0_243] : memref<1x32xf32, #tpu.memory_space<vmem>>, vector<1x32xf32>
    %cst_244 = arith.constant 9.99999974E-6 : f32
    %289 = vector.broadcast %cst_244 : f32 to vector<1x32xf32>
    %290 = arith.addf %287, %289 : vector<1x32xf32>
    %291 = math.rsqrt %290 : vector<1x32xf32>
    %292 = arith.mulf %288, %291 : vector<1x32xf32>
    %c0_245 = arith.constant 0 : index
    %c0_246 = arith.constant 0 : index
    %293 = vector.load %arg13[%c0_245, %c0_246] : memref<32x128xf32, #tpu.memory_space<vmem>>, vector<32x128xf32>
    %cst_247 = arith.constant dense<0.000000e+00> : vector<1x128xf32>
    %294 = tpu.matmul %292, %293, %cst_247 {dimension_numbers = #tpu.dot_dimension_numbers<[1], [0], [0], [1], [0, 0, 1, 1], [], []>} : vector<1x32xf32>, vector<32x128xf32>, vector<1x128xf32> -> vector<1x128xf32>
    %c0_248 = arith.constant 0 : index
    %c0_249 = arith.constant 0 : index
    %295 = vector.load %arg15[%c0_248, %c0_249] : memref<1x32xf32, #tpu.memory_space<vmem>>, vector<1x32xf32>
    %c0_250 = arith.constant 0 : index
    %c0_251 = arith.constant 0 : index
    %296 = vector.load %arg13[%c0_250, %c0_251] : memref<32x128xf32, #tpu.memory_space<vmem>>, vector<32x128xf32>
    %cst_252 = arith.constant dense<0.000000e+00> : vector<1x128xf32>
    %297 = tpu.matmul %295, %296, %cst_252 {dimension_numbers = #tpu.dot_dimension_numbers<[1], [0], [0], [1], [0, 0, 1, 1], [], []>} : vector<1x32xf32>, vector<32x128xf32>, vector<1x128xf32> -> vector<1x128xf32>
    %298 = vector.broadcast %272 : vector<1x128xf32> to vector<4x128xf32>
    %299 = arith.subf %229, %298 : vector<4x128xf32>
    %300 = vector.broadcast %294 : vector<1x128xf32> to vector<4x128xf32>
    %301 = arith.mulf %299, %300 : vector<4x128xf32>
    %302 = vector.broadcast %297 : vector<1x128xf32> to vector<4x128xf32>
    %303 = arith.addf %301, %302 : vector<4x128xf32>
    %cst_253 = arith.constant 0.000000e+00 : f32
    %304 = vector.broadcast %cst_253 : f32 to vector<4x128xf32>
    %305 = arith.cmpf oge, %303, %304 : vector<4x128xf32>
    %cst_254 = arith.constant 2.000000e-01 : f32
    %306 = vector.broadcast %cst_254 : f32 to vector<4x128xf32>
    %307 = arith.mulf %306, %303 : vector<4x128xf32>
    %308 = arith.select %305, %303, %307 : vector<4x128xi1>, vector<4x128xf32>
    %309 = vector.broadcast %272 : vector<1x128xf32> to vector<4x128xf32>
    %310 = arith.subf %261, %309 : vector<4x128xf32>
    %311 = vector.broadcast %294 : vector<1x128xf32> to vector<4x128xf32>
    %312 = arith.mulf %310, %311 : vector<4x128xf32>
    %313 = vector.broadcast %297 : vector<1x128xf32> to vector<4x128xf32>
    %314 = arith.addf %312, %313 : vector<4x128xf32>
    %cst_255 = arith.constant 0.000000e+00 : f32
    %315 = vector.broadcast %cst_255 : f32 to vector<4x128xf32>
    %316 = arith.cmpf oge, %314, %315 : vector<4x128xf32>
    %cst_256 = arith.constant 2.000000e-01 : f32
    %317 = vector.broadcast %cst_256 : f32 to vector<4x128xf32>
    %318 = arith.mulf %317, %314 : vector<4x128xf32>
    %319 = arith.select %316, %314, %318 : vector<4x128xi1>, vector<4x128xf32>
    %c0_257 = arith.constant 0 : index
    %c0_258 = arith.constant 0 : index
    %320 = vector.load %arg16[%c0_257, %c0_258] : memref<4x128xf32, #tpu.memory_space<vmem>>, vector<4x128xf32>
    %321 = arith.mulf %308, %320 : vector<4x128xf32>
    %cst_259 = arith.constant dense<0.000000e+00> : vector<128xf32>
    %322 = vector.multi_reduction <add>, %321, %cst_259 [0] : vector<4x128xf32> to vector<128xf32>
    %323 = vector.shape_cast %322 : vector<128xf32> to vector<1x128xf32>
    %cst_260 = arith.constant dense<0.000000e+00> : vector<1xf32>
    %324 = vector.multi_reduction <add>, %323, %cst_260 [1] : vector<1x128xf32> to vector<1xf32>
    %325 = vector.shape_cast %324 : vector<1xf32> to vector<1x1xf32>
    %cst_261 = arith.constant 0.000000e+00 : f32
    %326 = vector.broadcast %cst_261 : f32 to vector<1x1xf32>
    %327 = arith.subf %326, %325 : vector<1x1xf32>
    %328 = math.exp %327 : vector<1x1xf32>
    %cst_262 = arith.constant 1.000000e+00 : f32
    %329 = vector.broadcast %cst_262 : f32 to vector<1x1xf32>
    %330 = arith.addf %329, %328 : vector<1x1xf32>
    %cst_263 = arith.constant 1.000000e+00 : f32
    %331 = vector.broadcast %cst_263 : f32 to vector<1x1xf32>
    %332 = arith.divf %331, %330 : vector<1x1xf32>
    %c0_264 = arith.constant 0 : index
    %c0_265 = arith.constant 0 : index
    %333 = vector.load %arg17[%c0_264, %c0_265] : memref<1x2xf32, #tpu.memory_space<vmem>>, vector<1x1xf32>
    tpu.vector_store %arg17[%c0_264, %c0_265], %332 {strides = array<i32>} : memref<1x2xf32, #tpu.memory_space<vmem>>, vector<1x1xf32>,
    %334 = arith.mulf %319, %320 : vector<4x128xf32>
    %cst_266 = arith.constant dense<0.000000e+00> : vector<128xf32>
    %335 = vector.multi_reduction <add>, %334, %cst_266 [0] : vector<4x128xf32> to vector<128xf32>
    %336 = vector.shape_cast %335 : vector<128xf32> to vector<1x128xf32>
    %cst_267 = arith.constant dense<0.000000e+00> : vector<1xf32>
    %337 = vector.multi_reduction <add>, %336, %cst_267 [1] : vector<1x128xf32> to vector<1xf32>
    %338 = vector.shape_cast %337 : vector<1xf32> to vector<1x1xf32>
    %cst_268 = arith.constant 0.000000e+00 : f32
    %339 = vector.broadcast %cst_268 : f32 to vector<1x1xf32>
    %340 = arith.subf %339, %338 : vector<1x1xf32>
    %341 = math.exp %340 : vector<1x1xf32>
    %cst_269 = arith.constant 1.000000e+00 : f32
    %342 = vector.broadcast %cst_269 : f32 to vector<1x1xf32>
    %343 = arith.addf %342, %341 : vector<1x1xf32>
    %cst_270 = arith.constant 1.000000e+00 : f32
    %344 = vector.broadcast %cst_270 : f32 to vector<1x1xf32>
    %345 = arith.divf %344, %343 : vector<1x1xf32>
    %c0_271 = arith.constant 0 : index
    %c1_272 = arith.constant 1 : index
    %346 = vector.load %arg17[%c0_271, %c1_272] : memref<1x2xf32, #tpu.memory_space<vmem>>, vector<1x1xf32>
    tpu.vector_store %arg17[%c0_271, %c1_272], %345 {strides = array<i32>} : memref<1x2xf32, #tpu.memory_space<vmem>>, vector<1x1xf32>,
    return
  }
  func.func @transform_0(%arg0: i32) -> (i32, i32, i32) {
    %c0_i32 = arith.constant 0 : i32
    %c0_i32_0 = arith.constant 0 : i32
    %c0_i32_1 = arith.constant 0 : i32
    %c0_i32_2 = arith.constant 0 : i32
    return %c0_i32, %c0_i32_0, %c0_i32_1 : i32, i32, i32
  }
  func.func @transform_1(%arg0: i32) -> (i32, i32, i32) {
    %c0_i32 = arith.constant 0 : i32
    %c0_i32_0 = arith.constant 0 : i32
    %c0_i32_1 = arith.constant 0 : i32
    %c0_i32_2 = arith.constant 0 : i32
    return %c0_i32, %c0_i32_0, %c0_i32_1 : i32, i32, i32
  }
  func.func @transform_2(%arg0: i32) -> (i32, i32, i32) {
    %c0_i32 = arith.constant 0 : i32
    %c0_i32_0 = arith.constant 0 : i32
    %c0_i32_1 = arith.constant 0 : i32
    %c0_i32_2 = arith.constant 0 : i32
    return %c0_i32, %c0_i32_0, %c0_i32_1 : i32, i32, i32
  }
  func.func @transform_3(%arg0: i32) -> (i32, i32, i32) {
    %c0_i32 = arith.constant 0 : i32
    %c0_i32_0 = arith.constant 0 : i32
    %c0_i32_1 = arith.constant 0 : i32
    %c0_i32_2 = arith.constant 0 : i32
    return %c0_i32, %c0_i32_0, %c0_i32_1 : i32, i32, i32
  }
  func.func @transform_4(%arg0: i32) -> (i32, i32, i32) {
    %c0_i32 = arith.constant 0 : i32
    %c0_i32_0 = arith.constant 0 : i32
    %c0_i32_1 = arith.constant 0 : i32
    %c0_i32_2 = arith.constant 0 : i32
    return %c0_i32, %c0_i32_0, %c0_i32_1 : i32, i32, i32
  }
  func.func @transform_5(%arg0: i32) -> (i32, i32, i32) {
    %c0_i32 = arith.constant 0 : i32
    %c0_i32_0 = arith.constant 0 : i32
    %c0_i32_1 = arith.constant 0 : i32
    %c0_i32_2 = arith.constant 0 : i32
    return %c0_i32, %c0_i32_0, %c0_i32_1 : i32, i32, i32
  }
  func.func @transform_6(%arg0: i32) -> (i32, i32, i32) {
    %c0_i32 = arith.constant 0 : i32
    %c0_i32_0 = arith.constant 0 : i32
    %c0_i32_1 = arith.constant 0 : i32
    %c0_i32_2 = arith.constant 0 : i32
    return %c0_i32, %c0_i32_0, %c0_i32_1 : i32, i32, i32
  }
  func.func @transform_7(%arg0: i32) -> (i32, i32) {
    %c0_i32 = arith.constant 0 : i32
    %c0_i32_0 = arith.constant 0 : i32
    %c0_i32_1 = arith.constant 0 : i32
    return %c0_i32, %c0_i32_0 : i32, i32
  }
  func.func @transform_8(%arg0: i32) -> (i32, i32) {
    %c0_i32 = arith.constant 0 : i32
    %c0_i32_0 = arith.constant 0 : i32
    %c0_i32_1 = arith.constant 0 : i32
    return %c0_i32, %c0_i32_0 : i32, i32
  }
  func.func @transform_9(%arg0: i32) -> (i32, i32) {
    %c0_i32 = arith.constant 0 : i32
    %c0_i32_0 = arith.constant 0 : i32
    %c0_i32_1 = arith.constant 0 : i32
    return %c0_i32, %c0_i32_0 : i32, i32
  }
  func.func @transform_10(%arg0: i32) -> (i32, i32) {
    %c0_i32 = arith.constant 0 : i32
    %c0_i32_0 = arith.constant 0 : i32
    %c0_i32_1 = arith.constant 0 : i32
    return %c0_i32, %c0_i32_0 : i32, i32
  }
  func.func @transform_11(%arg0: i32) -> (i32, i32) {
    %c0_i32 = arith.constant 0 : i32
    %c0_i32_0 = arith.constant 0 : i32
    %c0_i32_1 = arith.constant 0 : i32
    return %c0_i32, %c0_i32_0 : i32, i32
  }
  func.func @transform_12(%arg0: i32) -> (i32, i32) {
    %c0_i32 = arith.constant 0 : i32
    %c0_i32_0 = arith.constant 0 : i32
    %c0_i32_1 = arith.constant 0 : i32
    return %c0_i32, %c0_i32_0 : i32, i32
  }
  func.func @transform_13(%arg0: i32) -> (i32, i32) {
    %c0_i32 = arith.constant 0 : i32
    %c0_i32_0 = arith.constant 0 : i32
    %c0_i32_1 = arith.constant 0 : i32
    return %c0_i32, %c0_i32_0 : i32, i32
  }
  func.func @transform_14(%arg0: i32) -> (i32, i32) {
    %c0_i32 = arith.constant 0 : i32
    %c0_i32_0 = arith.constant 0 : i32
    %c0_i32_1 = arith.constant 0 : i32
    return %c0_i32, %c0_i32_0 : i32, i32
  }
  func.func @transform_15(%arg0: i32) -> (i32, i32) {
    %c0_i32 = arith.constant 0 : i32
    %c0_i32_0 = arith.constant 0 : i32
    %c0_i32_1 = arith.constant 0 : i32
    return %c0_i32, %c0_i32_0 : i32, i32
  }
  func.func @transform_16(%arg0: i32) -> (i32, i32) {
    %c0_i32 = arith.constant 0 : i32
    %c0_i32_0 = arith.constant 0 : i32
    %c0_i32_1 = arith.constant 0 : i32
    return %c0_i32, %c0_i32_0 : i32, i32
  }
}

</mosaic_0001>

<bundles_post_ra>
// kernel: netd32_forward.1
= control target key start
LH: loop header
LB: loop body
LE: loop exit
PB: predicated region body
PF: predicated region fallthrough
CT: control target
= control target key end

     0   :  { %s6955_s0 = inlined_call_operand.vmem [shape: bf16[2,32,96], index: 0, kind: input, shape index: {}]   ;;  %s6956_s1 = inlined_call_operand.vmem [shape: bf16[4,16,32], index: 1, kind: input, shape index: {}]   ;;  %s6957_s2 = inlined_call_operand.vmem [shape: bf16[4,96,128], index: 2, kind: input, shape index: {}]   ;;  %s6958_s3 = inlined_call_operand.vmem [shape: bf16[4,8,16], index: 3, kind: input, shape index: {}]   ;;  %s6959_s4 = inlined_call_operand.vmem [shape: bf16[4,128,128], index: 4, kind: input, shape index: {}]   ;;  %s6960_s5 = inlined_call_operand.vmem [shape: bf16[4,4,8], index: 5, kind: input, shape index: {}]   ;;  %s6961_s6 = inlined_call_operand.vmem [shape: bf16[4,128,128], index: 6, kind: input, shape index: {}]   ;;  %s6962_s7 = inlined_call_operand.vmem [shape: f32[128,16], index: 7, kind: input, shape index: {}]   ;;  %s6963_s8 = inlined_call_operand.vmem [shape: f32[16,128], index: 8, kind: input, shape index: {}]   ;;  %s6964_s9 = inlined_call_operand.vmem [shape: f32[1,16], index: 9, kind: input, shape index: {}]   ;;  %s6965_s10 = inlined_call_operand.vmem [shape: f32[1,16], index: 10, kind: input, shape index: {}]   ;;  %s6966_s11 = inlined_call_operand.vmem [shape: f32[128,32], index: 11, kind: input, shape index: {}]   ;;  %s6967_s12 = inlined_call_operand.vmem [shape: f32[32,128], index: 12, kind: input, shape index: {}]   ;;  %s6968_s13 = inlined_call_operand.vmem [shape: f32[1,32], index: 13, kind: input, shape index: {}]   ;;  %s6969_s14 = inlined_call_operand.vmem [shape: f32[1,32], index: 14, kind: input, shape index: {}]   ;;  %s6970_s15 = inlined_call_operand.vmem [shape: f32[4,128], index: 15, kind: input, shape index: {}]   ;;  %s6971_s16 = inlined_call_operand.hbm [shape: f32[1,2], index: 16, kind: output, shape index: {}]  }
   0x1   :  { %6976 = sst [smem:[#allocation8_spill]] %s6955_s0 }
   0x2   :  { %s6977_s23 = sld [smem:[#allocation8_spill]]  ;;  %v5603_v1 = vmov 0.0   ;;  %vm5604_vm0 = vmmov 0   ;;  %v5708_v3 = vld [vmem:[%s6956_s1] sm:$0xff]   ;;  %vm78_vm1 = vcmask 261120   ;;  %v5713_v4 = vld [vmem:[%s6957_s2 + $0x30] sm:$0xff]  }
   0x3   :  { %4470 = vmatprep.subr.bf16.mxu1 %v5603_v1  ;;  %4486 = vmatprep.subr.bf16.mxu0 %v5603_v1  ;;  %v5720_v5 = vld [vmem:[%s6957_s2 + $0x38] sm:$0xff]   ;;  %v5730_v6 = vld [vmem:[%s6957_s2 + $0x40] sm:$0xff]   ;;  %v5736_v7 = vld [vmem:[%s6956_s1 + $0x8] sm:$0xff]  }
   0x4   :  { %4474 = vmatprep.mubr.msk.bf16.mxu1 %vm5604_vm0, %v5603_v1  ;;  %4498 = vmatprep.mubr.msk.bf16.mxu0 %vm5604_vm0, %v5603_v1  ;;  %v5751_v8 = vld [vmem:[%s6956_s1 + $0x10] sm:$0xff]   ;;  %v5762_v9 = vld [vmem:[%s6956_s1 + $0x18] sm:$0xff]  }
   0x5   :  { %4487 = vmatpush3.bf16.msra.mxu0 %v5713_v4 }
   0x6   :  { %4488 = vmatprep.subr.bf16.mxu0 %v5603_v1 }
   0x8   :  { %v5471_v0 = vld [vmem:[%s6977_s23] sm:$0xff]   ;;  %v5472_v2 = vld [vmem:[%s6977_s23 + $0x8] sm:$0xff]  }
   0x9   :  { %4471 = vmatpush3.bf16.msra.mxu1 %v5471_v0  ;;  %4489 = vmatpush3.bf16.msra.mxu0 %v5720_v5 }
   0xa   :  { %4472 = vmatprep.subr.bf16.mxu1 %v5603_v1  ;;  %4490 = vmatprep.subr.bf16.mxu0 %v5603_v1 }
   0xd   :  { %4473 = vmatpush3.bf16.msra.mxu1 %v5472_v2  ;;  %4491 = vmatpush3.bf16.msra.mxu0 %v5730_v6 }
   0xe   :  { %4478 = vmatprep.subr.bf16.mxu1 %v5603_v1  ;;  %4492 = vmatprep.subr.bf16.mxu0 %v5603_v1 }
  0x10   :  { %4475 = vmatmul.mubr.msk.bf16.vlgmr.msra.gmra.mrb[0].mxu1 %vm78_vm1, %v5708_v3 }
  0x11   :  { %4479 = vmatpush3.bf16.msra.mxu1 %v5471_v0  ;;  %4482 = vmatprep.mubr.msk.bf16.mxu1 %vm5604_vm0, %v5603_v1 }
  0x12   :  { %4480 = vmatprep.subr.bf16.mxu1 %v5603_v1 }
  0x15   :  { %4481 = vmatpush3.bf16.msra.mxu1 %v5472_v2 }
  0x16   :  { %4518 = vmatprep.subr.bf16.mxu1 %v5603_v1 }
  0x18   :  { %4483 = vmatmul.mubr.msk.bf16.vlgmr.msra.gmra.mrb[4].mxu1 %vm78_vm1, %v5736_v7 }
  0x19   :  { %4519 = vmatpush3.bf16.msra.mxu1 %v5471_v0  ;;  %4522 = vmatprep.mubr.msk.bf16.mxu1 %vm5604_vm0, %v5603_v1 }
  0x1a   :  { %4520 = vmatprep.subr.bf16.mxu1 %v5603_v1 }
  0x1d   :  { %4521 = vmatpush3.bf16.msra.mxu1 %v5472_v2 }
  0x1e   :  { %4542 = vmatprep.subr.bf16.mxu1 %v5603_v1 }
  0x20   :  { %4523 = vmatmul.mubr.msk.bf16.vlgmr.msra.gmra.mrb[8].mxu1 %vm78_vm1, %v5751_v8 }
  0x21   :  { %4543 = vmatpush3.bf16.msra.mxu1 %v5471_v0  ;;  %4546 = vmatprep.mubr.msk.bf16.mxu1 %vm5604_vm0, %v5603_v1 }
  0x22   :  { %4544 = vmatprep.subr.bf16.mxu1 %v5603_v1 }
  0x25   :  { %4545 = vmatpush3.bf16.msra.mxu1 %v5472_v2 }
  0x26   :  { %4566 = vmatprep.subr.bf16.mxu1 %v5603_v1 }
  0x28   :  { %4547 = vmatmul.mubr.msk.bf16.vlgmr.msra.gmra.mrb[12].mxu1 %vm78_vm1, %v5762_v9 }
  0x29   :  { %4568 = vmatprep.mubr.msk.bf16.mxu1 %vm5604_vm0, %v5603_v1 }
  0x2a   :  { %21 = vsyncpa [#allocation3], 0  ;;  %v5772_v10 = vld [vmem:[%s6957_s2 + $0x48] sm:$0xff]   ;;  %v5779_v11 = vld [vmem:[%s6957_s2 + $0x50] sm:$0xff]   ;;  %vm238_vm2 = vcmask 785408   ;;  %vm667_vm5 = vcmask 130048  }
  0x2b   :  { %4493 = vmatpush3.bf16.msra.mxu0 %v5772_v10  ;;  %v5786_v12 = vld [vmem:[%s6957_s2 + $0x58] sm:$0xff]   ;;  %v5793_v21 = vld [vmem:[%s6957_s2] sm:$0xff]   ;;  %v5800_v24 = vld [vmem:[%s6957_s2 + $0x8] sm:$0xff]   ;;  %vm2412_vm9 = vcmask 1043456   ;;  %vm2408_vm10 = vcmask 64512   ;;  %vm3806_vm14 = vcmask 0  }
  0x2c   :  { %4494 = vmatprep.subr.bf16.mxu0 %v5603_v1  ;;  %v5809_v27 = vld [vmem:[%s6957_s2 + $0x10] sm:$0xff]   ;;  %v5816_v31 = vld [vmem:[%s6957_s2 + $0x18] sm:$0xff]   ;;  %v5823_v34 = vld [vmem:[%s6957_s2 + $0x20] sm:$0xff]   ;;  %vm3824_vm15 = vcmask 8200  }
  0x2d   :  { %v5830_v38 = vld [vmem:[%s6957_s2 + $0x28] sm:$0xff]   ;;  %v5837_v39 = vld [vmem:[%s6957_s2 + $0x60] sm:$0xff]   ;;  %v5854_v41 = vld [vmem:[%s6957_s2 + $0x70] sm:$0xff]  }
  0x2e   :  { %v5845_v40 = vld [vmem:[%s6957_s2 + $0x68] sm:$0xff]   ;;  %v5861_v42 = vld [vmem:[%s6957_s2 + $0x78] sm:$0xff]   ;;  %v5868_v43 = vld [vmem:[%s6957_s2 + $0x80] sm:$0xff]  }
  0x2f   :  { %4495 = vmatpush3.bf16.msra.mxu0 %v5779_v11  ;;  %v5875_v44 = vld [vmem:[%s6957_s2 + $0x88] sm:$0xff]   ;;  %v5882_v45 = vld [vmem:[%s6957_s2 + $0x90] sm:$0xff]   ;;  %v5890_v46 = vld [vmem:[%s6957_s2 + $0x98] sm:$0xff]  }
  0x30   :  { %4496 = vmatprep.subr.bf16.mxu0 %v5603_v1  ;;  %v5899_v47 = vld [vmem:[%s6957_s2 + $0xa0] sm:$0xff]   ;;  %v5906_v48 = vld [vmem:[%s6957_s2 + $0xa8] sm:$0xff]   ;;  %v5913_v49 = vld [vmem:[%s6957_s2 + $0xb0] sm:$0xff]  }
  0x31   :  { %v5920_v50 = vld [vmem:[%s6957_s2 + $0xb8] sm:$0xff]   ;;  %v5931_v60 = vld [vmem:[%s6958_s3] sm:$0xf]  ;;  %v5936_v61 = vld [vmem:[%s6958_s3 + $0x8] sm:$0xf] }
  0x32   :  { %v5953_v62 = vld [vmem:[%s6958_s3 + $0x4] sm:$0xf]  ;;  %v5958_v63 = vld [vmem:[%s6958_s3 + $0xc] sm:$0xf] }
  0x33   :  { %4497 = vmatpush3.bf16.msra.mxu0 %v5786_v12  ;;  %v5963_v0 = vld [vmem:[%s6959_s4 + $0x40] sm:$0xff]   ;;  %v5973_v2 = vld [vmem:[%s6959_s4 + $0x48] sm:$0xff]  }
  0x34   :  { %4502 = vmatprep.subr.bf16.mxu0 %v5603_v1 }
  0xe3   :  { %v116_v13 = vpop.f32.mrb[0].mxu1 }
  0xe4   :  { %v4476_v14 = vpop.f32.mrb[1].mxu1 }
  0xe5   :  { %v119_v15 = vpop.f32.mrb[2].mxu1  ;;  %v5991_v14 = vld [vmem:[%s6959_s4 + $0x58] sm:$0xff]  }
  0xe6   :  { %v123_v16 = vpack.c.bf16 %v119_v15, %v116_v13  ;;  %v4477_v17 = vpop.f32.mrb[3].mxu1  ;;  %v5984_v13 = vld [vmem:[%s6959_s4 + $0x50] sm:$0xff]   ;;  %v5998_v15 = vld [vmem:[%s6959_s4 + $0x60] sm:$0xff]  }
  0xe7   :  { %v6013_v17 = vld [vmem:[%s6959_s4 + $0x70] sm:$0xff]  }
  0xeb   :  { %v181_v18 = vpop.f32.mrb[4].mxu1 }
  0xec   :  { %v4484_v19 = vpop.f32.mrb[5].mxu1 }
  0xed   :  { %v184_v20 = vpop.f32.mrb[6].mxu1  ;;  %v6027_v19 = vld [vmem:[%s6977_s23 + $0x10] sm:$0xff]  }
  0xee   :  { %v188_v22 = vpack.c.bf16 %v184_v20, %v181_v18  ;;  %v4485_v23 = vpop.f32.mrb[7].mxu1  ;;  %v6019_v18 = vld [vmem:[%s6959_s4 + $0x78] sm:$0xff]  }
  0xef   :  { %v6034_v20 = vld [vmem:[%s6977_s23 + $0x18] sm:$0xff]  }
  0xf0   :  { %4499 = vmatmul.mubr.msk.bf16.vlgmr.msra.gmra.mrb[0].mxu0 %vm238_vm2, %v188_v22 }
  0xf1   :  { %4503 = vmatpush3.bf16.msra.mxu0 %v5793_v21  ;;  %4514 = vmatprep.mubr.msk.bf16.mxu0 %vm5604_vm0, %v5603_v1 }
  0xf2   :  { %4504 = vmatprep.subr.bf16.mxu0 %v5603_v1 }
  0xf3   :  { %v408_v25 = vpop.f32.mrb[8].mxu1 }
  0xf4   :  { %v4524_v26 = vpop.f32.mrb[9].mxu1 }
  0xf5   :  { %4505 = vmatpush3.bf16.msra.mxu0 %v5800_v24  ;;  %v411_v28 = vpop.f32.mrb[10].mxu1 }
  0xf6   :  { %4506 = vmatprep.subr.bf16.mxu0 %v5603_v1  ;;  %v415_v29 = vpack.c.bf16 %v411_v28, %v408_v25  ;;  %v4525_v30 = vpop.f32.mrb[11].mxu1 }
  0xf9   :  { %4507 = vmatpush3.bf16.msra.mxu0 %v5809_v27 }
  0xfa   :  { %4508 = vmatprep.subr.bf16.mxu0 %v5603_v1 }
  0xfb   :  { %v556_v32 = vpop.f32.mrb[12].mxu1 }
  0xfc   :  { %v4548_v33 = vpop.f32.mrb[13].mxu1 }
  0xfd   :  { %4509 = vmatpush3.bf16.msra.mxu0 %v5816_v31  ;;  %v559_v35 = vpop.f32.mrb[14].mxu1 }
  0xfe   :  { %4510 = vmatprep.subr.bf16.mxu0 %v5603_v1  ;;  %v563_v36 = vpack.c.bf16 %v559_v35, %v556_v32  ;;  %v4549_v37 = vpop.f32.mrb[15].mxu1 }
  0xff   :  { %v6084_v37 = vld [vmem:[%s6959_s4 + $0x10] sm:$0xff]  }
 0x101   :  { %4511 = vmatpush3.bf16.msra.mxu0 %v5823_v34 }
 0x102   :  { %4512 = vmatprep.subr.bf16.mxu0 %v5603_v1 }
 0x105   :  { %4513 = vmatpush3.bf16.msra.mxu0 %v5830_v38 }
 0x106   :  { %4526 = vmatprep.subr.bf16.mxu0 %v5603_v1 }
 0x108   :  { %4515 = vmatmul.mubr.msk.bf16.vlgmr.msra.gmra.mrb[0].mxu0 %vm238_vm2, %v123_v16  ;;  %v6005_v16 = vld [vmem:[%s6959_s4 + $0x68] sm:$0xff]  }
 0x109   :  { %4527 = vmatpush3.bf16.msra.mxu0 %v5837_v39  ;;  %4538 = vmatprep.mubr.msk.bf16.mxu0 %vm5604_vm0, %v5603_v1 }
 0x10a   :  { %4528 = vmatprep.subr.bf16.mxu0 %v5603_v1 }
 0x10d   :  { %4529 = vmatpush3.bf16.msra.mxu0 %v5845_v40 }
 0x10e   :  { %4530 = vmatprep.subr.bf16.mxu0 %v5603_v1 }
 0x111   :  { %4531 = vmatpush3.bf16.msra.mxu0 %v5854_v41 }
 0x112   :  { %4532 = vmatprep.subr.bf16.mxu0 %v5603_v1 }
 0x115   :  { %4533 = vmatpush3.bf16.msra.mxu0 %v5861_v42 }
 0x116   :  { %4534 = vmatprep.subr.bf16.mxu0 %v5603_v1 }
 0x119   :  { %4535 = vmatpush3.bf16.msra.mxu0 %v5868_v43 }
 0x11a   :  { %4536 = vmatprep.subr.bf16.mxu0 %v5603_v1 }
 0x11d   :  { %4537 = vmatpush3.bf16.msra.mxu0 %v5875_v44 }
 0x11e   :  { %4550 = vmatprep.subr.bf16.mxu0 %v5603_v1 }
 0x120   :  { %4539 = vmatmul.mubr.msk.bf16.vlgmr.msra.gmra.mrb[0].mxu0 %vm238_vm2, %v415_v29 }
 0x121   :  { %4551 = vmatpush3.bf16.msra.mxu0 %v5882_v45  ;;  %4562 = vmatprep.mubr.msk.bf16.mxu0 %vm5604_vm0, %v5603_v1 }
 0x122   :  { %4552 = vmatprep.subr.bf16.mxu0 %v5603_v1 }
 0x125   :  { %4553 = vmatpush3.bf16.msra.mxu0 %v5890_v46 }
 0x126   :  { %4554 = vmatprep.subr.bf16.mxu0 %v5603_v1 }
 0x129   :  { %4555 = vmatpush3.bf16.msra.mxu0 %v5899_v47 }
 0x12a   :  { %4556 = vmatprep.subr.bf16.mxu0 %v5603_v1 }
 0x12d   :  { %4557 = vmatpush3.bf16.msra.mxu0 %v5906_v48 }
 0x12e   :  { %4558 = vmatprep.subr.bf16.mxu0 %v5603_v1 }
 0x131   :  { %4559 = vmatpush3.bf16.msra.mxu0 %v5913_v49 }
 0x132   :  { %4560 = vmatprep.subr.bf16.mxu0 %v5603_v1 }
 0x135   :  { %4561 = vmatpush3.bf16.msra.mxu0 %v5920_v50 }
 0x136   :  { %4618 = vmatprep.subr.bf16.mxu0 %v5603_v1 }
 0x138   :  { %4563 = vmatmul.mubr.msk.bf16.vlgmr.msra.gmra.mrb[0].mxu0 %vm238_vm2, %v563_v36  ;;  %v6075_v36 = vld [vmem:[%s6959_s4 + $0x8] sm:$0xff]  }
 0x139   :  { %4620 = vmatprep.mubr.msk.bf16.mxu0 %vm5604_vm0, %v5603_v1 }
 0x20b   :  { %v650_v51 = vpop.f32.mrb[0].mxu0 }
 0x20c   :  { %v661_v52 = vmul.f32 0.2, %v650_v51  ;;  %v4564_v53 = vpop.f32.mrb[1].mxu0  ;;  %vm659_vm3 = vcmp.ge.f32.partialorder %v650_v51, 0.0 }
 0x20d   :  { %v653_v54 = vpop.f32.mrb[2].mxu0  ;;  %v6105_v53 = vld [vmem:[%s6959_s4 + $0x28] sm:$0xff]  }
 0x20e   :  { %vm660_vm4 = vcmp.ge.f32.partialorder %v653_v54, 0.0  ;;  %v662_v55 = vmul.f32 0.2, %v653_v54  ;;  %v4565_v56 = vpop.f32.mrb[3].mxu0  ;;  %v663_v57 = vsel %vm659_vm3, %v650_v51, %v661_v52  ;;  %v6091_v51 = vld [vmem:[%s6959_s4 + $0x18] sm:$0xff]   ;;  %v6098_v52 = vld [vmem:[%s6959_s4 + $0x20] sm:$0xff]  }
 0x20f   :  { %v6126_v56 = vld [vmem:[%s6959_s4 + $0x80] sm:$0xff]  }
 0x210   :  { %v664_v58 = vsel %vm660_vm4, %v653_v54, %v662_v55  ;;  %v6112_v54 = vld [vmem:[%s6959_s4 + $0x30] sm:$0xff]   ;;  %v6119_v55 = vld [vmem:[%s6959_s4 + $0x38] sm:$0xff]  }
 0x211   :  { %v665_v59 = vpack.c.bf16 %v664_v58, %v663_v57  ;;  %v6133_v58 = vld [vmem:[%s6959_s4 + $0x88] sm:$0xff]  }
 0x213   :  { %4567 = vmatpush3.bf16.msra.mxu1 %v665_v59  ;;  %4619 = vmatpush3.bf16.msra.mxu0 %v665_v59 }
 0x214   :  { %4572 = vmatprep.subr.bf16.mxu1 %v5603_v1  ;;  %4644 = vmatprep.subr.bf16.mxu0 %v5603_v1 }
 0x216   :  { %4569 = vmatmul.mubr.msk.bf16.vlgmr.msra.gmra.mrb[16].mxu1 %vm667_vm5, %v5931_v60  ;;  %4621 = vmatmul.mubr.msk.bf16.vlgmr.msra.gmra.mrb[4].mxu0 %vm667_vm5, %v5936_v61 }
 0x217   :  { %4573 = vmatpush3.bf16.msra.mxu1 %v665_v59  ;;  %4645 = vmatpush3.bf16.msra.mxu0 %v665_v59  ;;  %v6142_v59 = vld [vmem:[%s6959_s4 + $0x90] sm:$0xff]  }
 0x218   :  { %4574 = vmatprep.mubr.msk.bf16.mxu1 %vm5604_vm0, %v5603_v1  ;;  %4646 = vmatprep.mubr.msk.bf16.mxu0 %vm5604_vm0, %v5603_v1 }
 0x219   :  { %4578 = vmatprep.subr.bf16.mxu1 %v5603_v1  ;;  %4670 = vmatprep.subr.bf16.mxu0 %v5603_v1 }
 0x21e   :  { %4575 = vmatmul.mubr.msk.bf16.vlgmr.msra.gmra.mrb[20].mxu1 %vm667_vm5, %v5953_v62  ;;  %4647 = vmatmul.mubr.msk.bf16.vlgmr.msra.gmra.mrb[8].mxu0 %vm667_vm5, %v5958_v63 }
 0x21f   :  { %4579 = vmatpush3.bf16.msra.mxu1 %v5963_v0  ;;  %4594 = vmatprep.mubr.msk.bf16.mxu1 %vm5604_vm0, %v5603_v1 }
 0x220   :  { %4580 = vmatprep.subr.bf16.mxu1 %v5603_v1  ;;  %4674 = vmatprep.mubr.msk.bf16.mxu0 %vm5604_vm0, %v5603_v1 }
 0x221   :  { %4671 = vmatpush3.bf16.msra.mxu0 %v6027_v19 }
 0x222   :  { %4672 = vmatprep.subr.bf16.mxu0 %v5603_v1 }
 0x223   :  { %4581 = vmatpush3.bf16.msra.mxu1 %v5973_v2 }
 0x224   :  { %4582 = vmatprep.subr.bf16.mxu1 %v5603_v1 }
 0x225   :  { %4673 = vmatpush3.bf16.msra.mxu0 %v6034_v20 }
 0x226   :  { %4678 = vmatprep.subr.bf16.mxu0 %v5603_v1 }
 0x227   :  { %4583 = vmatpush3.bf16.msra.mxu1 %v5984_v13 }
 0x228   :  { %4584 = vmatprep.subr.bf16.mxu1 %v5603_v1  ;;  %4675 = vmatmul.mubr.msk.bf16.vlgmr.msra.gmra.mrb[12].mxu0 %vm78_vm1, %v5708_v3 }
 0x229   :  { %4679 = vmatpush3.bf16.msra.mxu0 %v6027_v19  ;;  %4682 = vmatprep.mubr.msk.bf16.mxu0 %vm5604_vm0, %v5603_v1 }
 0x22a   :  { %4680 = vmatprep.subr.bf16.mxu0 %v5603_v1 }
 0x22b   :  { %4585 = vmatpush3.bf16.msra.mxu1 %v5991_v14 }
 0x22c   :  { %4586 = vmatprep.subr.bf16.mxu1 %v5603_v1 }
 0x22d   :  { %4681 = vmatpush3.bf16.msra.mxu0 %v6034_v20 }
 0x22e   :  { %4686 = vmatprep.subr.bf16.mxu0 %v5603_v1 }
 0x22f   :  { %4587 = vmatpush3.bf16.msra.mxu1 %v5998_v15 }
 0x230   :  { %4588 = vmatprep.subr.bf16.mxu1 %v5603_v1  ;;  %4683 = vmatmul.mubr.msk.bf16.vlgmr.msra.gmra.mrb[16].mxu0 %vm78_vm1, %v5736_v7 }
 0x231   :  { %4687 = vmatpush3.bf16.msra.mxu0 %v5713_v4  ;;  %4698 = vmatprep.mubr.msk.bf16.mxu0 %vm5604_vm0, %v5603_v1 }
 0x232   :  { %4688 = vmatprep.subr.bf16.mxu0 %v5603_v1 }
 0x233   :  { %4589 = vmatpush3.bf16.msra.mxu1 %v6005_v16 }
 0x234   :  { %4590 = vmatprep.subr.bf16.mxu1 %v5603_v1 }
 0x235   :  { %4689 = vmatpush3.bf16.msra.mxu0 %v5720_v5 }
 0x236   :  { %4690 = vmatprep.subr.bf16.mxu0 %v5603_v1 }
 0x237   :  { %4591 = vmatpush3.bf16.msra.mxu1 %v6013_v17 }
 0x238   :  { %4592 = vmatprep.subr.bf16.mxu1 %v5603_v1 }
 0x239   :  { %4691 = vmatpush3.bf16.msra.mxu0 %v5730_v6 }
 0x23a   :  { %4692 = vmatprep.subr.bf16.mxu0 %v5603_v1 }
 0x23b   :  { %4593 = vmatpush3.bf16.msra.mxu1 %v6019_v18 }
 0x23c   :  { %4598 = vmatprep.subr.bf16.mxu1 %v5603_v1 }
 0x23d   :  { %4693 = vmatpush3.bf16.msra.mxu0 %v5772_v10 }
 0x23e   :  { %4694 = vmatprep.subr.bf16.mxu0 %v5603_v1 }
 0x241   :  { %4695 = vmatpush3.bf16.msra.mxu0 %v5779_v11  ;;  %v6067_v11 = vld [vmem:[%s6959_s4] sm:$0xff]  }
 0x242   :  { %4696 = vmatprep.subr.bf16.mxu0 %v5603_v1 }
 0x245   :  { %4697 = vmatpush3.bf16.msra.mxu0 %v5786_v12 }
 0x246   :  { %4702 = vmatprep.subr.bf16.mxu0 %v5603_v1 }
 0x2e9   :  { %v705_v3 = vpop.f32.mrb[16].mxu1  ;;  %v6062_v4 = vpop.f32.mrb[4].mxu0 }
 0x2ea   :  { %v4570_v5 = vpop.f32.mrb[17].mxu1  ;;  %v4622_v7 = vpop.f32.mrb[5].mxu0  ;;  %v711_v57 = vpack.c.bf16 %v705_v3, %v705_v3  ;;  %v6149_v3 = vld [vmem:[%s6959_s4 + $0x98] sm:$0xff]  }
 0x2eb   :  { %v708_v6 = vpop.f32.mrb[18].mxu1  ;;  %v1009_v22 = vpop.f32.mrb[6].mxu0  ;;  %v6156_v5 = vld [vmem:[%s6959_s4 + $0xa0] sm:$0xff]   ;;  %v6163_v7 = vld [vmem:[%s6959_s4 + $0xa8] sm:$0xff]  }
 0x2ec   :  { %v4571_v23 = vpop.f32.mrb[19].mxu1  ;;  %v4623_v25 = vpop.f32.mrb[7].mxu0  ;;  %v6170_v6 = vld [vmem:[%s6959_s4 + $0xb0] sm:$0xff]   ;;  %v6177_v22 = vld [vmem:[%s6959_s4 + $0xb8] sm:$0xff]  }
 0x2ed   :  { %v1012_v23 = vpack.c.bf16 %v6062_v4, %v6062_v4  ;;  %v6186_v25 = vld [vmem:[%s6959_s4 + $0xc0] sm:$0xff]   ;;  %v6202_v4 = vld [vmem:[%s6959_s4 + $0xd0] sm:$0xff]  }
 0x2f1   :  { %v767_v10 = vpop.f32.mrb[20].mxu1  ;;  %v6069_v26 = vpop.f32.mrb[8].mxu0 }
 0x2f2   :  { %v773_v12 = vpack.c.bf16 %v767_v10, %v767_v10  ;;  %v4576_v28 = vpop.f32.mrb[21].mxu1  ;;  %v4648_v29 = vpop.f32.mrb[9].mxu0  ;;  %v6193_v10 = vld [vmem:[%s6959_s4 + $0xc8] sm:$0xff]  }
 0x2f3   :  { %v770_v30 = vpop.f32.mrb[22].mxu1  ;;  %v1161_v32 = vpop.f32.mrb[10].mxu0  ;;  %v6216_v28 = vld [vmem:[%s6959_s4 + $0xe0] sm:$0xff]   ;;  %v6223_v29 = vld [vmem:[%s6959_s4 + $0xe8] sm:$0xff]  }
 0x2f4   :  { %v4577_v33 = vpop.f32.mrb[23].mxu1  ;;  %4595 = vmatmul.mubr.bf16.vlgmr.msra.gmra.mrb[24].mxu1 %v773_v12  ;;  %v4649_v35 = vpop.f32.mrb[11].mxu0  ;;  %v6209_v12 = vld [vmem:[%s6959_s4 + $0xd8] sm:$0xff]   ;;  %6978 = vst [vmem:[#allocation5_spill] sm:$0xff] %v6223_v29  ;;  %v6230_v30 = vld [vmem:[%s6959_s4 + $0xf0] sm:$0xff]  }
 0x2f5   :  { %4599 = vmatpush3.bf16.msra.mxu1 %v6067_v11  ;;  %4614 = vmatprep.mubr.msk.bf16.mxu1 %vm5604_vm0, %v5603_v1  ;;  %6979 = vst [vmem:[#allocation6_spill] sm:$0xff] %v6230_v30  ;;  %v6237_v32 = vld [vmem:[%s6959_s4 + $0xf8] sm:$0xff]   ;;  %v1164_v33 = vpack.c.bf16 %v6069_v26, %v6069_v26 }
 0x2f6   :  { %4600 = vmatprep.subr.bf16.mxu1 %v5603_v1  ;;  %6980 = vst [vmem:[#allocation7_spill] sm:$0xff] %v6237_v32 }
 0x2f9   :  { %4601 = vmatpush3.bf16.msra.mxu1 %v6075_v36 }
 0x2fa   :  { %4602 = vmatprep.subr.bf16.mxu1 %v5603_v1 }
 0x2fb   :  { %v1322_v35 = vpop.f32.mrb[12].mxu0 }
 0x2fd   :  { %4603 = vmatpush3.bf16.msra.mxu1 %v6084_v37 }
 0x2fe   :  { %4604 = vmatprep.subr.bf16.mxu1 %v5603_v1 }
 0x301   :  { %4605 = vmatpush3.bf16.msra.mxu1 %v6091_v51 }
 0x302   :  { %4606 = vmatprep.subr.bf16.mxu1 %v5603_v1 }
 0x305   :  { %4607 = vmatpush3.bf16.msra.mxu1 %v6098_v52 }
 0x306   :  { %4608 = vmatprep.subr.bf16.mxu1 %v5603_v1 }
 0x309   :  { %4609 = vmatpush3.bf16.msra.mxu1 %v6105_v53 }
 0x30a   :  { %4610 = vmatprep.subr.bf16.mxu1 %v5603_v1 }
 0x30d   :  { %4611 = vmatpush3.bf16.msra.mxu1 %v6112_v54 }
 0x30e   :  { %4612 = vmatprep.subr.bf16.mxu1 %v5603_v1 }
 0x311   :  { %4613 = vmatpush3.bf16.msra.mxu1 %v6119_v55 }
 0x312   :  { %4624 = vmatprep.subr.bf16.mxu1 %v5603_v1 }
 0x314   :  { %4615 = vmatmul.mubr.bf16.vlgmr.msra.gmra.mrb[24].mxu1 %v711_v57  ;;  %v4676_v57 = vpop.f32.mrb[13].mxu0 }
 0x315   :  { %4625 = vmatpush3.bf16.msra.mxu1 %v6126_v56  ;;  %4640 = vmatprep.mubr.msk.bf16.mxu1 %vm5604_vm0, %v5603_v1 }
 0x316   :  { %4626 = vmatprep.subr.bf16.mxu1 %v5603_v1 }
 0x319   :  { %4627 = vmatpush3.bf16.msra.mxu1 %v6133_v58 }
 0x31a   :  { %4628 = vmatprep.subr.bf16.mxu1 %v5603_v1 }
 0x31d   :  { %4629 = vmatpush3.bf16.msra.mxu1 %v6142_v59 }
 0x31e   :  { %4630 = vmatprep.subr.bf16.mxu1 %v5603_v1 }
 0x321   :  { %4631 = vmatpush3.bf16.msra.mxu1 %v6149_v3 }
 0x322   :  { %4632 = vmatprep.subr.bf16.mxu1 %v5603_v1 }
 0x325   :  { %4633 = vmatpush3.bf16.msra.mxu1 %v6156_v5 }
 0x326   :  { %4634 = vmatprep.subr.bf16.mxu1 %v5603_v1 }
 0x329   :  { %4635 = vmatpush3.bf16.msra.mxu1 %v6163_v7 }
 0x32a   :  { %4636 = vmatprep.subr.bf16.mxu1 %v5603_v1 }
 0x32d   :  { %4637 = vmatpush3.bf16.msra.mxu1 %v6170_v6 }
 0x32e   :  { %4638 = vmatprep.subr.bf16.mxu1 %v5603_v1 }
 0x331   :  { %4639 = vmatpush3.bf16.msra.mxu1 %v6177_v22 }
 0x332   :  { %4650 = vmatprep.subr.bf16.mxu1 %v5603_v1 }
 0x334   :  { %4641 = vmatmul.mubr.bf16.vlgmr.msra.gmra.mrb[24].mxu1 %v1012_v23  ;;  %v1325_v23 = vpop.f32.mrb[14].mxu0 }
 0x335   :  { %4651 = vmatpush3.bf16.msra.mxu1 %v6186_v25  ;;  %4666 = vmatprep.mubr.msk.bf16.mxu1 %vm5604_vm0, %v5603_v1 }
 0x336   :  { %4652 = vmatprep.subr.bf16.mxu1 %v5603_v1 }
 0x339   :  { %4653 = vmatpush3.bf16.msra.mxu1 %v6193_v10 }
 0x33a   :  { %4654 = vmatprep.subr.bf16.mxu1 %v5603_v1 }
 0x33d   :  { %4655 = vmatpush3.bf16.msra.mxu1 %v6202_v4 }
 0x33e   :  { %4656 = vmatprep.subr.bf16.mxu1 %v5603_v1 }
 0x341   :  { %4657 = vmatpush3.bf16.msra.mxu1 %v6209_v12 }
 0x342   :  { %4658 = vmatprep.subr.bf16.mxu1 %v5603_v1 }
 0x345   :  { %4659 = vmatpush3.bf16.msra.mxu1 %v6216_v28 }
 0x346   :  { %4660 = vmatprep.subr.bf16.mxu1 %v5603_v1 }
 0x349   :  { %4661 = vmatpush3.bf16.msra.mxu1 %v6223_v29  ;;  %v4677_v29 = vpop.f32.mrb[15].mxu0 }
 0x34a   :  { %4662 = vmatprep.subr.bf16.mxu1 %v5603_v1  ;;  %v1364_v26 = vpop.f32.mrb[16].mxu0 }
 0x34d   :  { %4663 = vmatpush3.bf16.msra.mxu1 %v6230_v30  ;;  %v1329_v30 = vpack.c.bf16 %v1325_v23, %v1322_v35 }
 0x34e   :  { %4664 = vmatprep.subr.bf16.mxu1 %v5603_v1 }
 0x351   :  { %4665 = vmatpush3.bf16.msra.mxu1 %v6237_v32 }
 0x352   :  { %4718 = vmatprep.subr.bf16.mxu1 %v5603_v1 }
 0x354   :  { %4667 = vmatmul.mubr.bf16.vlgmr.msra.gmra.mrb[24].mxu1 %v1164_v33  ;;  %v4684_v33 = vpop.f32.mrb[17].mxu0 }
 0x355   :  { %4719 = vmatpush3.bf16.msra.mxu1 %v6027_v19  ;;  %4722 = vmatprep.mubr.msk.bf16.mxu1 %vm5604_vm0, %v5603_v1  ;;  %v1367_v57 = vpop.f32.mrb[18].mxu0 }
 0x356   :  { %4720 = vmatprep.subr.bf16.mxu1 %v5603_v1  ;;  %v1371_v32 = vpack.c.bf16 %v1367_v57, %v1364_v26  ;;  %v4685_v35 = vpop.f32.mrb[19].mxu0 }
 0x358   :  { %4699 = vmatmul.mubr.msk.bf16.vlgmr.msra.gmra.mrb[20].mxu0 %vm238_vm2, %v1371_v32 }
 0x359   :  { %4721 = vmatpush3.bf16.msra.mxu1 %v6034_v20  ;;  %4703 = vmatpush3.bf16.msra.mxu0 %v5793_v21 }
 0x35a   :  { %4742 = vmatprep.subr.bf16.mxu1 %v5603_v1  ;;  %4704 = vmatprep.subr.bf16.mxu0 %v5603_v1 }
 0x35b   :  { %4714 = vmatprep.mubr.msk.bf16.mxu0 %vm5604_vm0, %v5603_v1 }
 0x35c   :  { %4723 = vmatmul.mubr.msk.bf16.vlgmr.msra.gmra.mrb[28].mxu1 %vm78_vm1, %v5751_v8 }
 0x35d   :  { %4743 = vmatpush3.bf16.msra.mxu1 %v6027_v19  ;;  %4746 = vmatprep.mubr.msk.bf16.mxu1 %vm5604_vm0, %v5603_v1 }
 0x35e   :  { %4744 = vmatprep.subr.bf16.mxu1 %v5603_v1  ;;  %4705 = vmatpush3.bf16.msra.mxu0 %v5800_v24 }
 0x35f   :  { %4706 = vmatprep.subr.bf16.mxu0 %v5603_v1 }
 0x361   :  { %4745 = vmatpush3.bf16.msra.mxu1 %v6034_v20 }
 0x362   :  { %4766 = vmatprep.subr.bf16.mxu1 %v5603_v1  ;;  %4707 = vmatpush3.bf16.msra.mxu0 %v5809_v27 }
 0x363   :  { %4708 = vmatprep.subr.bf16.mxu0 %v5603_v1 }
 0x364   :  { %4747 = vmatmul.mubr.msk.bf16.vlgmr.msra.gmra.mrb[32].mxu1 %vm78_vm1, %v5762_v9 }
 0x365   :  { %4768 = vmatprep.mubr.msk.bf16.mxu1 %vm5604_vm0, %v5603_v1 }
 0x366   :  { %4709 = vmatpush3.bf16.msra.mxu0 %v5816_v31 }
 0x367   :  { %4710 = vmatprep.subr.bf16.mxu0 %v5603_v1 }
 0x36a   :  { %4711 = vmatpush3.bf16.msra.mxu0 %v5823_v34 }
 0x36b   :  { %4712 = vmatprep.subr.bf16.mxu0 %v5603_v1 }
 0x36e   :  { %4713 = vmatpush3.bf16.msra.mxu0 %v5830_v38 }
 0x36f   :  { %4726 = vmatprep.subr.bf16.mxu0 %v5603_v1 }
 0x371   :  { %4715 = vmatmul.mubr.msk.bf16.vlgmr.msra.gmra.mrb[20].mxu0 %vm238_vm2, %v1329_v30 }
 0x372   :  { %4727 = vmatpush3.bf16.msra.mxu0 %v5837_v39  ;;  %4738 = vmatprep.mubr.msk.bf16.mxu0 %vm5604_vm0, %v5603_v1 }
 0x373   :  { %4728 = vmatprep.subr.bf16.mxu0 %v5603_v1 }
 0x376   :  { %4729 = vmatpush3.bf16.msra.mxu0 %v5845_v40 }
 0x377   :  { %4730 = vmatprep.subr.bf16.mxu0 %v5603_v1 }
 0x37a   :  { %4731 = vmatpush3.bf16.msra.mxu0 %v5854_v41 }
 0x37b   :  { %4732 = vmatprep.subr.bf16.mxu0 %v5603_v1 }
 0x37e   :  { %4733 = vmatpush3.bf16.msra.mxu0 %v5861_v42 }
 0x37f   :  { %4734 = vmatprep.subr.bf16.mxu0 %v5603_v1 }
 0x382   :  { %4735 = vmatpush3.bf16.msra.mxu0 %v5868_v43 }
 0x383   :  { %4736 = vmatprep.subr.bf16.mxu0 %v5603_v1 }
 0x386   :  { %4737 = vmatpush3.bf16.msra.mxu0 %v5875_v44 }
 0x387   :  { %4750 = vmatprep.subr.bf16.mxu0 %v5603_v1 }
 0x427   :  { %v6292_v8 = vpop.f32.mrb[24].mxu1 }
 0x428   :  { %v4668_v9 = vpop.f32.mrb[25].mxu1 }
 0x429   :  { %v1267_v21 = vpop.f32.mrb[26].mxu1 }
 0x42a   :  { %v4669_v24 = vpop.f32.mrb[27].mxu1 }
 0x42f   :  { %v1494_v27 = vpop.f32.mrb[28].mxu1 }
 0x430   :  { %v4724_v31 = vpop.f32.mrb[29].mxu1 }
 0x431   :  { %v1497_v34 = vpop.f32.mrb[30].mxu1 }
 0x432   :  { %v1501_v38 = vpack.c.bf16 %v1497_v34, %v1494_v27  ;;  %v4725_v39 = vpop.f32.mrb[31].mxu1 }
 0x434   :  { %4739 = vmatmul.mubr.msk.bf16.vlgmr.msra.gmra.mrb[20].mxu0 %vm238_vm2, %v1501_v38 }
 0x435   :  { %4751 = vmatpush3.bf16.msra.mxu0 %v5882_v45  ;;  %4762 = vmatprep.mubr.msk.bf16.mxu0 %vm5604_vm0, %v5603_v1 }
 0x436   :  { %4752 = vmatprep.subr.bf16.mxu0 %v5603_v1 }
 0x437   :  { %v1582_v40 = vpop.f32.mrb[32].mxu1 }
 0x438   :  { %v4748_v41 = vpop.f32.mrb[33].mxu1 }
 0x439   :  { %4753 = vmatpush3.bf16.msra.mxu0 %v5890_v46  ;;  %v1585_v42 = vpop.f32.mrb[34].mxu1 }
 0x43a   :  { %4754 = vmatprep.subr.bf16.mxu0 %v5603_v1  ;;  %v1589_v43 = vpack.c.bf16 %v1585_v42, %v1582_v40  ;;  %v4749_v44 = vpop.f32.mrb[35].mxu1 }
 0x43d   :  { %4755 = vmatpush3.bf16.msra.mxu0 %v5899_v47 }
 0x43e   :  { %4756 = vmatprep.subr.bf16.mxu0 %v5603_v1 }
 0x441   :  { %4757 = vmatpush3.bf16.msra.mxu0 %v5906_v48 }
 0x442   :  { %4758 = vmatprep.subr.bf16.mxu0 %v5603_v1 }
 0x445   :  { %4759 = vmatpush3.bf16.msra.mxu0 %v5913_v49 }
 0x446   :  { %4760 = vmatprep.subr.bf16.mxu0 %v5603_v1 }
 0x449   :  { %4761 = vmatpush3.bf16.msra.mxu0 %v5920_v50  ;;  %v1982_v50 = vld [vmem:[%s6962_s7] sm:$0xff] }
 0x44a   :  { %4818 = vmatprep.subr.bf16.mxu0 %v5603_v1 }
 0x44c   :  { %4763 = vmatmul.mubr.msk.bf16.vlgmr.msra.gmra.mrb[20].mxu0 %vm238_vm2, %v1589_v43 }
 0x44d   :  { %4820 = vmatprep.mubr.msk.bf16.mxu0 %vm5604_vm0, %v5603_v1 }
 0x51f   :  { %v1627_v45 = vpop.f32.mrb[20].mxu0 }
 0x520   :  { %v1638_v46 = vmul.f32 0.2, %v1627_v45  ;;  %v4764_v47 = vpop.f32.mrb[21].mxu0  ;;  %vm1636_vm6 = vcmp.ge.f32.partialorder %v1627_v45, 0.0 }
 0x521   :  { %v1630_v48 = vpop.f32.mrb[22].mxu0 }
 0x522   :  { %vm1637_vm7 = vcmp.ge.f32.partialorder %v1630_v48, 0.0  ;;  %v1639_v19 = vmul.f32 0.2, %v1630_v48  ;;  %v4765_v20 = vpop.f32.mrb[23].mxu0  ;;  %v1640_v49 = vsel %vm1636_vm6, %v1627_v45, %v1638_v46 }
 0x524   :  { %v1641_v29 = vsel %vm1637_vm7, %v1630_v48, %v1639_v19 }
 0x525   :  { %v1642_v30 = vpack.c.bf16 %v1641_v29, %v1640_v49 }
 0x527   :  { %4767 = vmatpush3.bf16.msra.mxu1 %v1642_v30  ;;  %4819 = vmatpush3.bf16.msra.mxu0 %v1642_v30 }
 0x528   :  { %4772 = vmatprep.subr.bf16.mxu1 %v5603_v1  ;;  %4844 = vmatprep.subr.bf16.mxu0 %v5603_v1 }
 0x52a   :  { %4769 = vmatmul.mubr.msk.bf16.vlgmr.msra.gmra.mrb[36].mxu1 %vm667_vm5, %v5931_v60  ;;  %4821 = vmatmul.mubr.msk.bf16.vlgmr.msra.gmra.mrb[24].mxu0 %vm667_vm5, %v5936_v61  ;;  %v1983_v60 = vld [vmem:[%s6962_s7 + $0x8] sm:$0xff]  ;;  %v1984_v61 = vld [vmem:[%s6962_s7 + $0x10] sm:$0xff] }
 0x52b   :  { %4773 = vmatpush3.bf16.msra.mxu1 %v1642_v30  ;;  %4845 = vmatpush3.bf16.msra.mxu0 %v1642_v30 }
 0x52c   :  { %4774 = vmatprep.mubr.msk.bf16.mxu1 %vm5604_vm0, %v5603_v1  ;;  %4846 = vmatprep.mubr.msk.bf16.mxu0 %vm5604_vm0, %v5603_v1 }
 0x52d   :  { %4778 = vmatprep.subr.bf16.mxu1 %v5603_v1 }
 0x532   :  { %4775 = vmatmul.mubr.msk.bf16.vlgmr.msra.gmra.mrb[40].mxu1 %vm667_vm5, %v5953_v62  ;;  %4847 = vmatmul.mubr.msk.bf16.vlgmr.msra.gmra.mrb[28].mxu0 %vm667_vm5, %v5958_v63  ;;  %v5605_v62 = vmov 0.0|0.0   ;;  %v6357_v63 = vpack.c.bf16 %v1983_v60, %v1982_v50 }
 0x533   :  { %4779 = vmatpush3.bf16.msra.mxu1 %v5963_v0  ;;  %4794 = vmatprep.mubr.msk.bf16.mxu1 %vm5604_vm0, %v5603_v1  ;;  %v1985_v0 = vld [vmem:[%s6962_s7 + $0x18] sm:$0xff] }
 0x534   :  { %4780 = vmatprep.subr.bf16.mxu1 %v5603_v1  ;;  %4902 = vmatprep.mubr.msk.f32.mxu0 %vm5604_vm0, %v5603_v1 }
 0x535   :  { %5272 = vmatprep.subr.bf16.mxu0 %v5605_v62 }
 0x536   :  { %5274 = vmatpush3.bf16.msra.mxu0 %v6357_v63 }
 0x537   :  { %4781 = vmatpush3.bf16.msra.mxu1 %v5973_v2  ;;  %v6363_v2 = vpack.c.bf16 %v1985_v0, %v1984_v61  ;;  %5275 = vmatprep.subr.bf16.mxu0 %v5605_v62  ;;  %v2070_v0 = vld [vmem:[%s6963_s8] sm:$0xff] }
 0x538   :  { %4782 = vmatprep.subr.bf16.mxu1 %v5603_v1 }
 0x53a   :  { %5277 = vmatpush3.bf16.msra.mxu0 %v6363_v2 }
 0x53b   :  { %4783 = vmatpush3.bf16.msra.mxu1 %v5984_v13  ;;  %v1986_v13 = vld [vmem:[%s6962_s7 + $0x20] sm:$0xff]  ;;  %5278 = vmatprep.subr.bf16.mxu0 %v5605_v62 }
 0x53c   :  { %4784 = vmatprep.subr.bf16.mxu1 %v5603_v1 }
 0x53f   :  { %4785 = vmatpush3.bf16.msra.mxu1 %v5991_v14  ;;  %v1987_v14 = vld [vmem:[%s6962_s7 + $0x28] sm:$0xff] }
 0x540   :  { %4786 = vmatprep.subr.bf16.mxu1 %v5603_v1 }
 0x543   :  { %4787 = vmatpush3.bf16.msra.mxu1 %v5998_v15  ;;  %v6373_v15 = vpack.c.bf16 %v1987_v14, %v1986_v13  ;;  %v2071_v13 = vld [vmem:[%s6963_s8 + $0x8] sm:$0xff] }
 0x544   :  { %4788 = vmatprep.subr.bf16.mxu1 %v5603_v1  ;;  %v5297_v14 = vpack.c.bf16 %v2071_v13, %v2070_v0  ;;  %v6595_v13 = vld [vmem:[%s6960_s5 + $0x6] sm:$0x3] }
 0x545   :  { %5280 = vmatpush3.bf16.msra.mxu0 %v6373_v15 }
 0x546   :  { %5281 = vmatprep.subr.bf16.mxu0 %v5605_v62 }
 0x547   :  { %4789 = vmatpush3.bf16.msra.mxu1 %v6005_v16  ;;  %v1988_v16 = vld [vmem:[%s6962_s7 + $0x30] sm:$0xff] }
 0x548   :  { %4790 = vmatprep.subr.bf16.mxu1 %v5603_v1 }
 0x54b   :  { %4791 = vmatpush3.bf16.msra.mxu1 %v6013_v17  ;;  %v1989_v17 = vld [vmem:[%s6962_s7 + $0x38] sm:$0xff] }
 0x54c   :  { %4792 = vmatprep.subr.bf16.mxu1 %v5603_v1 }
 0x54f   :  { %4793 = vmatpush3.bf16.msra.mxu1 %v6019_v18  ;;  %v6383_v18 = vpack.c.bf16 %v1989_v17, %v1988_v16 }
 0x550   :  { %4798 = vmatprep.subr.bf16.mxu1 %v5603_v1 }
 0x551   :  { %5283 = vmatpush3.bf16.msra.mxu0 %v6383_v18 }
 0x552   :  { %5284 = vmatprep.subr.bf16.mxu0 %v5605_v62 }
 0x5fd   :  { %v1677_v32 = vpop.f32.mrb[36].mxu1  ;;  %v1839_v23 = vpop.f32.mrb[24].mxu0 }
 0x5fe   :  { %v4770_v26 = vpop.f32.mrb[37].mxu1  ;;  %v4822_v33 = vpop.f32.mrb[25].mxu0 }
 0x5ff   :  { %v1680_v57 = vpop.f32.mrb[38].mxu1  ;;  %v1842_v35 = vpop.f32.mrb[26].mxu0 }
 0x600   :  { %v4771_v9 = vpop.f32.mrb[39].mxu1  ;;  %v4823_v21 = vpop.f32.mrb[27].mxu0 }
 0x605   :  { %v1718_v24 = vpop.f32.mrb[40].mxu1  ;;  %v6388_v27 = vpop.f32.mrb[28].mxu0 }
 0x606   :  { %v1724_v31 = vpack.c.bf16 %v1718_v24, %v1718_v24  ;;  %v4776_v34 = vpop.f32.mrb[41].mxu1  ;;  %v4848_v38 = vpop.f32.mrb[29].mxu0 }
 0x607   :  { %v1721_v39 = vpop.f32.mrb[42].mxu1  ;;  %v1924_v40 = vpop.f32.mrb[30].mxu0 }
 0x608   :  { %4795 = vmatmul.mubr.bf16.vlgmr.msra.gmra.mrb[44].mxu1 %v1724_v31  ;;  %v4777_v41 = vpop.f32.mrb[43].mxu1  ;;  %v4849_v42 = vpop.f32.mrb[31].mxu0 }
 0x609   :  { %4799 = vmatpush3.bf16.msra.mxu1 %v6067_v11  ;;  %4814 = vmatprep.mubr.msk.bf16.mxu1 %vm5604_vm0, %v5603_v1  ;;  %v1683_v11 = vpack.c.bf16 %v1677_v32, %v1677_v32 }
 0x60a   :  { %4800 = vmatprep.subr.bf16.mxu1 %v5603_v1 }
 0x60d   :  { %4801 = vmatpush3.bf16.msra.mxu1 %v6075_v36  ;;  %v1845_v36 = vpack.c.bf16 %v1839_v23, %v1839_v23 }
 0x60e   :  { %4802 = vmatprep.subr.bf16.mxu1 %v5603_v1 }
 0x611   :  { %4803 = vmatpush3.bf16.msra.mxu1 %v6084_v37  ;;  %v6981_v37 = vld [vmem:[#allocation5_spill] sm:$0xff] }
 0x612   :  { %4804 = vmatprep.subr.bf16.mxu1 %v5603_v1 }
 0x615   :  { %4805 = vmatpush3.bf16.msra.mxu1 %v6091_v51  ;;  %v6982_v51 = vld [vmem:[#allocation6_spill] sm:$0xff] }
 0x616   :  { %4806 = vmatprep.subr.bf16.mxu1 %v5603_v1 }
 0x619   :  { %4807 = vmatpush3.bf16.msra.mxu1 %v6098_v52  ;;  %v1927_v52 = vpack.c.bf16 %v6388_v27, %v6388_v27 }
 0x61a   :  { %4808 = vmatprep.subr.bf16.mxu1 %v5603_v1 }
 0x61d   :  { %4809 = vmatpush3.bf16.msra.mxu1 %v6105_v53  ;;  %v6983_v53 = vld [vmem:[#allocation7_spill] sm:$0xff] }
 0x61e   :  { %4810 = vmatprep.subr.bf16.mxu1 %v5603_v1 }
 0x621   :  { %4811 = vmatpush3.bf16.msra.mxu1 %v6112_v54  ;;  %v1990_v54 = vld [vmem:[%s6962_s7 + $0x40] sm:$0xff] }
 0x622   :  { %4812 = vmatprep.subr.bf16.mxu1 %v5603_v1 }
 0x625   :  { %4813 = vmatpush3.bf16.msra.mxu1 %v6119_v55  ;;  %v1991_v55 = vld [vmem:[%s6962_s7 + $0x48] sm:$0xff] }
 0x626   :  { %4824 = vmatprep.subr.bf16.mxu1 %v5603_v1 }
 0x628   :  { %4815 = vmatmul.mubr.bf16.vlgmr.msra.gmra.mrb[44].mxu1 %v1683_v11 }
 0x629   :  { %4825 = vmatpush3.bf16.msra.mxu1 %v6126_v56  ;;  %4840 = vmatprep.mubr.msk.bf16.mxu1 %vm5604_vm0, %v5603_v1  ;;  %v5285_v56 = vpack.c.bf16 %v1991_v55, %v1990_v54  ;;  %v2237_v54 = vld [vmem:[%s6964_s9] sm:$0x1] }
 0x62a   :  { %4826 = vmatprep.subr.bf16.mxu1 %v5603_v1 }
 0x62b   :  { %5286 = vmatpush3.bf16.msra.mxu0 %v5285_v56 }
 0x62c   :  { %5287 = vmatprep.subr.bf16.mxu0 %v5605_v62 }
 0x62d   :  { %4827 = vmatpush3.bf16.msra.mxu1 %v6133_v58  ;;  %v1992_v58 = vld [vmem:[%s6962_s7 + $0x50] sm:$0xff] }
 0x62e   :  { %4828 = vmatprep.subr.bf16.mxu1 %v5603_v1 }
 0x631   :  { %4829 = vmatpush3.bf16.msra.mxu1 %v6142_v59  ;;  %v1993_v59 = vld [vmem:[%s6962_s7 + $0x58] sm:$0xff] }
 0x632   :  { %4830 = vmatprep.subr.bf16.mxu1 %v5603_v1 }
 0x635   :  { %4831 = vmatpush3.bf16.msra.mxu1 %v6149_v3  ;;  %v5288_v3 = vpack.c.bf16 %v1993_v59, %v1992_v58  ;;  %v2314_v58 = vld [vmem:[%s6965_s10] sm:$0x1] }
 0x636   :  { %4832 = vmatprep.subr.bf16.mxu1 %v5603_v1  ;;  %v6525_v59 = vld [vmem:[%s6961_s6 + $0x40] sm:$0xff]  }
 0x637   :  { %5289 = vmatpush3.bf16.msra.mxu0 %v5288_v3 }
 0x638   :  { %5290 = vmatprep.subr.bf16.mxu0 %v5605_v62 }
 0x639   :  { %4833 = vmatpush3.bf16.msra.mxu1 %v6156_v5  ;;  %v1994_v5 = vld [vmem:[%s6962_s7 + $0x60] sm:$0xff] }
 0x63a   :  { %4834 = vmatprep.subr.bf16.mxu1 %v5603_v1 }
 0x63d   :  { %4835 = vmatpush3.bf16.msra.mxu1 %v6163_v7  ;;  %v1995_v7 = vld [vmem:[%s6962_s7 + $0x68] sm:$0xff] }
 0x63e   :  { %4836 = vmatprep.subr.bf16.mxu1 %v5603_v1 }
 0x641   :  { %4837 = vmatpush3.bf16.msra.mxu1 %v6170_v6  ;;  %v5291_v6 = vpack.c.bf16 %v1995_v7, %v1994_v5  ;;  %v6538_v5 = vld [vmem:[%s6961_s6 + $0x50] sm:$0xff]   ;;  %v6545_v7 = vld [vmem:[%s6961_s6 + $0x58] sm:$0xff]  }
 0x642   :  { %4838 = vmatprep.subr.bf16.mxu1 %v5603_v1 }
 0x643   :  { %5292 = vmatpush3.bf16.msra.mxu0 %v5291_v6 }
 0x644   :  { %5293 = vmatprep.subr.bf16.mxu0 %v5605_v62 }
 0x645   :  { %4839 = vmatpush3.bf16.msra.mxu1 %v6177_v22  ;;  %v1996_v22 = vld [vmem:[%s6962_s7 + $0x70] sm:$0xff] }
 0x646   :  { %4850 = vmatprep.subr.bf16.mxu1 %v5603_v1 }
 0x648   :  { %4841 = vmatmul.mubr.bf16.vlgmr.msra.gmra.mrb[44].mxu1 %v1845_v36 }
 0x649   :  { %4851 = vmatpush3.bf16.msra.mxu1 %v6186_v25  ;;  %4866 = vmatprep.mubr.msk.bf16.mxu1 %vm5604_vm0, %v5603_v1  ;;  %v1997_v25 = vld [vmem:[%s6962_s7 + $0x78] sm:$0xff] }
 0x64a   :  { %4852 = vmatprep.subr.bf16.mxu1 %v5603_v1 }
 0x64d   :  { %4853 = vmatpush3.bf16.msra.mxu1 %v6193_v10  ;;  %v5294_v10 = vpack.c.bf16 %v1997_v25, %v1996_v22  ;;  %v6559_v22 = vld [vmem:[%s6961_s6 + $0x68] sm:$0xff]  }
 0x64e   :  { %4854 = vmatprep.subr.bf16.mxu1 %v5603_v1 }
 0x64f   :  { %5295 = vmatpush3.bf16.msra.mxu0 %v5294_v10 }
 0x650   :  { %5296 = vmatprep.subr.bf16.mxu0 %v5605_v62 }
 0x651   :  { %4855 = vmatpush3.bf16.msra.mxu1 %v6202_v4  ;;  %v1969_v4 = vrot.slane %v6292_v8, 4 }
 0x652   :  { %4856 = vmatprep.subr.bf16.mxu1 %v5603_v1 }
 0x655   :  { %4857 = vmatpush3.bf16.msra.mxu1 %v6209_v12  ;;  %v1970_v12 = vadd.f32 %v1969_v4, %v6292_v8 }
 0x656   :  { %4858 = vmatprep.subr.bf16.mxu1 %v5603_v1 }
 0x659   :  { %4859 = vmatpush3.bf16.msra.mxu1 %v6216_v28  ;;  %v1971_v28 = vrot.slane %v1970_v12, 2 }
 0x65a   :  { %4860 = vmatprep.subr.bf16.mxu1 %v5603_v1 }
 0x65b   :  { %v1972_v47 = vadd.f32 %v1971_v28, %v1970_v12 }
 0x65d   :  { %4861 = vmatpush3.bf16.msra.mxu1 %v6981_v37  ;;  %v1973_v49 = vrot.slane %v1972_v47, 1 }
 0x65e   :  { %4862 = vmatprep.subr.bf16.mxu1 %v5603_v1 }
 0x65f   :  { %v1974_v50 = vadd.f32 %v1973_v49, %v1972_v47 }
 0x661   :  { %4863 = vmatpush3.bf16.msra.mxu1 %v6982_v51 }
 0x662   :  { %4864 = vmatprep.subr.bf16.mxu1 %v5603_v1 }
 0x665   :  { %4865 = vmatpush3.bf16.msra.mxu1 %v6983_v53 }
 0x666   :  { %4973 = vmatprep.subr.bf16.mxu1 %v5603_v1 }
 0x668   :  { %4867 = vmatmul.mubr.bf16.vlgmr.msra.gmra.mrb[44].mxu1 %v1927_v52 }
 0x669   :  { %4989 = vmatprep.mubr.msk.bf16.mxu1 %vm5604_vm0, %v5603_v1  ;;  %4974 = vmatpush3.bf16.msra.mxu1 %v6525_v59 }
 0x66a   :  { %4975 = vmatprep.subr.bf16.mxu1 %v5603_v1 }
 0x73b   :  { %v1962_v43 = vpop.f32.mrb[44].mxu1 }
 0x73c   :  { %v1975_v44 = vrot.slane %v1962_v43, 4  ;;  %v4868_v45 = vpop.f32.mrb[45].mxu1 }
 0x73d   :  { %v1965_v46 = vpop.f32.mrb[46].mxu1 }
 0x73e   :  { %v1976_v48 = vadd.f32 %v1975_v44, %v1962_v43  ;;  %v4869_v19 = vpop.f32.mrb[47].mxu1 }
 0x740   :  { %v1977_v20 = vrot.slane %v1976_v48, 2 }
 0x742   :  { %v1978_v29 = vadd.f32 %v1977_v20, %v1976_v48 }
 0x744   :  { %v1979_v30 = vrot.slane %v1978_v29, 1 }
 0x746   :  { %v1980_v60 = vadd.f32 %v1979_v30, %v1978_v29  ;;  %v2407_v29 = vld [vmem:[%s6960_s5] sm:$0x3]  ;;  %v4029_v30 = vld [vmem:[%s6960_s5 + $0x2] sm:$0x3] }
 0x748   :  { %v1981_v61 = vadd.f32 %v1980_v60, %v1974_v50  ;;  %v6585_v60 = vld [vmem:[%s6960_s5 + $0x4] sm:$0x3] }
 0x74a   :  { %4903 = vmatmul.mubr.f32.vlgmr.msra.gmra.mrb[32].mxu0 %v1981_v61 }
 0x74b   :  { %4909 = vmatprep.mubr.msk.f32.mxu0 %vm5604_vm0, %v5603_v1  ;;  %5298 = vmatpush3.bf16.msra.mxu0 %v5297_v14 }
 0x74c   :  { %5299 = vmatprep.subr.bf16.mxu0 %v5605_v62 }
 0x81d   :  { %v2064_v16 = vpop.f32.mrb[32].mxu0 }
 0x81e   :  { %v2069_v17 = vmul.f32 0.0078125, %v2064_v16  ;;  %v4904_v32 = vpop.f32.mrb[33].mxu0  ;;  %v5541_v16 = vld [vmem:[%s6961_s6 + $0x70] sm:$0xff]  }
 0x820   :  { %4910 = vmatmul.mubr.msk.f32.vlgmr.msra.gmra.mrb[34].mxu0 %vm667_vm5, %v2069_v17  ;;  %v5542_v17 = vld [vmem:[%s6961_s6 + $0x78] sm:$0xff]  }
 0x821   :  { %5301 = vmatpush3.bf16.msra.mxu0 %v6357_v63  ;;  %4944 = vmatprep.mubr.msk.f32.mxu0 %vm5604_vm0, %v5603_v1  ;;  %v2145_v63 = vlaneseq }
 0x822   :  { %5302 = vmatprep.subr.bf16.mxu0 %v5605_v62 }
 0x825   :  { %5304 = vmatpush3.bf16.msra.mxu0 %v6363_v2  ;;  %v2146_v2 = vshrl.u32 %v2145_v63, 7 }
 0x826   :  { %5305 = vmatprep.subr.bf16.mxu0 %v5605_v62 }
 0x829   :  { %5307 = vmatpush3.bf16.msra.mxu0 %v6373_v15  ;;  %v6502_v15 = vsub.s32 0, %v2146_v2 }
 0x82a   :  { %5308 = vmatprep.subr.bf16.mxu0 %v5605_v62 }
 0x82d   :  { %5310 = vmatpush3.bf16.msra.mxu0 %v6383_v18 }
 0x82e   :  { %5311 = vmatprep.subr.bf16.mxu0 %v5605_v62 }
 0x831   :  { %5313 = vmatpush3.bf16.msra.mxu0 %v5285_v56 }
 0x832   :  { %5314 = vmatprep.subr.bf16.mxu0 %v5605_v62 }
 0x835   :  { %5316 = vmatpush3.bf16.msra.mxu0 %v5288_v3  ;;  %v6531_v3 = vld [vmem:[%s6961_s6 + $0x48] sm:$0xff]  }
 0x836   :  { %5317 = vmatprep.subr.bf16.mxu0 %v5605_v62  ;;  %4976 = vmatpush3.bf16.msra.mxu1 %v6531_v3 }
 0x837   :  { %4977 = vmatprep.subr.bf16.mxu1 %v5603_v1 }
 0x839   :  { %5319 = vmatpush3.bf16.msra.mxu0 %v5291_v6  ;;  %v6552_v6 = vld [vmem:[%s6961_s6 + $0x60] sm:$0xff]  }
 0x83a   :  { %5320 = vmatprep.subr.bf16.mxu0 %v5605_v62  ;;  %4978 = vmatpush3.bf16.msra.mxu1 %v6538_v5 }
 0x83b   :  { %4979 = vmatprep.subr.bf16.mxu1 %v5603_v1 }
 0x83d   :  { %5322 = vmatpush3.bf16.msra.mxu0 %v5294_v10 }
 0x83e   :  { %5323 = vmatprep.subr.bf16.mxu0 %v5605_v62  ;;  %4980 = vmatpush3.bf16.msra.mxu1 %v6545_v7 }
 0x83f   :  { %4981 = vmatprep.subr.bf16.mxu1 %v5603_v1 }
 0x842   :  { %4982 = vmatpush3.bf16.msra.mxu1 %v6552_v6 }
 0x843   :  { %4983 = vmatprep.subr.bf16.mxu1 %v5603_v1 }
 0x846   :  { %4984 = vmatpush3.bf16.msra.mxu1 %v6559_v22 }
 0x847   :  { %4985 = vmatprep.subr.bf16.mxu1 %v5603_v1 }
 0x84a   :  { %4986 = vmatpush3.bf16.msra.mxu1 %v5541_v16 }
 0x84b   :  { %4987 = vmatprep.subr.bf16.mxu1 %v5603_v1 }
 0x84e   :  { %4988 = vmatpush3.bf16.msra.mxu1 %v5542_v17 }
 0x84f   :  { %4993 = vmatprep.subr.bf16.mxu1 %v5603_v1 }
 0x8f3   :  { %v2141_v23 = vpop.f32.mrb[34].mxu0 }
 0x8f4   :  { %v2148_v18 = vrot.slane %v2141_v23, %v6502_v15  ;;  %v4911_v26 = vpop.f32.mrb[35].mxu0 }
 0x8f5   :  { %v5543_v26 = vld [vmem:[%s6961_s6] sm:$0xff]  }
 0x8f6   :  { %v2149_v33 = vsub.f32 %v6292_v8, %v2148_v18  ;;  %v2157_v57 = vsub.f32 %v1962_v43, %v2148_v18 }
 0x8f8   :  { %v2150_v35 = vmul.f32 %v2149_v33, %v2149_v33  ;;  %v2158_v9 = vmul.f32 %v2157_v57, %v2157_v57 }
 0x8fa   :  { %v2151_v21 = vrot.slane %v2150_v35, 4  ;;  %v2159_v24 = vrot.slane %v2158_v9, 4 }
 0x8fc   :  { %v2152_v27 = vadd.f32 %v2151_v21, %v2150_v35  ;;  %v2160_v31 = vadd.f32 %v2159_v24, %v2158_v9  ;;  %v5544_v21 = vld [vmem:[%s6961_s6 + $0x8] sm:$0xff]  }
 0x8fe   :  { %v2153_v34 = vrot.slane %v2152_v27, 2  ;;  %v2161_v38 = vrot.slane %v2160_v31, 2 }
 0x900   :  { %v2154_v39 = vadd.f32 %v2153_v34, %v2152_v27  ;;  %v2162_v40 = vadd.f32 %v2161_v38, %v2160_v31  ;;  %v5545_v27 = vld [vmem:[%s6961_s6 + $0x10] sm:$0xff]  }
 0x902   :  { %v2155_v41 = vrot.slane %v2154_v39, 1  ;;  %v2163_v42 = vrot.slane %v2162_v40, 1 }
 0x904   :  { %v2156_v11 = vadd.f32 %v2155_v41, %v2154_v39  ;;  %v2164_v36 = vadd.f32 %v2163_v42, %v2162_v40  ;;  %v5546_v39 = vld [vmem:[%s6961_s6 + $0x18] sm:$0xff]   ;;  %v5547_v41 = vld [vmem:[%s6961_s6 + $0x20] sm:$0xff]  }
 0x906   :  { %v2165_v37 = vadd.f32 %v2164_v36, %v2156_v11 }
 0x908   :  { %4945 = vmatmul.mubr.f32.vlgmr.msra.gmra.mrb[36].mxu0 %v2165_v37  ;;  %v5548_v37 = vld [vmem:[%s6961_s6 + $0x28] sm:$0xff]  }
 0x909   :  { %5325 = vmatpush3.bf16.msra.mxu0 %v5297_v14  ;;  %4951 = vmatprep.mubr.msk.f32.mxu0 %vm5604_vm0, %v5603_v1 }
 0x90a   :  { %5326 = vmatprep.subr.bf16.mxu0 %v5605_v62 }
 0x9db   :  { %v2232_v8 = vpop.f32.mrb[36].mxu0 }
 0x9dc   :  { %v2236_v51 = vmul.f32 0.0078125, %v2232_v8  ;;  %v4946_v52 = vpop.f32.mrb[37].mxu0 }
 0x9de   :  { %v2238_v53 = vadd.f32 1e-05, %v2236_v51  ;;  %v5549_v51 = vld [vmem:[%s6961_s6 + $0x30] sm:$0xff]  }
 0x9e0   :  { %5567 = vrsqrt.f32 %v2238_v53 }
 0x9ea   :  { %v5568_v55 = vpop.eup %5567 }
 0x9eb   :  { %v2240_v56 = vmul.f32 %v5568_v55, %v2237_v54  ;;  %v5550_v55 = vld [vmem:[%s6961_s6 + $0x38] sm:$0xff]  }
 0x9ed   :  { %4952 = vmatmul.mubr.msk.f32.vlgmr.msra.gmra.mrb[38].mxu0 %vm667_vm5, %v2240_v56 }
 0x9ee   :  { %5328 = vmatpush3.bf16.msra.mxu0 %v5297_v14  ;;  %4958 = vmatprep.mubr.msk.f32.mxu0 %vm5604_vm0, %v5603_v1 }
 0x9ef   :  { %4961 = vmatprep.subr.bf16.mxu0 %v5603_v1 }
 0x9f1   :  { %4959 = vmatmul.mubr.msk.f32.vlgmr.msra.gmra.mrb[40].mxu0 %vm667_vm5, %v2314_v58  ;;  %v6678_v58 = vld [vmem:[%s6961_s6 + $0x80] sm:$0xff]  }
 0x9f2   :  { %4963 = vmatprep.mubr.msk.bf16.mxu0 %vm5604_vm0, %v5603_v1 }
 0xac0   :  { %v2310_v25 = vpop.f32.mrb[38].mxu0 }
 0xac1   :  { %v2391_v10 = vrot.slane %v2310_v25, %v6502_v15  ;;  %v4953_v4 = vpop.f32.mrb[39].mxu0  ;;  %v5553_v25 = vld [vmem:[%s6961_s6 + $0x90] sm:$0xff]  }
 0xac2   :  { %v5555_v4 = vld [vmem:[%s6961_s6 + $0xa0] sm:$0xff]  }
 0xac3   :  { %v2392_v28 = vmul.f32 %v2391_v10, %v2149_v33  ;;  %v2401_v43 = vmul.f32 %v2391_v10, %v2157_v57  ;;  %v5554_v10 = vld [vmem:[%s6961_s6 + $0x98] sm:$0xff]  }
 0xac4   :  { %v2384_v12 = vpop.f32.mrb[40].mxu0 }
 0xac5   :  { %v2396_v44 = vrot.slane %v2384_v12, %v6502_v15  ;;  %v4960_v45 = vpop.f32.mrb[41].mxu0  ;;  %v5556_v12 = vld [vmem:[%s6961_s6 + $0xa8] sm:$0xff]  }
 0xac7   :  { %v2397_v46 = vadd.f32 %v2396_v44, %v2392_v28  ;;  %v2402_v47 = vadd.f32 %v2401_v43, %v2396_v44  ;;  %v5557_v28 = vld [vmem:[%s6961_s6 + $0xb0] sm:$0xff]   ;;  %v5558_v43 = vld [vmem:[%s6961_s6 + $0xb8] sm:$0xff]   ;;  %v6724_v44 = vld [vmem:[%s6961_s6 + $0xc0] sm:$0xff]  }
 0xac9   :  { %vm2398_vm8 = vcmp.ge.f32.partialorder %v2397_v46, 0.0  ;;  %v2399_v48 = vmul.f32 0.2, %v2397_v46  ;;  %v2404_v50 = vmul.f32 0.2, %v2402_v47  ;;  %vm2403_vm11 = vcmp.ge.f32.partialorder %v2402_v47, 0.0 }
 0xacb   :  { %v2400_v19 = vsel %vm2398_vm8, %v2397_v46, %v2399_v48  ;;  %v2405_v61 = vsel %vm2403_vm11, %v2402_v47, %v2404_v50  ;;  %v6737_v47 = vld [vmem:[%s6961_s6 + $0xc8] sm:$0xff]   ;;  %v6749_v48 = vld [vmem:[%s6961_s6 + $0xd0] sm:$0xff]  }
 0xacc   :  { %v2406_v20 = vpack.c.bf16 %v2400_v19, %v2400_v19  ;;  %v3016_v0 = vpack.c.bf16 %v2405_v61, %v2405_v61  ;;  %v6758_v19 = vld [vmem:[%s6961_s6 + $0xd8] sm:$0xff]   ;;  %v3362_v61 = vld [vmem:[%s6966_s11 + $0x8] sm:$0xff] }
 0xace   :  { %v2414_v49 = vsel %vm2412_vm9, %v2406_v20, 0  ;;  %v6600_v14 = vsel %vm2412_vm9, %v3016_v0, 0  ;;  %v6769_v20 = vld [vmem:[%s6961_s6 + $0xe0] sm:$0xff]   ;;  %v3363_v0 = vld [vmem:[%s6966_s11 + $0x10] sm:$0xff] }
 0xacf   :  { %4962 = vmatpush3.bf16.msra.mxu0 %v2414_v49 }
 0xad0   :  { %4967 = vmatprep.subr.bf16.mxu0 %v5603_v1 }
 0xad2   :  { %4964 = vmatmul.mubr.msk.bf16.vlgmr.msra.gmra.mrb[44].mxu0 %vm2408_vm10, %v2407_v29 }
 0xad3   :  { %4968 = vmatpush3.bf16.msra.mxu0 %v2414_v49  ;;  %4969 = vmatprep.mubr.msk.bf16.mxu0 %vm5604_vm0, %v5603_v1 }
 0xad4   :  { %5013 = vmatprep.subr.bf16.mxu0 %v5603_v1 }
 0xada   :  { %4970 = vmatmul.mubr.msk.bf16.vlgmr.msra.gmra.mrb[48].mxu0 %vm2408_vm10, %v4029_v30 }
 0xadb   :  { %5014 = vmatpush3.bf16.msra.mxu0 %v2414_v49  ;;  %5015 = vmatprep.mubr.msk.bf16.mxu0 %vm5604_vm0, %v5603_v1 }
 0xadc   :  { %5039 = vmatprep.subr.bf16.mxu0 %v5603_v1 }
 0xae2   :  { %5016 = vmatmul.mubr.msk.bf16.vlgmr.msra.gmra.mrb[52].mxu0 %vm2408_vm10, %v6585_v60 }
 0xae3   :  { %5040 = vmatpush3.bf16.msra.mxu0 %v2414_v49  ;;  %5041 = vmatprep.mubr.msk.bf16.mxu0 %vm5604_vm0, %v5603_v1  ;;  %v6777_v49 = vld [vmem:[%s6961_s6 + $0xe8] sm:$0xff]  }
 0xae4   :  { %5065 = vmatprep.subr.bf16.mxu0 %v5603_v1 }
 0xaea   :  { %5042 = vmatmul.mubr.msk.bf16.vlgmr.msra.gmra.mrb[56].mxu0 %vm2408_vm10, %v6595_v13 }
 0xaeb   :  { %5066 = vmatpush3.bf16.msra.mxu0 %v6600_v14  ;;  %5067 = vmatprep.mubr.msk.bf16.mxu0 %vm5604_vm0, %v5603_v1 }
 0xaec   :  { %5071 = vmatprep.subr.bf16.mxu0 %v5603_v1 }
 0xaf2   :  { %5068 = vmatmul.mubr.msk.bf16.vlgmr.msra.gmra.mrb[60].mxu0 %vm2408_vm10, %v2407_v29  ;;  %v6785_v29 = vld [vmem:[%s6961_s6 + $0xf0] sm:$0xff]  }
 0xaf3   :  { %5072 = vmatpush3.bf16.msra.mxu0 %v6600_v14  ;;  %5073 = vmatprep.mubr.msk.bf16.mxu0 %vm5604_vm0, %v5603_v1 }
 0xaf4   :  { %5077 = vmatprep.subr.bf16.mxu0 %v5603_v1 }
 0xafa   :  { %5074 = vmatmul.mubr.msk.bf16.vlgmr.msra.gmra.mrb[64].mxu0 %vm2408_vm10, %v4029_v30  ;;  %v6793_v30 = vld [vmem:[%s6961_s6 + $0xf8] sm:$0xff]  }
 0xafb   :  { %5078 = vmatpush3.bf16.msra.mxu0 %v6525_v59  ;;  %5093 = vmatprep.mubr.msk.bf16.mxu0 %vm5604_vm0, %v5603_v1 }
 0xafc   :  { %5079 = vmatprep.subr.bf16.mxu0 %v5603_v1 }
 0xaff   :  { %5080 = vmatpush3.bf16.msra.mxu0 %v6531_v3 }
 0xb00   :  { %5081 = vmatprep.subr.bf16.mxu0 %v5603_v1 }
 0xb03   :  { %5082 = vmatpush3.bf16.msra.mxu0 %v6538_v5 }
 0xb04   :  { %5083 = vmatprep.subr.bf16.mxu0 %v5603_v1 }
 0xb07   :  { %5084 = vmatpush3.bf16.msra.mxu0 %v6545_v7 }
 0xb08   :  { %5085 = vmatprep.subr.bf16.mxu0 %v5603_v1 }
 0xb0b   :  { %5086 = vmatpush3.bf16.msra.mxu0 %v6552_v6 }
 0xb0c   :  { %5087 = vmatprep.subr.bf16.mxu0 %v5603_v1 }
 0xb0f   :  { %5088 = vmatpush3.bf16.msra.mxu0 %v6559_v22  ;;  %v5552_v22 = vld [vmem:[%s6961_s6 + $0x88] sm:$0xff]  }
 0xb10   :  { %5089 = vmatprep.subr.bf16.mxu0 %v5603_v1 }
 0xb13   :  { %5090 = vmatpush3.bf16.msra.mxu0 %v5541_v16 }
 0xb14   :  { %5091 = vmatprep.subr.bf16.mxu0 %v5603_v1 }
 0xb17   :  { %5092 = vmatpush3.bf16.msra.mxu0 %v5542_v17  ;;  %v3365_v17 = vld [vmem:[%s6966_s11 + $0x20] sm:$0xff] }
 0xb18   :  { %5097 = vmatprep.subr.bf16.mxu0 %v5603_v1 }
 0xba5   :  { %v2450_v32 = vpop.f32.mrb[44].mxu0 }
 0xba6   :  { %v4965_v63 = vpop.f32.mrb[45].mxu0  ;;  %v2456_v59 = vpack.c.bf16 %v2450_v32, %v2450_v32  ;;  %v3366_v32 = vld [vmem:[%s6966_s11 + $0x28] sm:$0xff] }
 0xba7   :  { %v2453_v2 = vpop.f32.mrb[46].mxu0  ;;  %v5336_v63 = vpack.c.bf16 %v3366_v32, %v3365_v17 }
 0xba8   :  { %v4966_v23 = vpop.f32.mrb[47].mxu0  ;;  %v3367_v2 = vld [vmem:[%s6966_s11 + $0x30] sm:$0xff] }
 0xba9   :  { %v3368_v23 = vld [vmem:[%s6966_s11 + $0x38] sm:$0xff] }
 0xbad   :  { %v2512_v18 = vpop.f32.mrb[48].mxu0 }
 0xbae   :  { %v2518_v33 = vpack.c.bf16 %v2512_v18, %v2512_v18  ;;  %v4971_v57 = vpop.f32.mrb[49].mxu0  ;;  %v5339_v18 = vpack.c.bf16 %v3368_v23, %v3367_v2 }
 0xbaf   :  { %v2515_v35 = vpop.f32.mrb[50].mxu0 }
 0xbb0   :  { %4990 = vmatmul.mubr.bf16.vlgmr.msra.gmra.mrb[48].mxu1 %v2518_v33  ;;  %v4972_v9 = vpop.f32.mrb[51].mxu0 }
 0xbb1   :  { %4994 = vmatpush3.bf16.msra.mxu1 %v5543_v26  ;;  %5009 = vmatprep.mubr.msk.bf16.mxu1 %vm5604_vm0, %v5603_v1 }
 0xbb2   :  { %4995 = vmatprep.subr.bf16.mxu1 %v5603_v1 }
 0xbb5   :  { %4996 = vmatpush3.bf16.msra.mxu1 %v5544_v21  ;;  %v6645_v24 = vpop.f32.mrb[52].mxu0 }
 0xbb6   :  { %4997 = vmatprep.subr.bf16.mxu1 %v5603_v1  ;;  %v5017_v31 = vpop.f32.mrb[53].mxu0  ;;  %v2757_v45 = vpack.c.bf16 %v6645_v24, %v6645_v24 }
 0xbb7   :  { %v2754_v34 = vpop.f32.mrb[54].mxu0 }
 0xbb8   :  { %v5018_v38 = vpop.f32.mrb[55].mxu0 }
 0xbb9   :  { %4998 = vmatpush3.bf16.msra.mxu1 %v5545_v27 }
 0xbba   :  { %4999 = vmatprep.subr.bf16.mxu1 %v5603_v1 }
 0xbbd   :  { %5000 = vmatpush3.bf16.msra.mxu1 %v5546_v39  ;;  %v6655_v40 = vpop.f32.mrb[56].mxu0 }
 0xbbe   :  { %5001 = vmatprep.subr.bf16.mxu1 %v5603_v1  ;;  %v5043_v42 = vpop.f32.mrb[57].mxu0  ;;  %v2909_v50 = vpack.c.bf16 %v6655_v40, %v6655_v40 }
 0xbbf   :  { %v2906_v11 = vpop.f32.mrb[58].mxu0  ;;  %v3369_v42 = vld [vmem:[%s6966_s11 + $0x40] sm:$0xff] }
 0xbc0   :  { %v5044_v36 = vpop.f32.mrb[59].mxu0  ;;  %v3370_v11 = vld [vmem:[%s6966_s11 + $0x48] sm:$0xff] }
 0xbc1   :  { %5002 = vmatpush3.bf16.msra.mxu1 %v5547_v41  ;;  %v5342_v36 = vpack.c.bf16 %v3370_v11, %v3369_v42 }
 0xbc2   :  { %5003 = vmatprep.subr.bf16.mxu1 %v5603_v1 }
 0xbc5   :  { %5004 = vmatpush3.bf16.msra.mxu1 %v5548_v37  ;;  %v6665_v8 = vpop.f32.mrb[60].mxu0 }
 0xbc6   :  { %5005 = vmatprep.subr.bf16.mxu1 %v5603_v1  ;;  %v5069_v52 = vpop.f32.mrb[61].mxu0  ;;  %v3060_v46 = vpack.c.bf16 %v6665_v8, %v6665_v8  ;;  %v3372_v8 = vld [vmem:[%s6966_s11 + $0x58] sm:$0xff] }
 0xbc7   :  { %v3057_v53 = vpop.f32.mrb[62].mxu0  ;;  %v3373_v52 = vld [vmem:[%s6966_s11 + $0x60] sm:$0xff] }
 0xbc8   :  { %v5070_v54 = vpop.f32.mrb[63].mxu0  ;;  %v3374_v53 = vld [vmem:[%s6966_s11 + $0x68] sm:$0xff] }
 0xbc9   :  { %5006 = vmatpush3.bf16.msra.mxu1 %v5549_v51  ;;  %v5348_v54 = vpack.c.bf16 %v3374_v53, %v3373_v52 }
 0xbca   :  { %5007 = vmatprep.subr.bf16.mxu1 %v5603_v1 }
 0xbcd   :  { %5008 = vmatpush3.bf16.msra.mxu1 %v5550_v55  ;;  %v3095_v56 = vpop.f32.mrb[64].mxu0 }
 0xbce   :  { %v3101_v3 = vpack.c.bf16 %v3095_v56, %v3095_v56  ;;  %5019 = vmatprep.subr.bf16.mxu1 %v5603_v1  ;;  %v5075_v5 = vpop.f32.mrb[65].mxu0  ;;  %v3376_v56 = vld [vmem:[%s6966_s11 + $0x78] sm:$0xff] }
 0xbcf   :  { %v3098_v7 = vpop.f32.mrb[66].mxu0 }
 0xbd0   :  { %5010 = vmatmul.mubr.bf16.vlgmr.msra.gmra.mrb[48].mxu1 %v2456_v59  ;;  %5094 = vmatmul.mubr.bf16.vlgmr.msra.gmra.mrb[68].mxu0 %v3101_v3  ;;  %v5076_v6 = vpop.f32.mrb[67].mxu0 }
 0xbd1   :  { %5020 = vmatpush3.bf16.msra.mxu1 %v6678_v58  ;;  %5098 = vmatpush3.bf16.msra.mxu0 %v5543_v26 }
 0xbd2   :  { %5021 = vmatprep.subr.bf16.mxu1 %v5603_v1  ;;  %5099 = vmatprep.subr.bf16.mxu0 %v5603_v1 }
 0xbd3   :  { %5035 = vmatprep.mubr.msk.bf16.mxu1 %vm5604_vm0, %v5603_v1  ;;  %5113 = vmatprep.mubr.msk.bf16.mxu0 %vm5604_vm0, %v5603_v1 }
 0xbd5   :  { %5022 = vmatpush3.bf16.msra.mxu1 %v5552_v22  ;;  %5100 = vmatpush3.bf16.msra.mxu0 %v5544_v21 }
 0xbd6   :  { %5023 = vmatprep.subr.bf16.mxu1 %v5603_v1  ;;  %5101 = vmatprep.subr.bf16.mxu0 %v5603_v1 }
 0xbd9   :  { %5024 = vmatpush3.bf16.msra.mxu1 %v5553_v25  ;;  %5102 = vmatpush3.bf16.msra.mxu0 %v5545_v27 }
 0xbda   :  { %5025 = vmatprep.subr.bf16.mxu1 %v5603_v1  ;;  %5103 = vmatprep.subr.bf16.mxu0 %v5603_v1 }
 0xbdd   :  { %5026 = vmatpush3.bf16.msra.mxu1 %v5554_v10  ;;  %5104 = vmatpush3.bf16.msra.mxu0 %v5546_v39 }
 0xbde   :  { %5027 = vmatprep.subr.bf16.mxu1 %v5603_v1  ;;  %5105 = vmatprep.subr.bf16.mxu0 %v5603_v1 }
 0xbe1   :  { %5028 = vmatpush3.bf16.msra.mxu1 %v5555_v4  ;;  %5106 = vmatpush3.bf16.msra.mxu0 %v5547_v41 }
 0xbe2   :  { %5029 = vmatprep.subr.bf16.mxu1 %v5603_v1  ;;  %5107 = vmatprep.subr.bf16.mxu0 %v5603_v1 }
 0xbe5   :  { %5030 = vmatpush3.bf16.msra.mxu1 %v5556_v12  ;;  %5108 = vmatpush3.bf16.msra.mxu0 %v5548_v37  ;;  %v3371_v37 = vld [vmem:[%s6966_s11 + $0x50] sm:$0xff] }
 0xbe6   :  { %5031 = vmatprep.subr.bf16.mxu1 %v5603_v1  ;;  %5109 = vmatprep.subr.bf16.mxu0 %v5603_v1 }
 0xbe9   :  { %5032 = vmatpush3.bf16.msra.mxu1 %v5557_v28  ;;  %5110 = vmatpush3.bf16.msra.mxu0 %v5549_v51  ;;  %v5345_v51 = vpack.c.bf16 %v3372_v8, %v3371_v37 }
 0xbea   :  { %5033 = vmatprep.subr.bf16.mxu1 %v5603_v1  ;;  %5111 = vmatprep.subr.bf16.mxu0 %v5603_v1 }
 0xbed   :  { %5034 = vmatpush3.bf16.msra.mxu1 %v5558_v43  ;;  %5112 = vmatpush3.bf16.msra.mxu0 %v5550_v55  ;;  %v3375_v55 = vld [vmem:[%s6966_s11 + $0x70] sm:$0xff] }
 0xbee   :  { %5045 = vmatprep.subr.bf16.mxu1 %v5603_v1  ;;  %5117 = vmatprep.subr.bf16.mxu0 %v5603_v1 }
 0xbf0   :  { %5036 = vmatmul.mubr.bf16.vlgmr.msra.gmra.mrb[48].mxu1 %v2757_v45  ;;  %5114 = vmatmul.mubr.bf16.vlgmr.msra.gmra.mrb[68].mxu0 %v3060_v46 }
 0xbf1   :  { %5046 = vmatpush3.bf16.msra.mxu1 %v6724_v44  ;;  %5118 = vmatpush3.bf16.msra.mxu0 %v6600_v14 }
 0xbf2   :  { %5047 = vmatprep.subr.bf16.mxu1 %v5603_v1  ;;  %5119 = vmatprep.mubr.msk.bf16.mxu0 %vm5604_vm0, %v5603_v1 }
 0xbf3   :  { %5061 = vmatprep.mubr.msk.bf16.mxu1 %vm5604_vm0, %v5603_v1  ;;  %5123 = vmatprep.subr.bf16.mxu0 %v5603_v1 }
 0xbf5   :  { %5048 = vmatpush3.bf16.msra.mxu1 %v6737_v47 }
 0xbf6   :  { %5049 = vmatprep.subr.bf16.mxu1 %v5603_v1 }
 0xbf8   :  { %5120 = vmatmul.mubr.msk.bf16.vlgmr.msra.gmra.mrb[72].mxu0 %vm2408_vm10, %v6585_v60  ;;  %v3361_v60 = vld [vmem:[%s6966_s11] sm:$0xff] }
 0xbf9   :  { %5050 = vmatpush3.bf16.msra.mxu1 %v6749_v48  ;;  %5124 = vmatpush3.bf16.msra.mxu0 %v6678_v58  ;;  %v5351_v58 = vpack.c.bf16 %v3376_v56, %v3375_v55 }
 0xbfa   :  { %5051 = vmatprep.subr.bf16.mxu1 %v5603_v1  ;;  %5125 = vmatprep.subr.bf16.mxu0 %v5603_v1 }
 0xbfb   :  { %5139 = vmatprep.mubr.msk.bf16.mxu0 %vm5604_vm0, %v5603_v1 }
 0xbfd   :  { %5052 = vmatpush3.bf16.msra.mxu1 %v6758_v19  ;;  %5126 = vmatpush3.bf16.msra.mxu0 %v5552_v22 }
 0xbfe   :  { %5053 = vmatprep.subr.bf16.mxu1 %v5603_v1  ;;  %5127 = vmatprep.subr.bf16.mxu0 %v5603_v1 }
 0xc01   :  { %5054 = vmatpush3.bf16.msra.mxu1 %v6769_v20  ;;  %5128 = vmatpush3.bf16.msra.mxu0 %v5553_v25 }
 0xc02   :  { %5055 = vmatprep.subr.bf16.mxu1 %v5603_v1  ;;  %5129 = vmatprep.subr.bf16.mxu0 %v5603_v1 }
 0xc05   :  { %5056 = vmatpush3.bf16.msra.mxu1 %v6777_v49  ;;  %5130 = vmatpush3.bf16.msra.mxu0 %v5554_v10 }
 0xc06   :  { %5057 = vmatprep.subr.bf16.mxu1 %v5603_v1  ;;  %5131 = vmatprep.subr.bf16.mxu0 %v5603_v1 }
 0xc09   :  { %5058 = vmatpush3.bf16.msra.mxu1 %v6785_v29  ;;  %5132 = vmatpush3.bf16.msra.mxu0 %v5555_v4 }
 0xc0a   :  { %5059 = vmatprep.subr.bf16.mxu1 %v5603_v1  ;;  %5133 = vmatprep.subr.bf16.mxu0 %v5603_v1 }
 0xc0d   :  { %5060 = vmatpush3.bf16.msra.mxu1 %v6793_v30  ;;  %5134 = vmatpush3.bf16.msra.mxu0 %v5556_v12 }
 0xc0e   :  { %5143 = vmatprep.subr.bf16.mxu1 %v5603_v1  ;;  %5135 = vmatprep.subr.bf16.mxu0 %v5603_v1 }
 0xc10   :  { %5062 = vmatmul.mubr.bf16.vlgmr.msra.gmra.mrb[48].mxu1 %v2909_v50  ;;  %v3451_v50 = vld [vmem:[%s6967_s12 + $0x10] sm:$0xff] }
 0xc11   :  { %5144 = vmatpush3.bf16.msra.mxu1 %v6600_v14  ;;  %5145 = vmatprep.mubr.msk.bf16.mxu1 %vm5604_vm0, %v5603_v1  ;;  %v5330_v14 = vpack.c.bf16 %v3362_v61, %v3361_v60  ;;  %v3452_v60 = vld [vmem:[%s6967_s12 + $0x18] sm:$0xff] }
 0xc12   :  { %5136 = vmatpush3.bf16.msra.mxu0 %v5557_v28  ;;  %5329 = vmatprep.subr.bf16.mxu1 %v5605_v62  ;;  %v5357_v61 = vpack.c.bf16 %v3452_v60, %v3451_v50 }
 0xc13   :  { %5137 = vmatprep.subr.bf16.mxu0 %v5603_v1 }
 0xc16   :  { %5138 = vmatpush3.bf16.msra.mxu0 %v5558_v43 }
 0xc17   :  { %5149 = vmatprep.subr.bf16.mxu0 %v5603_v1 }
 0xc18   :  { %5146 = vmatmul.mubr.msk.bf16.vlgmr.msra.gmra.mrb[52].mxu1 %vm2408_vm10, %v6595_v13  ;;  %v3364_v13 = vld [vmem:[%s6966_s11 + $0x18] sm:$0xff] }
 0xc19   :  { %5201 = vmatprep.mubr.msk.f32.mxu1 %vm5604_vm0, %v5603_v1  ;;  %5331 = vmatpush3.bf16.msra.mxu1 %v5330_v14  ;;  %v5333_v16 = vpack.c.bf16 %v3364_v13, %v3363_v0 }
 0xc1a   :  { %5332 = vmatprep.subr.bf16.mxu1 %v5605_v62 }
 0xc1d   :  { %5334 = vmatpush3.bf16.msra.mxu1 %v5333_v16 }
 0xc1e   :  { %5335 = vmatprep.subr.bf16.mxu1 %v5605_v62 }
 0xc21   :  { %5337 = vmatpush3.bf16.msra.mxu1 %v5336_v63 }
 0xc22   :  { %5338 = vmatprep.subr.bf16.mxu1 %v5605_v62 }
 0xc25   :  { %5340 = vmatpush3.bf16.msra.mxu1 %v5339_v18 }
 0xc26   :  { %5341 = vmatprep.subr.bf16.mxu1 %v5605_v62 }
 0xc29   :  { %5343 = vmatpush3.bf16.msra.mxu1 %v5342_v36 }
 0xc2a   :  { %5344 = vmatprep.subr.bf16.mxu1 %v5605_v62 }
 0xc2d   :  { %5346 = vmatpush3.bf16.msra.mxu1 %v5345_v51 }
 0xc2e   :  { %5347 = vmatprep.subr.bf16.mxu1 %v5605_v62 }
 0xc31   :  { %5349 = vmatpush3.bf16.msra.mxu1 %v5348_v54 }
 0xc32   :  { %5350 = vmatprep.subr.bf16.mxu1 %v5605_v62 }
 0xc35   :  { %5352 = vmatpush3.bf16.msra.mxu1 %v5351_v58 }
 0xc36   :  { %5353 = vmatprep.subr.bf16.mxu1 %v5605_v62 }
 0xccb   :  { %v3216_v26 = vpop.f32.mrb[72].mxu0 }
 0xccc   :  { %v3222_v33 = vpack.c.bf16 %v3216_v26, %v3216_v26  ;;  %v5121_v57 = vpop.f32.mrb[73].mxu0 }
 0xccd   :  { %v3219_v35 = vpop.f32.mrb[74].mxu0 }
 0xcce   :  { %5140 = vmatmul.mubr.bf16.vlgmr.msra.gmra.mrb[68].mxu0 %v3222_v33  ;;  %v5122_v9 = vpop.f32.mrb[75].mxu0 }
 0xccf   :  { %5150 = vmatpush3.bf16.msra.mxu0 %v6724_v44  ;;  %5165 = vmatprep.mubr.msk.bf16.mxu0 %vm5604_vm0, %v5603_v1 }
 0xcd0   :  { %5151 = vmatprep.subr.bf16.mxu0 %v5603_v1 }
 0xcd3   :  { %5152 = vmatpush3.bf16.msra.mxu0 %v6737_v47 }
 0xcd4   :  { %5153 = vmatprep.subr.bf16.mxu0 %v5603_v1 }
 0xcd7   :  { %5154 = vmatpush3.bf16.msra.mxu0 %v6749_v48  ;;  %v3449_v48 = vld [vmem:[%s6967_s12] sm:$0xff] }
 0xcd8   :  { %5155 = vmatprep.subr.bf16.mxu0 %v5603_v1 }
 0xcdb   :  { %5156 = vmatpush3.bf16.msra.mxu0 %v6758_v19  ;;  %v3450_v19 = vld [vmem:[%s6967_s12 + $0x8] sm:$0xff] }
 0xcdc   :  { %5157 = vmatprep.subr.bf16.mxu0 %v5603_v1 }
 0xcdf   :  { %5158 = vmatpush3.bf16.msra.mxu0 %v6769_v20 }
 0xce0   :  { %5159 = vmatprep.subr.bf16.mxu0 %v5603_v1 }
 0xce3   :  { %v6852_v21 = vpop.f32.mrb[48].mxu1  ;;  %5160 = vmatpush3.bf16.msra.mxu0 %v6777_v49 }
 0xce4   :  { %v5063_v24 = vpop.f32.mrb[49].mxu1  ;;  %5161 = vmatprep.subr.bf16.mxu0 %v5603_v1  ;;  %v3346_v59 = vsel %vm2412_vm9, %v6852_v21, 0.0 }
 0xce5   :  { %v3012_v27 = vpop.f32.mrb[50].mxu1  ;;  %v3347_v3 = vrot.slane %v3346_v59, 4 }
 0xce6   :  { %v5064_v31 = vpop.f32.mrb[51].mxu1 }
 0xce7   :  { %5162 = vmatpush3.bf16.msra.mxu0 %v6785_v29  ;;  %v3348_v5 = vadd.f32 %v3347_v3, %v3346_v59  ;;  %v5354_v29 = vpack.c.bf16 %v3450_v19, %v3449_v48 }
 0xce8   :  { %5163 = vmatprep.subr.bf16.mxu0 %v5603_v1 }
 0xce9   :  { %v3349_v7 = vrot.slane %v3348_v5, 2 }
 0xceb   :  { %v3298_v34 = vpop.f32.mrb[52].mxu1  ;;  %5164 = vmatpush3.bf16.msra.mxu0 %v6793_v30  ;;  %v3350_v28 = vadd.f32 %v3349_v7, %v3348_v5 }
 0xcec   :  { %v3304_v38 = vpack.c.bf16 %v3298_v34, %v3298_v34  ;;  %v5147_v39 = vpop.f32.mrb[53].mxu1  ;;  %5359 = vmatprep.subr.bf16.mxu0 %v5605_v62 }
 0xced   :  { %v3301_v40 = vpop.f32.mrb[54].mxu1  ;;  %v3351_v45 = vrot.slane %v3350_v28, 1 }
 0xcee   :  { %5166 = vmatmul.mubr.bf16.vlgmr.msra.gmra.mrb[68].mxu0 %v3304_v38  ;;  %v5148_v41 = vpop.f32.mrb[55].mxu1 }
 0xcef   :  { %5361 = vmatpush3.bf16.msra.mxu0 %v5330_v14  ;;  %5247 = vmatprep.mubr.msk.f32.mxu0 %vm5604_vm0, %v5603_v1  ;;  %v3352_v20 = vadd.f32 %v3351_v45, %v3350_v28 }
 0xcf0   :  { %5362 = vmatprep.subr.bf16.mxu0 %v5605_v62 }
 0xcf3   :  { %5364 = vmatpush3.bf16.msra.mxu0 %v5333_v16 }
 0xcf4   :  { %5365 = vmatprep.subr.bf16.mxu0 %v5605_v62 }
 0xcf7   :  { %5367 = vmatpush3.bf16.msra.mxu0 %v5336_v63 }
 0xcf8   :  { %5368 = vmatprep.subr.bf16.mxu0 %v5605_v62 }
 0xcfb   :  { %5370 = vmatpush3.bf16.msra.mxu0 %v5339_v18 }
 0xcfc   :  { %5371 = vmatprep.subr.bf16.mxu0 %v5605_v62 }
 0xcff   :  { %5373 = vmatpush3.bf16.msra.mxu0 %v5342_v36 }
 0xd00   :  { %5374 = vmatprep.subr.bf16.mxu0 %v5605_v62 }
 0xd03   :  { %5376 = vmatpush3.bf16.msra.mxu0 %v5345_v51  ;;  %v3620_v51 = vld [vmem:[%s6968_s13] sm:$0x1] }
 0xd04   :  { %5377 = vmatprep.subr.bf16.mxu0 %v5605_v62 }
 0xd07   :  { %5379 = vmatpush3.bf16.msra.mxu0 %v5348_v54  ;;  %v3697_v54 = vld [vmem:[%s6969_s14] sm:$0x1]  ;;  %s5606_s14 = smov [#allocation2]  }
 0xd08   :  { %5380 = vmatprep.subr.bf16.mxu0 %v5605_v62 }
 0xd0b   :  { %5382 = vmatpush3.bf16.msra.mxu0 %v5351_v58 }
 0xdc1   :  { %v3339_v6 = vpop.f32.mrb[68].mxu0 }
 0xdc2   :  { %v3353_v22 = vsel %vm2412_vm9, %v3339_v6, 0.0  ;;  %v5167_v25 = vpop.f32.mrb[69].mxu0 }
 0xdc3   :  { %v3354_v10 = vrot.slane %v3353_v22, 4  ;;  %v3342_v4 = vpop.f32.mrb[70].mxu0 }
 0xdc4   :  { %v5168_v12 = vpop.f32.mrb[71].mxu0 }
 0xdc5   :  { %v3355_v43 = vadd.f32 %v3354_v10, %v3353_v22 }
 0xdc7   :  { %v3356_v44 = vrot.slane %v3355_v43, 2 }
 0xdc9   :  { %v3357_v46 = vadd.f32 %v3356_v44, %v3355_v43 }
 0xdcb   :  { %v3358_v47 = vrot.slane %v3357_v46, 1 }
 0xdcd   :  { %v3359_v49 = vadd.f32 %v3358_v47, %v3357_v46 }
 0xdcf   :  { %v3360_v30 = vadd.f32 %v3359_v49, %v3352_v20 }
 0xdd1   :  { %5202 = vmatmul.mubr.f32.vlgmr.msra.gmra.mrb[56].mxu1 %v3360_v30 }
 0xdd2   :  { %5355 = vmatpush3.bf16.msra.mxu1 %v5354_v29  ;;  %5212 = vmatprep.mubr.msk.f32.mxu1 %vm5604_vm0, %v5603_v1 }
 0xdd3   :  { %5356 = vmatprep.subr.bf16.mxu1 %v5605_v62 }
 0xdd6   :  { %5358 = vmatpush3.bf16.msra.mxu1 %v5357_v61 }
 0xdd7   :  { %5383 = vmatprep.subr.bf16.mxu1 %v5605_v62 }
 0xea4   :  { %v3443_v0 = vpop.f32.mrb[56].mxu1 }
 0xea5   :  { %v3448_v14 = vmul.f32 0.03125, %v3443_v0  ;;  %v5203_v13 = vpop.f32.mrb[57].mxu1 }
 0xea7   :  { %5213 = vmatmul.mubr.msk.f32.vlgmr.msra.gmra.mrb[58].mxu1 %vm78_vm1, %v3448_v14 }
 0xea8   :  { %5385 = vmatpush3.bf16.msra.mxu1 %v5354_v29  ;;  %5258 = vmatprep.mubr.msk.f32.mxu1 %vm5604_vm0, %v5603_v1 }
 0xea9   :  { %5386 = vmatprep.subr.bf16.mxu1 %v5605_v62 }
 0xeac   :  { %5388 = vmatpush3.bf16.msra.mxu1 %v5357_v61 }
 0xead   :  { %5389 = vmatprep.subr.bf16.mxu1 %v5605_v62 }
 0xf7a   :  { %v3522_v16 = vpop.f32.mrb[58].mxu1 }
 0xf7b   :  { %v3529_v17 = vrot.slane %v3522_v16, %v6502_v15  ;;  %v5214_v32 = vpop.f32.mrb[59].mxu1 }
 0xf7d   :  { %v3530_v63 = vsub.f32 %v6852_v21, %v3529_v17  ;;  %v3539_v2 = vsub.f32 %v3339_v6, %v3529_v17 }
 0xf7f   :  { %v3531_v23 = vmul.f32 %v3530_v63, %v3530_v63  ;;  %v3540_v18 = vmul.f32 %v3539_v2, %v3539_v2 }
 0xf81   :  { %v3532_v26 = vsel %vm2412_vm9, %v3531_v23, 0.0  ;;  %v3541_v33 = vsel %vm2412_vm9, %v3540_v18, 0.0 }
 0xf82   :  { %v3533_v57 = vrot.slane %v3532_v26, 4  ;;  %v3542_v35 = vrot.slane %v3541_v33, 4 }
 0xf84   :  { %v3534_v9 = vadd.f32 %v3533_v57, %v3532_v26  ;;  %v3543_v24 = vadd.f32 %v3542_v35, %v3541_v33 }
 0xf86   :  { %v3535_v27 = vrot.slane %v3534_v9, 2  ;;  %v3544_v31 = vrot.slane %v3543_v24, 2 }
 0xf88   :  { %v3536_v34 = vadd.f32 %v3535_v27, %v3534_v9  ;;  %v3545_v38 = vadd.f32 %v3544_v31, %v3543_v24 }
 0xf8a   :  { %v3537_v39 = vrot.slane %v3536_v34, 1  ;;  %v3546_v40 = vrot.slane %v3545_v38, 1 }
 0xf8c   :  { %v3538_v41 = vadd.f32 %v3537_v39, %v3536_v34  ;;  %v3547_v42 = vadd.f32 %v3546_v40, %v3545_v38 }
 0xf8e   :  { %v3548_v21 = vadd.f32 %v3547_v42, %v3538_v41 }
 0xf90   :  { %5248 = vmatmul.mubr.f32.vlgmr.msra.gmra.mrb[42].mxu0 %v3548_v21 }
0x1063   :  { %v3615_v11 = vpop.f32.mrb[42].mxu0 }
0x1064   :  { %v3619_v36 = vmul.f32 0.03125, %v3615_v11  ;;  %v5249_v37 = vpop.f32.mrb[43].mxu0 }
0x1066   :  { %v3621_v8 = vadd.f32 1e-05, %v3619_v36 }
0x1068   :  { %5569 = vrsqrt.f32 %v3621_v8 }
0x1072   :  { %v5570_v52 = vpop.eup %5569 }
0x1073   :  { %v3623_v53 = vmul.f32 %v5570_v52, %v3620_v51 }
0x1075   :  { %5259 = vmatmul.mubr.msk.f32.vlgmr.msra.gmra.mrb[60].mxu1 %vm78_vm1, %v3623_v53 }
0x1076   :  { %5391 = vmatpush3.bf16.msra.mxu1 %v5354_v29  ;;  %5269 = vmatprep.mubr.msk.f32.mxu1 %vm5604_vm0, %v5603_v1 }
0x1077   :  { %5392 = vmatprep.subr.bf16.mxu1 %v5605_v62  ;;  %v3789_v62 = vld [vmem:[%s6970_s15] sm:$0xf]  ;;  %s3832_s15 = sshll.u32 %s5606_s14, 4  ;;  %s3833_s15 = int_to_ptr.vmem [resolvable:$true] %s3832_s15 }
0x1078   :  { %s5579_s2 = scalar_lea.vmem %s3833_s15, 16  ;;  %s5583_s22 = scalar_lea.vmem %s3833_s15, 32 }
0x1079   :  { %p5580_p0 = scmp.ne.s32.totalorder %s3833_s15, %s5579_s2  ;;  %p5584_p1 = scmp.lt.s32.totalorder %s3833_s15, %s3833_s15 }
0x107a   :  { %5394 = vmatpush3.bf16.msra.mxu1 %v5357_v61  ;;  %p5585_p2 = scmp.lt.s32.totalorder %s5583_s22, %s5579_s2 }
0x107c   :  { %p5586_p3 = por %p5585_p2, %p5584_p1 }
0x107d   :  { %5270 = vmatmul.mubr.msk.f32.vlgmr.msra.gmra.mrb[62].mxu1 %vm78_vm1, %v3697_v54 }
0x107e   :  { %p5587_p4 = pnand %p5586_p3, %p5580_p0 }
0x1148   :  { %v3693_v55 = vpop.f32.mrb[60].mxu1 }
0x1149   :  { %v5260_v56 = vpop.f32.mrb[61].mxu1  ;;  %v3774_v58 = vrot.slane %v3693_v55, %v6502_v15 }
0x114b   :  { %v3775_v3 = vmul.f32 %v3774_v58, %v3530_v63  ;;  %v3784_v5 = vmul.f32 %v3774_v58, %v3539_v2 }
0x1150   :  { %v3767_v59 = vpop.f32.mrb[62].mxu1 }
0x1151   :  { %v3779_v7 = vrot.slane %v3767_v59, %v6502_v15  ;;  %v5271_v6 = vpop.f32.mrb[63].mxu1 }
0x1153   :  { %v3780_v1 = vadd.f32 %v3779_v7, %v3775_v3  ;;  %v3785_v22 = vadd.f32 %v3784_v5, %v3779_v7 }
0x1155   :  { %vm3781_vm12 = vcmp.ge.f32.partialorder %v3780_v1, 0.0  ;;  %v3782_v25 = vmul.f32 0.2, %v3780_v1  ;;  %vm3786_vm13 = vcmp.ge.f32.partialorder %v3785_v22, 0.0  ;;  %v3787_v10 = vmul.f32 0.2, %v3785_v22 }
0x1157   :  { %v3783_v4 = vsel %vm3781_vm12, %v3780_v1, %v3782_v25  ;;  %v3788_v12 = vsel %vm3786_vm13, %v3785_v22, %v3787_v10 }
0x1158   :  { %v3808_v28 = vmul.f32 %v3789_v62, %v3788_v12  ;;  %v3790_v43 = vmul.f32 %v3789_v62, %v3783_v4 }
0x115a   :  { %v3791_v44 = vsel %vm2412_vm9, %v3790_v43, 0.0  ;;  %v3809_v45 = vsel %vm2412_vm9, %v3808_v28, 0.0 }
0x115b   :  { %v3792_v15 = vrot.slane %v3791_v44, 4  ;;  %v3810_v46 = vrot.slane %v3809_v45, 4 }
0x115d   :  { %v3793_v47 = vadd.f32 %v3792_v15, %v3791_v44  ;;  %v3811_v48 = vadd.f32 %v3810_v46, %v3809_v45 }
0x115f   :  { %v3794_v19 = vrot.slane %v3793_v47, 2  ;;  %v3812_v20 = vrot.slane %v3811_v48, 2 }
0x1161   :  { %v3795_v49 = vadd.f32 %v3794_v19, %v3793_v47  ;;  %v3813_v29 = vadd.f32 %v3812_v20, %v3811_v48 }
0x1163   :  { %v3796_v30 = vrot.slane %v3795_v49, 1  ;;  %v3814_v60 = vrot.slane %v3813_v29, 1 }
0x1165   :  { %v3797_v50 = vadd.f32 %v3796_v30, %v3795_v49  ;;  %v3815_v61 = vadd.f32 %v3814_v60, %v3813_v29 }
0x1167   :  { %3798 = vadd.xlane.f32.xlu0 %v3797_v50 }
0x116b   :  { %3816 = vadd.xlane.f32.xlu0 %v3815_v61 }
0x11f4   :  { %v3799_v0 = vpop.xlane.xlu0 %3798 }
0x11f5   :  { %v3800_v14 = vsub.f32 0.0, %v3799_v0 }
0x11f7   :  { %v3801_v13 = vmul.f32 1.442695, %v3800_v14 }
0x11f8   :  { %v3817_v16 = vpop.xlane.xlu0 %3816 }
0x11f9   :  { %5571 = vpow2.f32 %v3801_v13  ;;  %v3818_v17 = vsub.f32 0.0, %v3817_v16 }
0x11fb   :  { %v3819_v32 = vmul.f32 1.442695, %v3818_v17 }
0x11fd   :  { %5573 = vpow2.f32 %v3819_v32 }
0x1203   :  { %v5572_v63 = vpop.eup %5571 }
0x1204   :  { %v3803_v2 = vadd.f32 1.0, %v5572_v63 }
0x1206   :  { %5575 = vrcp.f32 %v3803_v2 }
0x1207   :  { %v5574_v23 = vpop.eup %5573 }
0x1208   :  { %v3821_v18 = vadd.f32 1.0, %v5574_v23 }
0x120a   :  { %5577 = vrcp.f32 %v3821_v18 }
0x1210   :  { %v5576_v26 = vpop.eup %5575 }
0x1211   :  { %3807 = vst.msk [vmem:[#allocation2] sm:$0x1] %vm3806_vm14, %v5576_v26 }
0x1214   :  { %v5578_v33 = vpop.eup %5577 }
0x1215   :  { %3825 = vst.msk [vmem:[#allocation2] sm:$0x1] %vm3824_vm15, %v5578_v33 }
0x1216   :  { %5590 = shalt.err (!%p5587_p4)
}
0x1217   :  { %s5591_s24 = scalar_lea.hbm %s6971_s16, 16 }
0x1218   :  { %p5592_p5 = scmp.ne.s32.totalorder %s6971_s16, %s5591_s24  ;;  %p5595_p6 = scmp.lt.u32.totalorder %s5591_s24, %s6971_s16 }
0x121a   :  { %p5597_p7 = pnand %p5595_p6, %p5592_p5 }
0x121c   :  { %5600 = shalt.err (!%p5597_p7)
}
0x121d   :  { %3835 = dma.vmem_to_hbm [thread:$0]  %s3833_s15, 16, %s6971_s16, [#allocation3]  }
0x121e   :  { %5601 = dma.done.wait [#allocation3], 16  }
0x121f   :  { %5602 = vsyncadd [#allocation3], 4294967280 }
0x1220   :  { %3839 = vsyncpa [#allocation3], 1 }

</bundles_post_ra>
